<compile_context>
chip_gen: v7x
topology: tpu7x:2x2x1
jax: 0.10.0
libtpu: 0.0.40
codegen_flags: <defaults>
</compile_context>

<pallas_src>
import math
from functools import partial

import jax
import jax.numpy as jnp
from jax import lax
from jax.experimental import pallas as pl
from jax.experimental.pallas import tpu as pltpu


def _transformer_kernel(x_ref, wqkv_ref, wout_ref, res_ref, logits_ref,
                        *, num_heads, batch, seq_len, seq_pad, expr_len):
    """Single invocation processes the whole batch (no grid).

    x_ref:      [B*Sp, D]   residual stream input (embeddings + pos), Sp = padded S
    wqkv_ref:   [L, D, 3D]  in_proj_weight.T per layer (Q columns pre-scaled)
    wout_ref:   [L, D, D]   out_proj.weight.T per layer
    res_ref:    [B*Sp, D]   final residual stream (padded rows hold junk)
    logits_ref: [B, W]      world logits = sum_D(residual[:, E:S, :])
    """
    num_layers = wqkv_ref.shape[0]
    d_model = x_ref.shape[-1]
    head_dim = d_model // num_heads
    S, Sp, E = seq_len, seq_pad, expr_len

    x = x_ref[...]                                           # [B*Sp, D] in vregs

    for layer in range(num_layers):
        w_qkv = wqkv_ref[layer]                              # [D, 3D]
        w_out = wout_ref[layer]                              # [D, D]

        # Fused QKV projection for all batch elements at once.
        qkv = jnp.dot(x, w_qkv, preferred_element_type=jnp.float32)   # [B*Sp, 3D]

        batch_outs = []
        for b in range(batch):
            base = b * Sp
            qkv_b = qkv[base:base + Sp, :]                   # [Sp, 3D] (aligned)

            head_outs = []
            for h in range(num_heads):
                lo, hi = h * head_dim, (h + 1) * head_dim
                # Queries keep the padded rows (harmless junk, rows >= S are
                # never read back); keys/values are restricted to real rows so
                # padding never leaks into the softmax.
                qh = qkv_b[:, lo:hi]                                    # [Sp, hd]
                kh = qkv_b[:S, d_model + lo:d_model + hi]               # [S,  hd]
                vh = qkv_b[:S, 2 * d_model + lo:2 * d_model + hi]       # [S,  hd]

                # scores = qh @ kh.T  (scale already folded into Q weights)
                s = lax.dot_general(qh, kh, (((1,), (1,)), ((), ())),
                                    preferred_element_type=jnp.float32)  # [Sp, S]
                s = s - jnp.max(s, axis=-1, keepdims=True)
                p = jnp.exp(s)
                p = p * pl.reciprocal(jnp.sum(p, axis=-1, keepdims=True),
                                      approx=True)
                head_outs.append(
                    jnp.dot(p, vh, preferred_element_type=jnp.float32))  # [Sp, hd]

            # In-register head concatenation (lane concat, no VMEM scratch).
            batch_outs.append(jnp.concatenate(head_outs, axis=-1))       # [Sp, D]

        # Sublane-aligned batch concat, then ONE fused output projection.
        attn_cat = jnp.concatenate(batch_outs, axis=0)                   # [B*Sp, D]
        attn = jnp.dot(attn_cat, w_out, preferred_element_type=jnp.float32)
        x = x + attn                                         # residual_stream += attn

    res_ref[...] = x

    # Fused epilogue: world_logits[b, w] = sum_D residual[b, E + w, :].
    logits_ref[...] = jnp.stack(
        [jnp.sum(x[b * Sp + E:b * Sp + S, :], axis=-1) for b in range(batch)],
        axis=0)                                              # [B, W]


def simple_transformer_forward(input_ids, expression_length, params, num_heads):
    emb_matrix = params['embedding_matrix']          # [V, D]
    pos_emb_tbl = params['pos_embedding']            # [8, D]
    wqkv_t = params['wqkv_t']                        # [L, D, 3D] (Q pre-scaled)
    wout_t = params['wout_t']                        # [L, D, D]

    B, S = input_ids.shape
    D = emb_matrix.shape[1]
    W = S - expression_length
    Sp = ((S + 7) // 8) * 8                          # sublane-aligned sequence
    assert expression_length <= pos_emb_tbl.shape[0], (
        "expression_length exceeds positional-embedding table size")

    # Prologue (kept in the wrapper): embedding gather + padded pos embeddings
    # (matches F.pad(pos_emb, (0, 0, 0, 36)) with 36 "world" tokens).
    x = jnp.take(emb_matrix, input_ids, axis=0)                        # [B, S, D]
    pos = jnp.take(pos_emb_tbl,
                   jnp.arange(expression_length, dtype=jnp.int32), axis=0)
    pos = jnp.pad(pos, ((0, W), (0, 0)))[None]                         # [1, S, D]
    x = x + pos
    # Pad S -> Sp and flatten batch into the sublane axis for the kernel.
    x_flat = jnp.pad(x, ((0, 0), (0, Sp - S), (0, 0))).reshape(B * Sp, D)

    kernel = partial(_transformer_kernel, num_heads=num_heads, batch=B,
                     seq_len=S, seq_pad=Sp, expr_len=expression_length)

    residual_flat, world_logits = pl.pallas_call(
        kernel,
        out_shape=(jax.ShapeDtypeStruct((B * Sp, D), jnp.float32),
                   jax.ShapeDtypeStruct((B, W), jnp.float32)),
        in_specs=[pl.BlockSpec(memory_space=pltpu.MemorySpace.VMEM),
                  pl.BlockSpec(memory_space=pltpu.MemorySpace.VMEM),
                  pl.BlockSpec(memory_space=pltpu.MemorySpace.VMEM)],
        out_specs=(pl.BlockSpec(memory_space=pltpu.MemorySpace.VMEM),
                   pl.BlockSpec(memory_space=pltpu.MemorySpace.VMEM)),
    )(x_flat, wqkv_t, wout_t)

    residual = residual_flat.reshape(B, Sp, D)[:, :S, :]
    world_residual_stream = residual[:, expression_length:, :]

    # TODO(synk): per-layer residual_stream_data / attn_out_data snapshots are
    # not exported from the kernel; only first + final residual streams kept.
    forward_data = {
        'input_tensor': input_ids,
        'residual_stream_data': [x, residual],
        'attn_out_data': [],
        'world_residual_stream': world_residual_stream,
        'world_logits': world_logits,
    }
    return world_logits, forward_data


def init_params(key, vocab_size, embed_dim, num_layers, num_heads):
    def xavier_uniform(k, shape):
        fan_out, fan_in = shape[0], shape[1]
        bound = math.sqrt(6.0 / (fan_in + fan_out))
        return jax.random.uniform(k, shape, jnp.float32, -bound, bound)

    k_emb, k_pos, k_qkv, k_out = jax.random.split(key, 4)
    embedding_matrix = jax.random.normal(k_emb, (vocab_size, embed_dim),
                                         jnp.float32)
    pos_embedding = xavier_uniform(k_pos, (8, embed_dim))
    in_proj = jnp.stack([xavier_uniform(k, (3 * embed_dim, embed_dim))
                         for k in jax.random.split(k_qkv, num_layers)])
    out_proj = jnp.stack([xavier_uniform(k, (embed_dim, embed_dim))
                          for k in jax.random.split(k_out, num_layers)])

    wqkv_t = jnp.transpose(in_proj, (0, 2, 1))       # [L, D, 3D]
    # Fold 1/sqrt(head_dim) attention scale into the Q columns once at init
    # (exact since the module's MultiheadAttention uses bias=False).
    scale = 1.0 / math.sqrt(embed_dim // num_heads)
    wqkv_t = wqkv_t.at[:, :, :embed_dim].multiply(scale)

    return {
        'embedding_matrix': embedding_matrix,
        'pos_embedding': pos_embedding,
        'wqkv_t': wqkv_t,                              # [L, D, 3D], Q pre-scaled
        'wout_t': jnp.transpose(out_proj, (0, 2, 1)),  # [L, D, D]
    }


def _reference_world_logits(x, wqkv_t, wout_t, num_heads, expression_length):
    """Pure-JAX (XLA) reference with the same (pre-scaled) parameters."""
    B, S, D = x.shape
    hd = D // num_heads
    for l in range(wqkv_t.shape[0]):
        qkv = jnp.einsum('bsd,de->bse', x, wqkv_t[l])
        q, k, v = qkv[..., :D], qkv[..., D:2 * D], qkv[..., 2 * D:]
        outs = []
        for h in range(num_heads):
            lo, hi = h * hd, (h + 1) * hd
            s = jnp.einsum('bqd,bkd->bqk', q[..., lo:hi], k[..., lo:hi])
            p = jax.nn.softmax(s, axis=-1)
            outs.append(jnp.einsum('bqk,bkd->bqd', p, v[..., lo:hi]))
        attn = jnp.einsum('bsd,de->bse', jnp.concatenate(outs, -1), wout_t[l])
        x = x + attn
    return jnp.sum(x[:, expression_length:, :], axis=-1)


if __name__ == "__main__":
    key = jax.random.PRNGKey(0)

    vocab_size = 16
    embed_dim = 32
    num_heads = 4
    num_layers = 2
    expression_length = 8
    world_tokens = 36               # fixed by F.pad(..., (0, 0, 0, 36))
    batch = 2
    seq_len = expression_length + world_tokens

    p_key, i_key = jax.random.split(key)
    params = init_params(p_key, vocab_size, embed_dim, num_layers, num_heads)
    input_ids = jax.random.randint(i_key, (batch, seq_len), 0, vocab_size,
                                   dtype=jnp.int32)

    world_logits, forward_data = simple_transformer_forward(
        input_ids, expression_length, params, num_heads)
    jax.block_until_ready(world_logits)

    assert world_logits.shape == (batch, world_tokens)
    assert forward_data['world_residual_stream'].shape == (
        batch, world_tokens, embed_dim)
    assert bool(jnp.all(jnp.isfinite(world_logits)))

    # Loose-tolerance numerics check vs. a pure-JAX reference (approx
    # reciprocal in the softmax denominator introduces ~1e-3-level error).
    ref_logits = _reference_world_logits(
        forward_data['residual_stream_data'][0], params['wqkv_t'],
        params['wout_t'], num_heads, expression_length)
    assert bool(jnp.allclose(world_logits, ref_logits, atol=5e-2, rtol=5e-2))

    print("KERNEL_OK")
</pallas_src>

<mosaic_0001>
module attributes {stable_mosaic.version = 11 : i64} {
  func.func @_transformer_kernel(%arg0: memref<96x32xf32, #tpu.memory_space<vmem>>, %arg1: memref<2x32x96xf32, #tpu.memory_space<vmem>>, %arg2: memref<2x32x32xf32, #tpu.memory_space<vmem>>, %arg3: memref<96x32xf32, #tpu.memory_space<vmem>>, %arg4: memref<2x36xf32, #tpu.memory_space<vmem>>) attributes {dimension_semantics = [], scalar_prefetch = 0 : i64, scratch_operands = 0 : i64, tpu.core_type = #tpu.core_type<tc>} {
    %c0 = arith.constant 0 : index
    %c0_0 = arith.constant 0 : index
    %0 = vector.load %arg0[%c0, %c0_0] : memref<96x32xf32, #tpu.memory_space<vmem>>, vector<96x32xf32>
    %c0_1 = arith.constant 0 : index
    %c0_2 = arith.constant 0 : index
    %c0_3 = arith.constant 0 : index
    %1 = vector.load %arg1[%c0_1, %c0_2, %c0_3] : memref<2x32x96xf32, #tpu.memory_space<vmem>>, vector<1x32x96xf32>
    %2 = vector.shape_cast %1 : vector<1x32x96xf32> to vector<32x96xf32>
    %c0_4 = arith.constant 0 : index
    %c0_5 = arith.constant 0 : index
    %c0_6 = arith.constant 0 : index
    %3 = vector.load %arg2[%c0_4, %c0_5, %c0_6] : memref<2x32x32xf32, #tpu.memory_space<vmem>>, vector<1x32x32xf32>
    %4 = vector.shape_cast %3 : vector<1x32x32xf32> to vector<32x32xf32>
    %cst = arith.constant dense<0.000000e+00> : vector<96x96xf32>
    %5 = tpu.matmul %0, %2, %cst {dimension_numbers = #tpu.dot_dimension_numbers<[1], [0], [0], [1], [0, 0, 1, 1], [], []>} : vector<96x32xf32>, vector<32x96xf32>, vector<96x96xf32> -> vector<96x96xf32>
    %6 = vector.extract_strided_slice %5 {offsets = [0, 0], sizes = [48, 96], strides = [1, 1]} : vector<96x96xf32> to vector<48x96xf32>
    %7 = vector.extract_strided_slice %6 {offsets = [0, 0], sizes = [48, 8], strides = [1, 1]} : vector<48x96xf32> to vector<48x8xf32>
    %8 = vector.extract_strided_slice %6 {offsets = [0, 32], sizes = [44, 8], strides = [1, 1]} : vector<48x96xf32> to vector<44x8xf32>
    %9 = vector.extract_strided_slice %6 {offsets = [0, 64], sizes = [44, 8], strides = [1, 1]} : vector<48x96xf32> to vector<44x8xf32>
    %cst_7 = arith.constant dense<0.000000e+00> : vector<48x44xf32>
    %10 = tpu.matmul %7, %8, %cst_7 {dimension_numbers = #tpu.dot_dimension_numbers<[1], [1], [0], [0], [0, 0, 1, 0], [], []>} : vector<48x8xf32>, vector<44x8xf32>, vector<48x44xf32> -> vector<48x44xf32>
    %cst_8 = arith.constant dense<0xFF800000> : vector<48xf32>
    %11 = vector.multi_reduction <maximumf>, %10, %cst_8 [1] : vector<48x44xf32> to vector<48xf32>
    %12 = vector.shape_cast %11 : vector<48xf32> to vector<48x1xf32>
    %13 = vector.broadcast %12 : vector<48x1xf32> to vector<48x44xf32>
    %14 = arith.subf %10, %13 : vector<48x44xf32>
    %15 = math.exp %14 : vector<48x44xf32>
    %cst_9 = arith.constant dense<0.000000e+00> : vector<48xf32>
    %16 = vector.multi_reduction <add>, %15, %cst_9 [1] : vector<48x44xf32> to vector<48xf32>
    %17 = vector.shape_cast %16 : vector<48xf32> to vector<48x1xf32>
    %18 = tpu.reciprocal %17 {approx = true} : vector<48x1xf32> -> vector<48x1xf32>
    %19 = vector.broadcast %18 : vector<48x1xf32> to vector<48x44xf32>
    %20 = arith.mulf %15, %19 : vector<48x44xf32>
    %cst_10 = arith.constant dense<0.000000e+00> : vector<48x8xf32>
    %21 = tpu.matmul %20, %9, %cst_10 {dimension_numbers = #tpu.dot_dimension_numbers<[1], [0], [0], [1], [0, 0, 1, 1], [], []>} : vector<48x44xf32>, vector<44x8xf32>, vector<48x8xf32> -> vector<48x8xf32>
    %22 = vector.extract_strided_slice %6 {offsets = [0, 8], sizes = [48, 8], strides = [1, 1]} : vector<48x96xf32> to vector<48x8xf32>
    %23 = vector.extract_strided_slice %6 {offsets = [0, 40], sizes = [44, 8], strides = [1, 1]} : vector<48x96xf32> to vector<44x8xf32>
    %24 = vector.extract_strided_slice %6 {offsets = [0, 72], sizes = [44, 8], strides = [1, 1]} : vector<48x96xf32> to vector<44x8xf32>
    %cst_11 = arith.constant dense<0.000000e+00> : vector<48x44xf32>
    %25 = tpu.matmul %22, %23, %cst_11 {dimension_numbers = #tpu.dot_dimension_numbers<[1], [1], [0], [0], [0, 0, 1, 0], [], []>} : vector<48x8xf32>, vector<44x8xf32>, vector<48x44xf32> -> vector<48x44xf32>
    %cst_12 = arith.constant dense<0xFF800000> : vector<48xf32>
    %26 = vector.multi_reduction <maximumf>, %25, %cst_12 [1] : vector<48x44xf32> to vector<48xf32>
    %27 = vector.shape_cast %26 : vector<48xf32> to vector<48x1xf32>
    %28 = vector.broadcast %27 : vector<48x1xf32> to vector<48x44xf32>
    %29 = arith.subf %25, %28 : vector<48x44xf32>
    %30 = math.exp %29 : vector<48x44xf32>
    %cst_13 = arith.constant dense<0.000000e+00> : vector<48xf32>
    %31 = vector.multi_reduction <add>, %30, %cst_13 [1] : vector<48x44xf32> to vector<48xf32>
    %32 = vector.shape_cast %31 : vector<48xf32> to vector<48x1xf32>
    %33 = tpu.reciprocal %32 {approx = true} : vector<48x1xf32> -> vector<48x1xf32>
    %34 = vector.broadcast %33 : vector<48x1xf32> to vector<48x44xf32>
    %35 = arith.mulf %30, %34 : vector<48x44xf32>
    %cst_14 = arith.constant dense<0.000000e+00> : vector<48x8xf32>
    %36 = tpu.matmul %35, %24, %cst_14 {dimension_numbers = #tpu.dot_dimension_numbers<[1], [0], [0], [1], [0, 0, 1, 1], [], []>} : vector<48x44xf32>, vector<44x8xf32>, vector<48x8xf32> -> vector<48x8xf32>
    %37 = vector.extract_strided_slice %6 {offsets = [0, 16], sizes = [48, 8], strides = [1, 1]} : vector<48x96xf32> to vector<48x8xf32>
    %38 = vector.extract_strided_slice %6 {offsets = [0, 48], sizes = [44, 8], strides = [1, 1]} : vector<48x96xf32> to vector<44x8xf32>
    %39 = vector.extract_strided_slice %6 {offsets = [0, 80], sizes = [44, 8], strides = [1, 1]} : vector<48x96xf32> to vector<44x8xf32>
    %cst_15 = arith.constant dense<0.000000e+00> : vector<48x44xf32>
    %40 = tpu.matmul %37, %38, %cst_15 {dimension_numbers = #tpu.dot_dimension_numbers<[1], [1], [0], [0], [0, 0, 1, 0], [], []>} : vector<48x8xf32>, vector<44x8xf32>, vector<48x44xf32> -> vector<48x44xf32>
    %cst_16 = arith.constant dense<0xFF800000> : vector<48xf32>
    %41 = vector.multi_reduction <maximumf>, %40, %cst_16 [1] : vector<48x44xf32> to vector<48xf32>
    %42 = vector.shape_cast %41 : vector<48xf32> to vector<48x1xf32>
    %43 = vector.broadcast %42 : vector<48x1xf32> to vector<48x44xf32>
    %44 = arith.subf %40, %43 : vector<48x44xf32>
    %45 = math.exp %44 : vector<48x44xf32>
    %cst_17 = arith.constant dense<0.000000e+00> : vector<48xf32>
    %46 = vector.multi_reduction <add>, %45, %cst_17 [1] : vector<48x44xf32> to vector<48xf32>
    %47 = vector.shape_cast %46 : vector<48xf32> to vector<48x1xf32>
    %48 = tpu.reciprocal %47 {approx = true} : vector<48x1xf32> -> vector<48x1xf32>
    %49 = vector.broadcast %48 : vector<48x1xf32> to vector<48x44xf32>
    %50 = arith.mulf %45, %49 : vector<48x44xf32>
    %cst_18 = arith.constant dense<0.000000e+00> : vector<48x8xf32>
    %51 = tpu.matmul %50, %39, %cst_18 {dimension_numbers = #tpu.dot_dimension_numbers<[1], [0], [0], [1], [0, 0, 1, 1], [], []>} : vector<48x44xf32>, vector<44x8xf32>, vector<48x8xf32> -> vector<48x8xf32>
    %52 = vector.extract_strided_slice %6 {offsets = [0, 24], sizes = [48, 8], strides = [1, 1]} : vector<48x96xf32> to vector<48x8xf32>
    %53 = vector.extract_strided_slice %6 {offsets = [0, 56], sizes = [44, 8], strides = [1, 1]} : vector<48x96xf32> to vector<44x8xf32>
    %54 = vector.extract_strided_slice %6 {offsets = [0, 88], sizes = [44, 8], strides = [1, 1]} : vector<48x96xf32> to vector<44x8xf32>
    %cst_19 = arith.constant dense<0.000000e+00> : vector<48x44xf32>
    %55 = tpu.matmul %52, %53, %cst_19 {dimension_numbers = #tpu.dot_dimension_numbers<[1], [1], [0], [0], [0, 0, 1, 0], [], []>} : vector<48x8xf32>, vector<44x8xf32>, vector<48x44xf32> -> vector<48x44xf32>
    %cst_20 = arith.constant dense<0xFF800000> : vector<48xf32>
    %56 = vector.multi_reduction <maximumf>, %55, %cst_20 [1] : vector<48x44xf32> to vector<48xf32>
    %57 = vector.shape_cast %56 : vector<48xf32> to vector<48x1xf32>
    %58 = vector.broadcast %57 : vector<48x1xf32> to vector<48x44xf32>
    %59 = arith.subf %55, %58 : vector<48x44xf32>
    %60 = math.exp %59 : vector<48x44xf32>
    %cst_21 = arith.constant dense<0.000000e+00> : vector<48xf32>
    %61 = vector.multi_reduction <add>, %60, %cst_21 [1] : vector<48x44xf32> to vector<48xf32>
    %62 = vector.shape_cast %61 : vector<48xf32> to vector<48x1xf32>
    %63 = tpu.reciprocal %62 {approx = true} : vector<48x1xf32> -> vector<48x1xf32>
    %64 = vector.broadcast %63 : vector<48x1xf32> to vector<48x44xf32>
    %65 = arith.mulf %60, %64 : vector<48x44xf32>
    %cst_22 = arith.constant dense<0.000000e+00> : vector<48x8xf32>
    %66 = tpu.matmul %65, %54, %cst_22 {dimension_numbers = #tpu.dot_dimension_numbers<[1], [0], [0], [1], [0, 0, 1, 1], [], []>} : vector<48x44xf32>, vector<44x8xf32>, vector<48x8xf32> -> vector<48x8xf32>
    %67 = tpu.concatenate %21, %36, %51, %66 in 1 : vector<48x8xf32>, vector<48x8xf32>, vector<48x8xf32>, vector<48x8xf32> -> vector<48x32xf32>
    %68 = vector.extract_strided_slice %5 {offsets = [48, 0], sizes = [48, 96], strides = [1, 1]} : vector<96x96xf32> to vector<48x96xf32>
    %69 = vector.extract_strided_slice %68 {offsets = [0, 0], sizes = [48, 8], strides = [1, 1]} : vector<48x96xf32> to vector<48x8xf32>
    %70 = vector.extract_strided_slice %68 {offsets = [0, 32], sizes = [44, 8], strides = [1, 1]} : vector<48x96xf32> to vector<44x8xf32>
    %71 = vector.extract_strided_slice %68 {offsets = [0, 64], sizes = [44, 8], strides = [1, 1]} : vector<48x96xf32> to vector<44x8xf32>
    %cst_23 = arith.constant dense<0.000000e+00> : vector<48x44xf32>
    %72 = tpu.matmul %69, %70, %cst_23 {dimension_numbers = #tpu.dot_dimension_numbers<[1], [1], [0], [0], [0, 0, 1, 0], [], []>} : vector<48x8xf32>, vector<44x8xf32>, vector<48x44xf32> -> vector<48x44xf32>
    %cst_24 = arith.constant dense<0xFF800000> : vector<48xf32>
    %73 = vector.multi_reduction <maximumf>, %72, %cst_24 [1] : vector<48x44xf32> to vector<48xf32>
    %74 = vector.shape_cast %73 : vector<48xf32> to vector<48x1xf32>
    %75 = vector.broadcast %74 : vector<48x1xf32> to vector<48x44xf32>
    %76 = arith.subf %72, %75 : vector<48x44xf32>
    %77 = math.exp %76 : vector<48x44xf32>
    %cst_25 = arith.constant dense<0.000000e+00> : vector<48xf32>
    %78 = vector.multi_reduction <add>, %77, %cst_25 [1] : vector<48x44xf32> to vector<48xf32>
    %79 = vector.shape_cast %78 : vector<48xf32> to vector<48x1xf32>
    %80 = tpu.reciprocal %79 {approx = true} : vector<48x1xf32> -> vector<48x1xf32>
    %81 = vector.broadcast %80 : vector<48x1xf32> to vector<48x44xf32>
    %82 = arith.mulf %77, %81 : vector<48x44xf32>
    %cst_26 = arith.constant dense<0.000000e+00> : vector<48x8xf32>
    %83 = tpu.matmul %82, %71, %cst_26 {dimension_numbers = #tpu.dot_dimension_numbers<[1], [0], [0], [1], [0, 0, 1, 1], [], []>} : vector<48x44xf32>, vector<44x8xf32>, vector<48x8xf32> -> vector<48x8xf32>
    %84 = vector.extract_strided_slice %68 {offsets = [0, 8], sizes = [48, 8], strides = [1, 1]} : vector<48x96xf32> to vector<48x8xf32>
    %85 = vector.extract_strided_slice %68 {offsets = [0, 40], sizes = [44, 8], strides = [1, 1]} : vector<48x96xf32> to vector<44x8xf32>
    %86 = vector.extract_strided_slice %68 {offsets = [0, 72], sizes = [44, 8], strides = [1, 1]} : vector<48x96xf32> to vector<44x8xf32>
    %cst_27 = arith.constant dense<0.000000e+00> : vector<48x44xf32>
    %87 = tpu.matmul %84, %85, %cst_27 {dimension_numbers = #tpu.dot_dimension_numbers<[1], [1], [0], [0], [0, 0, 1, 0], [], []>} : vector<48x8xf32>, vector<44x8xf32>, vector<48x44xf32> -> vector<48x44xf32>
    %cst_28 = arith.constant dense<0xFF800000> : vector<48xf32>
    %88 = vector.multi_reduction <maximumf>, %87, %cst_28 [1] : vector<48x44xf32> to vector<48xf32>
    %89 = vector.shape_cast %88 : vector<48xf32> to vector<48x1xf32>
    %90 = vector.broadcast %89 : vector<48x1xf32> to vector<48x44xf32>
    %91 = arith.subf %87, %90 : vector<48x44xf32>
    %92 = math.exp %91 : vector<48x44xf32>
    %cst_29 = arith.constant dense<0.000000e+00> : vector<48xf32>
    %93 = vector.multi_reduction <add>, %92, %cst_29 [1] : vector<48x44xf32> to vector<48xf32>
    %94 = vector.shape_cast %93 : vector<48xf32> to vector<48x1xf32>
    %95 = tpu.reciprocal %94 {approx = true} : vector<48x1xf32> -> vector<48x1xf32>
    %96 = vector.broadcast %95 : vector<48x1xf32> to vector<48x44xf32>
    %97 = arith.mulf %92, %96 : vector<48x44xf32>
    %cst_30 = arith.constant dense<0.000000e+00> : vector<48x8xf32>
    %98 = tpu.matmul %97, %86, %cst_30 {dimension_numbers = #tpu.dot_dimension_numbers<[1], [0], [0], [1], [0, 0, 1, 1], [], []>} : vector<48x44xf32>, vector<44x8xf32>, vector<48x8xf32> -> vector<48x8xf32>
    %99 = vector.extract_strided_slice %68 {offsets = [0, 16], sizes = [48, 8], strides = [1, 1]} : vector<48x96xf32> to vector<48x8xf32>
    %100 = vector.extract_strided_slice %68 {offsets = [0, 48], sizes = [44, 8], strides = [1, 1]} : vector<48x96xf32> to vector<44x8xf32>
    %101 = vector.extract_strided_slice %68 {offsets = [0, 80], sizes = [44, 8], strides = [1, 1]} : vector<48x96xf32> to vector<44x8xf32>
    %cst_31 = arith.constant dense<0.000000e+00> : vector<48x44xf32>
    %102 = tpu.matmul %99, %100, %cst_31 {dimension_numbers = #tpu.dot_dimension_numbers<[1], [1], [0], [0], [0, 0, 1, 0], [], []>} : vector<48x8xf32>, vector<44x8xf32>, vector<48x44xf32> -> vector<48x44xf32>
    %cst_32 = arith.constant dense<0xFF800000> : vector<48xf32>
    %103 = vector.multi_reduction <maximumf>, %102, %cst_32 [1] : vector<48x44xf32> to vector<48xf32>
    %104 = vector.shape_cast %103 : vector<48xf32> to vector<48x1xf32>
    %105 = vector.broadcast %104 : vector<48x1xf32> to vector<48x44xf32>
    %106 = arith.subf %102, %105 : vector<48x44xf32>
    %107 = math.exp %106 : vector<48x44xf32>
    %cst_33 = arith.constant dense<0.000000e+00> : vector<48xf32>
    %108 = vector.multi_reduction <add>, %107, %cst_33 [1] : vector<48x44xf32> to vector<48xf32>
    %109 = vector.shape_cast %108 : vector<48xf32> to vector<48x1xf32>
    %110 = tpu.reciprocal %109 {approx = true} : vector<48x1xf32> -> vector<48x1xf32>
    %111 = vector.broadcast %110 : vector<48x1xf32> to vector<48x44xf32>
    %112 = arith.mulf %107, %111 : vector<48x44xf32>
    %cst_34 = arith.constant dense<0.000000e+00> : vector<48x8xf32>
    %113 = tpu.matmul %112, %101, %cst_34 {dimension_numbers = #tpu.dot_dimension_numbers<[1], [0], [0], [1], [0, 0, 1, 1], [], []>} : vector<48x44xf32>, vector<44x8xf32>, vector<48x8xf32> -> vector<48x8xf32>
    %114 = vector.extract_strided_slice %68 {offsets = [0, 24], sizes = [48, 8], strides = [1, 1]} : vector<48x96xf32> to vector<48x8xf32>
    %115 = vector.extract_strided_slice %68 {offsets = [0, 56], sizes = [44, 8], strides = [1, 1]} : vector<48x96xf32> to vector<44x8xf32>
    %116 = vector.extract_strided_slice %68 {offsets = [0, 88], sizes = [44, 8], strides = [1, 1]} : vector<48x96xf32> to vector<44x8xf32>
    %cst_35 = arith.constant dense<0.000000e+00> : vector<48x44xf32>
    %117 = tpu.matmul %114, %115, %cst_35 {dimension_numbers = #tpu.dot_dimension_numbers<[1], [1], [0], [0], [0, 0, 1, 0], [], []>} : vector<48x8xf32>, vector<44x8xf32>, vector<48x44xf32> -> vector<48x44xf32>
    %cst_36 = arith.constant dense<0xFF800000> : vector<48xf32>
    %118 = vector.multi_reduction <maximumf>, %117, %cst_36 [1] : vector<48x44xf32> to vector<48xf32>
    %119 = vector.shape_cast %118 : vector<48xf32> to vector<48x1xf32>
    %120 = vector.broadcast %119 : vector<48x1xf32> to vector<48x44xf32>
    %121 = arith.subf %117, %120 : vector<48x44xf32>
    %122 = math.exp %121 : vector<48x44xf32>
    %cst_37 = arith.constant dense<0.000000e+00> : vector<48xf32>
    %123 = vector.multi_reduction <add>, %122, %cst_37 [1] : vector<48x44xf32> to vector<48xf32>
    %124 = vector.shape_cast %123 : vector<48xf32> to vector<48x1xf32>
    %125 = tpu.reciprocal %124 {approx = true} : vector<48x1xf32> -> vector<48x1xf32>
    %126 = vector.broadcast %125 : vector<48x1xf32> to vector<48x44xf32>
    %127 = arith.mulf %122, %126 : vector<48x44xf32>
    %cst_38 = arith.constant dense<0.000000e+00> : vector<48x8xf32>
    %128 = tpu.matmul %127, %116, %cst_38 {dimension_numbers = #tpu.dot_dimension_numbers<[1], [0], [0], [1], [0, 0, 1, 1], [], []>} : vector<48x44xf32>, vector<44x8xf32>, vector<48x8xf32> -> vector<48x8xf32>
    %129 = tpu.concatenate %83, %98, %113, %128 in 1 : vector<48x8xf32>, vector<48x8xf32>, vector<48x8xf32>, vector<48x8xf32> -> vector<48x32xf32>
    %130 = tpu.concatenate %67, %129 in 0 : vector<48x32xf32>, vector<48x32xf32> -> vector<96x32xf32>
    %cst_39 = arith.constant dense<0.000000e+00> : vector<96x32xf32>
    %131 = tpu.matmul %130, %4, %cst_39 {dimension_numbers = #tpu.dot_dimension_numbers<[1], [0], [0], [1], [0, 0, 1, 1], [], []>} : vector<96x32xf32>, vector<32x32xf32>, vector<96x32xf32> -> vector<96x32xf32>
    %132 = arith.addf %0, %131 : vector<96x32xf32>
    %c1 = arith.constant 1 : index
    %c0_40 = arith.constant 0 : index
    %c0_41 = arith.constant 0 : index
    %133 = vector.load %arg1[%c1, %c0_40, %c0_41] : memref<2x32x96xf32, #tpu.memory_space<vmem>>, vector<1x32x96xf32>
    %134 = vector.shape_cast %133 : vector<1x32x96xf32> to vector<32x96xf32>
    %c1_42 = arith.constant 1 : index
    %c0_43 = arith.constant 0 : index
    %c0_44 = arith.constant 0 : index
    %135 = vector.load %arg2[%c1_42, %c0_43, %c0_44] : memref<2x32x32xf32, #tpu.memory_space<vmem>>, vector<1x32x32xf32>
    %136 = vector.shape_cast %135 : vector<1x32x32xf32> to vector<32x32xf32>
    %cst_45 = arith.constant dense<0.000000e+00> : vector<96x96xf32>
    %137 = tpu.matmul %132, %134, %cst_45 {dimension_numbers = #tpu.dot_dimension_numbers<[1], [0], [0], [1], [0, 0, 1, 1], [], []>} : vector<96x32xf32>, vector<32x96xf32>, vector<96x96xf32> -> vector<96x96xf32>
    %138 = vector.extract_strided_slice %137 {offsets = [0, 0], sizes = [48, 96], strides = [1, 1]} : vector<96x96xf32> to vector<48x96xf32>
    %139 = vector.extract_strided_slice %138 {offsets = [0, 0], sizes = [48, 8], strides = [1, 1]} : vector<48x96xf32> to vector<48x8xf32>
    %140 = vector.extract_strided_slice %138 {offsets = [0, 32], sizes = [44, 8], strides = [1, 1]} : vector<48x96xf32> to vector<44x8xf32>
    %141 = vector.extract_strided_slice %138 {offsets = [0, 64], sizes = [44, 8], strides = [1, 1]} : vector<48x96xf32> to vector<44x8xf32>
    %cst_46 = arith.constant dense<0.000000e+00> : vector<48x44xf32>
    %142 = tpu.matmul %139, %140, %cst_46 {dimension_numbers = #tpu.dot_dimension_numbers<[1], [1], [0], [0], [0, 0, 1, 0], [], []>} : vector<48x8xf32>, vector<44x8xf32>, vector<48x44xf32> -> vector<48x44xf32>
    %cst_47 = arith.constant dense<0xFF800000> : vector<48xf32>
    %143 = vector.multi_reduction <maximumf>, %142, %cst_47 [1] : vector<48x44xf32> to vector<48xf32>
    %144 = vector.shape_cast %143 : vector<48xf32> to vector<48x1xf32>
    %145 = vector.broadcast %144 : vector<48x1xf32> to vector<48x44xf32>
    %146 = arith.subf %142, %145 : vector<48x44xf32>
    %147 = math.exp %146 : vector<48x44xf32>
    %cst_48 = arith.constant dense<0.000000e+00> : vector<48xf32>
    %148 = vector.multi_reduction <add>, %147, %cst_48 [1] : vector<48x44xf32> to vector<48xf32>
    %149 = vector.shape_cast %148 : vector<48xf32> to vector<48x1xf32>
    %150 = tpu.reciprocal %149 {approx = true} : vector<48x1xf32> -> vector<48x1xf32>
    %151 = vector.broadcast %150 : vector<48x1xf32> to vector<48x44xf32>
    %152 = arith.mulf %147, %151 : vector<48x44xf32>
    %cst_49 = arith.constant dense<0.000000e+00> : vector<48x8xf32>
    %153 = tpu.matmul %152, %141, %cst_49 {dimension_numbers = #tpu.dot_dimension_numbers<[1], [0], [0], [1], [0, 0, 1, 1], [], []>} : vector<48x44xf32>, vector<44x8xf32>, vector<48x8xf32> -> vector<48x8xf32>
    %154 = vector.extract_strided_slice %138 {offsets = [0, 8], sizes = [48, 8], strides = [1, 1]} : vector<48x96xf32> to vector<48x8xf32>
    %155 = vector.extract_strided_slice %138 {offsets = [0, 40], sizes = [44, 8], strides = [1, 1]} : vector<48x96xf32> to vector<44x8xf32>
    %156 = vector.extract_strided_slice %138 {offsets = [0, 72], sizes = [44, 8], strides = [1, 1]} : vector<48x96xf32> to vector<44x8xf32>
    %cst_50 = arith.constant dense<0.000000e+00> : vector<48x44xf32>
    %157 = tpu.matmul %154, %155, %cst_50 {dimension_numbers = #tpu.dot_dimension_numbers<[1], [1], [0], [0], [0, 0, 1, 0], [], []>} : vector<48x8xf32>, vector<44x8xf32>, vector<48x44xf32> -> vector<48x44xf32>
    %cst_51 = arith.constant dense<0xFF800000> : vector<48xf32>
    %158 = vector.multi_reduction <maximumf>, %157, %cst_51 [1] : vector<48x44xf32> to vector<48xf32>
    %159 = vector.shape_cast %158 : vector<48xf32> to vector<48x1xf32>
    %160 = vector.broadcast %159 : vector<48x1xf32> to vector<48x44xf32>
    %161 = arith.subf %157, %160 : vector<48x44xf32>
    %162 = math.exp %161 : vector<48x44xf32>
    %cst_52 = arith.constant dense<0.000000e+00> : vector<48xf32>
    %163 = vector.multi_reduction <add>, %162, %cst_52 [1] : vector<48x44xf32> to vector<48xf32>
    %164 = vector.shape_cast %163 : vector<48xf32> to vector<48x1xf32>
    %165 = tpu.reciprocal %164 {approx = true} : vector<48x1xf32> -> vector<48x1xf32>
    %166 = vector.broadcast %165 : vector<48x1xf32> to vector<48x44xf32>
    %167 = arith.mulf %162, %166 : vector<48x44xf32>
    %cst_53 = arith.constant dense<0.000000e+00> : vector<48x8xf32>
    %168 = tpu.matmul %167, %156, %cst_53 {dimension_numbers = #tpu.dot_dimension_numbers<[1], [0], [0], [1], [0, 0, 1, 1], [], []>} : vector<48x44xf32>, vector<44x8xf32>, vector<48x8xf32> -> vector<48x8xf32>
    %169 = vector.extract_strided_slice %138 {offsets = [0, 16], sizes = [48, 8], strides = [1, 1]} : vector<48x96xf32> to vector<48x8xf32>
    %170 = vector.extract_strided_slice %138 {offsets = [0, 48], sizes = [44, 8], strides = [1, 1]} : vector<48x96xf32> to vector<44x8xf32>
    %171 = vector.extract_strided_slice %138 {offsets = [0, 80], sizes = [44, 8], strides = [1, 1]} : vector<48x96xf32> to vector<44x8xf32>
    %cst_54 = arith.constant dense<0.000000e+00> : vector<48x44xf32>
    %172 = tpu.matmul %169, %170, %cst_54 {dimension_numbers = #tpu.dot_dimension_numbers<[1], [1], [0], [0], [0, 0, 1, 0], [], []>} : vector<48x8xf32>, vector<44x8xf32>, vector<48x44xf32> -> vector<48x44xf32>
    %cst_55 = arith.constant dense<0xFF800000> : vector<48xf32>
    %173 = vector.multi_reduction <maximumf>, %172, %cst_55 [1] : vector<48x44xf32> to vector<48xf32>
    %174 = vector.shape_cast %173 : vector<48xf32> to vector<48x1xf32>
    %175 = vector.broadcast %174 : vector<48x1xf32> to vector<48x44xf32>
    %176 = arith.subf %172, %175 : vector<48x44xf32>
    %177 = math.exp %176 : vector<48x44xf32>
    %cst_56 = arith.constant dense<0.000000e+00> : vector<48xf32>
    %178 = vector.multi_reduction <add>, %177, %cst_56 [1] : vector<48x44xf32> to vector<48xf32>
    %179 = vector.shape_cast %178 : vector<48xf32> to vector<48x1xf32>
    %180 = tpu.reciprocal %179 {approx = true} : vector<48x1xf32> -> vector<48x1xf32>
    %181 = vector.broadcast %180 : vector<48x1xf32> to vector<48x44xf32>
    %182 = arith.mulf %177, %181 : vector<48x44xf32>
    %cst_57 = arith.constant dense<0.000000e+00> : vector<48x8xf32>
    %183 = tpu.matmul %182, %171, %cst_57 {dimension_numbers = #tpu.dot_dimension_numbers<[1], [0], [0], [1], [0, 0, 1, 1], [], []>} : vector<48x44xf32>, vector<44x8xf32>, vector<48x8xf32> -> vector<48x8xf32>
    %184 = vector.extract_strided_slice %138 {offsets = [0, 24], sizes = [48, 8], strides = [1, 1]} : vector<48x96xf32> to vector<48x8xf32>
    %185 = vector.extract_strided_slice %138 {offsets = [0, 56], sizes = [44, 8], strides = [1, 1]} : vector<48x96xf32> to vector<44x8xf32>
    %186 = vector.extract_strided_slice %138 {offsets = [0, 88], sizes = [44, 8], strides = [1, 1]} : vector<48x96xf32> to vector<44x8xf32>
    %cst_58 = arith.constant dense<0.000000e+00> : vector<48x44xf32>
    %187 = tpu.matmul %184, %185, %cst_58 {dimension_numbers = #tpu.dot_dimension_numbers<[1], [1], [0], [0], [0, 0, 1, 0], [], []>} : vector<48x8xf32>, vector<44x8xf32>, vector<48x44xf32> -> vector<48x44xf32>
    %cst_59 = arith.constant dense<0xFF800000> : vector<48xf32>
    %188 = vector.multi_reduction <maximumf>, %187, %cst_59 [1] : vector<48x44xf32> to vector<48xf32>
    %189 = vector.shape_cast %188 : vector<48xf32> to vector<48x1xf32>
    %190 = vector.broadcast %189 : vector<48x1xf32> to vector<48x44xf32>
    %191 = arith.subf %187, %190 : vector<48x44xf32>
    %192 = math.exp %191 : vector<48x44xf32>
    %cst_60 = arith.constant dense<0.000000e+00> : vector<48xf32>
    %193 = vector.multi_reduction <add>, %192, %cst_60 [1] : vector<48x44xf32> to vector<48xf32>
    %194 = vector.shape_cast %193 : vector<48xf32> to vector<48x1xf32>
    %195 = tpu.reciprocal %194 {approx = true} : vector<48x1xf32> -> vector<48x1xf32>
    %196 = vector.broadcast %195 : vector<48x1xf32> to vector<48x44xf32>
    %197 = arith.mulf %192, %196 : vector<48x44xf32>
    %cst_61 = arith.constant dense<0.000000e+00> : vector<48x8xf32>
    %198 = tpu.matmul %197, %186, %cst_61 {dimension_numbers = #tpu.dot_dimension_numbers<[1], [0], [0], [1], [0, 0, 1, 1], [], []>} : vector<48x44xf32>, vector<44x8xf32>, vector<48x8xf32> -> vector<48x8xf32>
    %199 = tpu.concatenate %153, %168, %183, %198 in 1 : vector<48x8xf32>, vector<48x8xf32>, vector<48x8xf32>, vector<48x8xf32> -> vector<48x32xf32>
    %200 = vector.extract_strided_slice %137 {offsets = [48, 0], sizes = [48, 96], strides = [1, 1]} : vector<96x96xf32> to vector<48x96xf32>
    %201 = vector.extract_strided_slice %200 {offsets = [0, 0], sizes = [48, 8], strides = [1, 1]} : vector<48x96xf32> to vector<48x8xf32>
    %202 = vector.extract_strided_slice %200 {offsets = [0, 32], sizes = [44, 8], strides = [1, 1]} : vector<48x96xf32> to vector<44x8xf32>
    %203 = vector.extract_strided_slice %200 {offsets = [0, 64], sizes = [44, 8], strides = [1, 1]} : vector<48x96xf32> to vector<44x8xf32>
    %cst_62 = arith.constant dense<0.000000e+00> : vector<48x44xf32>
    %204 = tpu.matmul %201, %202, %cst_62 {dimension_numbers = #tpu.dot_dimension_numbers<[1], [1], [0], [0], [0, 0, 1, 0], [], []>} : vector<48x8xf32>, vector<44x8xf32>, vector<48x44xf32> -> vector<48x44xf32>
    %cst_63 = arith.constant dense<0xFF800000> : vector<48xf32>
    %205 = vector.multi_reduction <maximumf>, %204, %cst_63 [1] : vector<48x44xf32> to vector<48xf32>
    %206 = vector.shape_cast %205 : vector<48xf32> to vector<48x1xf32>
    %207 = vector.broadcast %206 : vector<48x1xf32> to vector<48x44xf32>
    %208 = arith.subf %204, %207 : vector<48x44xf32>
    %209 = math.exp %208 : vector<48x44xf32>
    %cst_64 = arith.constant dense<0.000000e+00> : vector<48xf32>
    %210 = vector.multi_reduction <add>, %209, %cst_64 [1] : vector<48x44xf32> to vector<48xf32>
    %211 = vector.shape_cast %210 : vector<48xf32> to vector<48x1xf32>
    %212 = tpu.reciprocal %211 {approx = true} : vector<48x1xf32> -> vector<48x1xf32>
    %213 = vector.broadcast %212 : vector<48x1xf32> to vector<48x44xf32>
    %214 = arith.mulf %209, %213 : vector<48x44xf32>
    %cst_65 = arith.constant dense<0.000000e+00> : vector<48x8xf32>
    %215 = tpu.matmul %214, %203, %cst_65 {dimension_numbers = #tpu.dot_dimension_numbers<[1], [0], [0], [1], [0, 0, 1, 1], [], []>} : vector<48x44xf32>, vector<44x8xf32>, vector<48x8xf32> -> vector<48x8xf32>
    %216 = vector.extract_strided_slice %200 {offsets = [0, 8], sizes = [48, 8], strides = [1, 1]} : vector<48x96xf32> to vector<48x8xf32>
    %217 = vector.extract_strided_slice %200 {offsets = [0, 40], sizes = [44, 8], strides = [1, 1]} : vector<48x96xf32> to vector<44x8xf32>
    %218 = vector.extract_strided_slice %200 {offsets = [0, 72], sizes = [44, 8], strides = [1, 1]} : vector<48x96xf32> to vector<44x8xf32>
    %cst_66 = arith.constant dense<0.000000e+00> : vector<48x44xf32>
    %219 = tpu.matmul %216, %217, %cst_66 {dimension_numbers = #tpu.dot_dimension_numbers<[1], [1], [0], [0], [0, 0, 1, 0], [], []>} : vector<48x8xf32>, vector<44x8xf32>, vector<48x44xf32> -> vector<48x44xf32>
    %cst_67 = arith.constant dense<0xFF800000> : vector<48xf32>
    %220 = vector.multi_reduction <maximumf>, %219, %cst_67 [1] : vector<48x44xf32> to vector<48xf32>
    %221 = vector.shape_cast %220 : vector<48xf32> to vector<48x1xf32>
    %222 = vector.broadcast %221 : vector<48x1xf32> to vector<48x44xf32>
    %223 = arith.subf %219, %222 : vector<48x44xf32>
    %224 = math.exp %223 : vector<48x44xf32>
    %cst_68 = arith.constant dense<0.000000e+00> : vector<48xf32>
    %225 = vector.multi_reduction <add>, %224, %cst_68 [1] : vector<48x44xf32> to vector<48xf32>
    %226 = vector.shape_cast %225 : vector<48xf32> to vector<48x1xf32>
    %227 = tpu.reciprocal %226 {approx = true} : vector<48x1xf32> -> vector<48x1xf32>
    %228 = vector.broadcast %227 : vector<48x1xf32> to vector<48x44xf32>
    %229 = arith.mulf %224, %228 : vector<48x44xf32>
    %cst_69 = arith.constant dense<0.000000e+00> : vector<48x8xf32>
    %230 = tpu.matmul %229, %218, %cst_69 {dimension_numbers = #tpu.dot_dimension_numbers<[1], [0], [0], [1], [0, 0, 1, 1], [], []>} : vector<48x44xf32>, vector<44x8xf32>, vector<48x8xf32> -> vector<48x8xf32>
    %231 = vector.extract_strided_slice %200 {offsets = [0, 16], sizes = [48, 8], strides = [1, 1]} : vector<48x96xf32> to vector<48x8xf32>
    %232 = vector.extract_strided_slice %200 {offsets = [0, 48], sizes = [44, 8], strides = [1, 1]} : vector<48x96xf32> to vector<44x8xf32>
    %233 = vector.extract_strided_slice %200 {offsets = [0, 80], sizes = [44, 8], strides = [1, 1]} : vector<48x96xf32> to vector<44x8xf32>
    %cst_70 = arith.constant dense<0.000000e+00> : vector<48x44xf32>
    %234 = tpu.matmul %231, %232, %cst_70 {dimension_numbers = #tpu.dot_dimension_numbers<[1], [1], [0], [0], [0, 0, 1, 0], [], []>} : vector<48x8xf32>, vector<44x8xf32>, vector<48x44xf32> -> vector<48x44xf32>
    %cst_71 = arith.constant dense<0xFF800000> : vector<48xf32>
    %235 = vector.multi_reduction <maximumf>, %234, %cst_71 [1] : vector<48x44xf32> to vector<48xf32>
    %236 = vector.shape_cast %235 : vector<48xf32> to vector<48x1xf32>
    %237 = vector.broadcast %236 : vector<48x1xf32> to vector<48x44xf32>
    %238 = arith.subf %234, %237 : vector<48x44xf32>
    %239 = math.exp %238 : vector<48x44xf32>
    %cst_72 = arith.constant dense<0.000000e+00> : vector<48xf32>
    %240 = vector.multi_reduction <add>, %239, %cst_72 [1] : vector<48x44xf32> to vector<48xf32>
    %241 = vector.shape_cast %240 : vector<48xf32> to vector<48x1xf32>
    %242 = tpu.reciprocal %241 {approx = true} : vector<48x1xf32> -> vector<48x1xf32>
    %243 = vector.broadcast %242 : vector<48x1xf32> to vector<48x44xf32>
    %244 = arith.mulf %239, %243 : vector<48x44xf32>
    %cst_73 = arith.constant dense<0.000000e+00> : vector<48x8xf32>
    %245 = tpu.matmul %244, %233, %cst_73 {dimension_numbers = #tpu.dot_dimension_numbers<[1], [0], [0], [1], [0, 0, 1, 1], [], []>} : vector<48x44xf32>, vector<44x8xf32>, vector<48x8xf32> -> vector<48x8xf32>
    %246 = vector.extract_strided_slice %200 {offsets = [0, 24], sizes = [48, 8], strides = [1, 1]} : vector<48x96xf32> to vector<48x8xf32>
    %247 = vector.extract_strided_slice %200 {offsets = [0, 56], sizes = [44, 8], strides = [1, 1]} : vector<48x96xf32> to vector<44x8xf32>
    %248 = vector.extract_strided_slice %200 {offsets = [0, 88], sizes = [44, 8], strides = [1, 1]} : vector<48x96xf32> to vector<44x8xf32>
    %cst_74 = arith.constant dense<0.000000e+00> : vector<48x44xf32>
    %249 = tpu.matmul %246, %247, %cst_74 {dimension_numbers = #tpu.dot_dimension_numbers<[1], [1], [0], [0], [0, 0, 1, 0], [], []>} : vector<48x8xf32>, vector<44x8xf32>, vector<48x44xf32> -> vector<48x44xf32>
    %cst_75 = arith.constant dense<0xFF800000> : vector<48xf32>
    %250 = vector.multi_reduction <maximumf>, %249, %cst_75 [1] : vector<48x44xf32> to vector<48xf32>
    %251 = vector.shape_cast %250 : vector<48xf32> to vector<48x1xf32>
    %252 = vector.broadcast %251 : vector<48x1xf32> to vector<48x44xf32>
    %253 = arith.subf %249, %252 : vector<48x44xf32>
    %254 = math.exp %253 : vector<48x44xf32>
    %cst_76 = arith.constant dense<0.000000e+00> : vector<48xf32>
    %255 = vector.multi_reduction <add>, %254, %cst_76 [1] : vector<48x44xf32> to vector<48xf32>
    %256 = vector.shape_cast %255 : vector<48xf32> to vector<48x1xf32>
    %257 = tpu.reciprocal %256 {approx = true} : vector<48x1xf32> -> vector<48x1xf32>
    %258 = vector.broadcast %257 : vector<48x1xf32> to vector<48x44xf32>
    %259 = arith.mulf %254, %258 : vector<48x44xf32>
    %cst_77 = arith.constant dense<0.000000e+00> : vector<48x8xf32>
    %260 = tpu.matmul %259, %248, %cst_77 {dimension_numbers = #tpu.dot_dimension_numbers<[1], [0], [0], [1], [0, 0, 1, 1], [], []>} : vector<48x44xf32>, vector<44x8xf32>, vector<48x8xf32> -> vector<48x8xf32>
    %261 = tpu.concatenate %215, %230, %245, %260 in 1 : vector<48x8xf32>, vector<48x8xf32>, vector<48x8xf32>, vector<48x8xf32> -> vector<48x32xf32>
    %262 = tpu.concatenate %199, %261 in 0 : vector<48x32xf32>, vector<48x32xf32> -> vector<96x32xf32>
    %cst_78 = arith.constant dense<0.000000e+00> : vector<96x32xf32>
    %263 = tpu.matmul %262, %136, %cst_78 {dimension_numbers = #tpu.dot_dimension_numbers<[1], [0], [0], [1], [0, 0, 1, 1], [], []>} : vector<96x32xf32>, vector<32x32xf32>, vector<96x32xf32> -> vector<96x32xf32>
    %264 = arith.addf %132, %263 : vector<96x32xf32>
    %c0_79 = arith.constant 0 : index
    %c0_80 = arith.constant 0 : index
    %265 = vector.load %arg3[%c0_79, %c0_80] : memref<96x32xf32, #tpu.memory_space<vmem>>, vector<96x32xf32>
    tpu.vector_store %arg3[%c0_79, %c0_80], %264 {strides = array<i32>} : memref<96x32xf32, #tpu.memory_space<vmem>>, vector<96x32xf32>,
    %266 = vector.extract_strided_slice %264 {offsets = [8, 0], sizes = [36, 32], strides = [1, 1]} : vector<96x32xf32> to vector<36x32xf32>
    %cst_81 = arith.constant dense<0.000000e+00> : vector<36xf32>
    %267 = vector.multi_reduction <add>, %266, %cst_81 [1] : vector<36x32xf32> to vector<36xf32>
    %268 = vector.extract_strided_slice %264 {offsets = [56, 0], sizes = [36, 32], strides = [1, 1]} : vector<96x32xf32> to vector<36x32xf32>
    %cst_82 = arith.constant dense<0.000000e+00> : vector<36xf32>
    %269 = vector.multi_reduction <add>, %268, %cst_82 [1] : vector<36x32xf32> to vector<36xf32>
    %270 = vector.shape_cast %267 : vector<36xf32> to vector<1x36xf32>
    %271 = vector.shape_cast %269 : vector<36xf32> to vector<1x36xf32>
    %272 = tpu.concatenate %270, %271 in 0 : vector<1x36xf32>, vector<1x36xf32> -> vector<2x36xf32>
    %c0_83 = arith.constant 0 : index
    %c0_84 = arith.constant 0 : index
    %273 = vector.load %arg4[%c0_83, %c0_84] : memref<2x36xf32, #tpu.memory_space<vmem>>, vector<2x36xf32>
    tpu.vector_store %arg4[%c0_83, %c0_84], %272 {strides = array<i32>} : memref<2x36xf32, #tpu.memory_space<vmem>>, vector<2x36xf32>,
    return
  }
}

</mosaic_0001>

<bundles_post_ra>
// kernel: tpu_custom_call.1
= control target key start
LH: loop header
LB: loop body
LE: loop exit
PB: predicated region body
PF: predicated region fallthrough
CT: control target
= control target key end

     0   :  { %vm37_vm0 = vcmask 261120   ;;  %s11784_s0 = inlined_call_operand.vmem [shape: f32[96,32], index: 0, kind: input, shape index: {}]   ;;  %s11785_s1 = inlined_call_operand.vmem [shape: f32[2,32,96], index: 1, kind: input, shape index: {}]   ;;  %s11786_s2 = inlined_call_operand.vmem [shape: f32[2,32,32], index: 2, kind: input, shape index: {}]   ;;  %s11787_s3 = inlined_call_operand.vmem [shape: f32[96,32], index: 3, kind: output, shape index: {0}]   ;;  %s11788_s4 = inlined_call_operand.hbm [shape: f32[2,36], index: 4, kind: output, shape index: {1}]  }
   0x1   :  { %v29_v0 = vld [vmem:[%s11785_s1] sm:$0xff]  ;;  %v30_v1 = vld [vmem:[%s11785_s1 + $0x8] sm:$0xff]  ;;  %v31_v2 = vld [vmem:[%s11785_s1 + $0x10] sm:$0xff] }
   0x2   :  { %v8232_v3 = vpack.c.bf16 %v30_v1, %v29_v0  ;;  %v32_v4 = vld [vmem:[%s11785_s1 + $0x18] sm:$0xff]  ;;  %v17_v5 = vld [vmem:[%s11784_s0] sm:$0xff] }
   0x3   :  { %v8236_v6 = vpack.c.bf16 %v32_v4, %v31_v2  ;;  %7464 = vmatprep.mubr.msk.f32.mxu0 %vm37_vm0, %v17_v5 }
   0x4   :  { %8233 = vmatprep.subr.bf16.mxu0 %v8232_v3 }
   0x5   :  { %10 = vsyncpa [#allocation3], 0  ;;  %8235 = vmatpush3.bf16.msra.mxu0 %v8232_v3  ;;  %v18_v7 = vld [vmem:[%s11784_s0 + $0x8] sm:$0xff]  ;;  %v19_v8 = vld [vmem:[%s11784_s0 + $0x10] sm:$0xff]  ;;  %vm217_vm1 = vcmask 64512   ;;  %s9696_s9 = smov 96  }
   0x6   :  { %8237 = vmatprep.subr.bf16.mxu0 %v8236_v6  ;;  %v20_v9 = vld [vmem:[%s11784_s0 + $0x18] sm:$0xff]  ;;  %v21_v10 = vld [vmem:[%s11784_s0 + $0x20] sm:$0xff]  ;;  %v22_v11 = vld [vmem:[%s11784_s0 + $0x28] sm:$0xff]  ;;  %s9697_s10 = smov 88   ;;  %s9698_s11 = smov 120   ;;  %vm439_vm3 = vcmask 1043456  }
   0x7   :  { %s9699_s12 = smov 64   ;;  %vm9831_vm2 = vmpackc.low %vm217_vm1, %vm217_vm1  ;;  %vm9700_vm4 = vmmov 1   ;;  %vm337_vm6 = vcmask 359424   ;;  %s9701_s13 = smov 56   ;;  %vm1638_vm7 = vcmask 130048   ;;  %vm1645_vm8 = vcmask 195584  }
   0x8   :  { %vm9861_vm5 = vmpackc.low %vm439_vm3, %vm9700_vm4  ;;  %s9702_s26 = smov 80   ;;  %s9703_s27 = smov 112   ;;  %vm6537_vm9 = vcmask 257024   ;;  %vm6572_vm10 = vcmask 130112   ;;  %vm6579_vm11 = vcmask 195712   ;;  %vm6586_vm12 = vcmask 261312  }
   0x9   :  { %8239 = vmatpush3.bf16.msra.mxu0 %v8236_v6  ;;  %s9704_s28 = smov 48   ;;  %s9705_s29 = smov 72   ;;  %vm6593_vm13 = vcmask 326912   ;;  %vm6626_vm14 = vcmask 1040384   ;;  %vm6628_vm15 = vcmask 287744  }
   0xa   :  { %s9706_s30 = smov 104   ;;  %s9707_s5 = smov 40  }
   0xb   :  { %s9708_s6 = smov 8   ;;  %s9709_s7 = smov 16  }
   0xc   :  { %7465 = vmatmul.mubr.msk.f32.vlgmr.msra.gmra.mrb[0].mxu0 %vm37_vm0, %v18_v7  ;;  %s9710_s8 = smov 24  }
   0xd   :  { %7467 = vmatprep.mubr.msk.f32.mxu0 %vm37_vm0, %v19_v8 }
  0x10   :  { %7468 = vmatmul.mubr.msk.f32.gmra.mrb[2].mxu0 %vm37_vm0, %v20_v9 }
  0x11   :  { %7470 = vmatprep.mubr.msk.f32.mxu0 %vm37_vm0, %v21_v10 }
  0x14   :  { %7471 = vmatmul.mubr.msk.f32.gmra.mrb[4].mxu0 %vm37_vm0, %v22_v11 }
  0xdf   :  { %v9773_v12 = vpop.f32.mrb[0].mxu0 }
  0xe0   :  { %v9775_v13 = vpop.f32.mrb[1].mxu0 }
  0xe1   :  { %7494 = vmatprep.mubr.msk.f32.mxu1 %vm217_vm1, %v9775_v13  ;;  %v9781_v14 = vpack.i.bf16 %v9773_v12, %v9775_v13 }
  0xe3   :  { %8797 = vrot.lane.b32.xlu0 %v9781_v14, %s9696_s9  ;;  %v9785_v15 = vpop.f32.mrb[2].mxu0 }
  0xe4   :  { %v9787_v16 = vpop.f32.mrb[3].mxu0 }
  0xe5   :  { %v9791_v17 = vpack.i.bf16 %v9785_v15, %v9787_v16 }
  0xe7   :  { %8802 = vrot.lane.b32.xlu0 %v9791_v17, %s9696_s9  ;;  %v9795_v18 = vpop.f32.mrb[4].mxu0 }
  0xe8   :  { %v9797_v19 = vpop.f32.mrb[5].mxu0 }
  0xe9   :  { %v9801_v20 = vpack.i.bf16 %v9795_v18, %v9797_v19 }
  0xeb   :  { %8817 = vrot.lane.b32.xlu0 %v9791_v17, %s9697_s10  ;;  %8807 = vrot.lane.b32.xlu1 %v9801_v20, %s9696_s9 }
  0xef   :  { %537 = vrot.lane.b32.xlu0 %v9775_v13, %s9698_s11  ;;  %8812 = vrot.lane.b32.xlu1 %v9781_v14, %s9697_s10 }
  0xf3   :  { %541 = vrot.lane.b32.xlu0 %v9787_v16, %s9698_s11  ;;  %8822 = vrot.lane.b32.xlu1 %v9801_v20, %s9697_s10 }
  0xf7   :  { %545 = vrot.lane.b32.xlu0 %v9797_v19, %s9698_s11  ;;  %539 = vrot.lane.b32.xlu1 %v9773_v12, %s9698_s11 }
  0xfb   :  { %8827 = vrot.lane.b32.xlu0 %v9781_v14, %s9699_s12  ;;  %543 = vrot.lane.b32.xlu1 %v9785_v15, %s9698_s11 }
  0xff   :  { %8837 = vrot.lane.b32.xlu0 %v9801_v20, %s9699_s12  ;;  %547 = vrot.lane.b32.xlu1 %v9795_v18, %s9698_s11 }
 0x103   :  { %8832 = vrot.lane.b32.xlu1 %v9791_v17, %s9699_s12 }
 0x155   :  { %v8798_v21 = vpop.permute.xlu0 %8797 }
 0x156   :  { %v8800_v22 = vunpack.i.h.bf16 %v8798_v21  ;;  %v8799_v23 = vunpack.i.l.bf16 %v8798_v21 }
 0x158   :  { %v8240_v25 = vpack.c.bf16 %v8800_v22, %v8799_v23 }
 0x159   :  { %v8803_v26 = vpop.permute.xlu0 %8802 }
 0x15a   :  { %v8805_v27 = vunpack.i.h.bf16 %v8803_v26  ;;  %v8804_v28 = vunpack.i.l.bf16 %v8803_v26  ;;  %8242 = vmatprep.subr.msk.bf16.mxu1 %vm9831_vm2, %v8240_v25 }
 0x15b   :  { %8245 = vmatpush3.bf16.xpose.msk.msra.mxu1 %vm9831_vm2, %v8240_v25 }
 0x15c   :  { %v8246_v29 = vpack.c.bf16 %v8805_v27, %v8804_v28 }
 0x15d   :  { %v8818_v30 = vpop.permute.xlu0 %8817  ;;  %v8808_v31 = vpop.permute.xlu1 %8807 }
 0x15e   :  { %v8810_v32 = vunpack.i.h.bf16 %v8808_v31  ;;  %v8809_v33 = vunpack.i.l.bf16 %v8808_v31  ;;  %8248 = vmatprep.subr.msk.bf16.mxu1 %vm9831_vm2, %v8246_v29  ;;  %v8820_v48 = vunpack.i.h.bf16 %v8818_v30  ;;  %v8819_v49 = vunpack.i.l.bf16 %v8818_v30 }
 0x160   :  { %v8252_v34 = vpack.c.bf16 %v8810_v32, %v8809_v33  ;;  %v8278_v52 = vpack.c.bf16 %v8820_v48, %v8819_v49 }
 0x161   :  { %v538_v35 = vpop.permute.xlu0 %537  ;;  %v8813_v36 = vpop.permute.xlu1 %8812 }
 0x162   :  { %v8815_v39 = vunpack.i.h.bf16 %v8813_v36  ;;  %v8814_v40 = vunpack.i.l.bf16 %v8813_v36 }
 0x163   :  { %8251 = vmatpush3.bf16.xpose.msk.msra.mxu1 %vm9831_vm2, %v8246_v29 }
 0x164   :  { %8254 = vmatprep.subr.msk.bf16.mxu1 %vm9831_vm2, %v8252_v34  ;;  %v8272_v43 = vpack.c.bf16 %v8815_v39, %v8814_v40 }
 0x165   :  { %v542_v37 = vpop.permute.xlu0 %541  ;;  %v8823_v38 = vpop.permute.xlu1 %8822 }
 0x166   :  { %v8825_v59 = vunpack.i.h.bf16 %v8823_v38  ;;  %v8824_v60 = vunpack.i.l.bf16 %v8823_v38 }
 0x168   :  { %v8284_v0 = vpack.c.bf16 %v8825_v59, %v8824_v60 }
 0x169   :  { %v546_v41 = vpop.permute.xlu0 %545  ;;  %v540_v42 = vpop.permute.xlu1 %539 }
 0x16b   :  { %8257 = vmatpush3.bf16.xpose.msk.msra.mxu1 %vm9831_vm2, %v8252_v34 }
 0x16c   :  { %8274 = vmatprep.subr.msk.bf16.mxu1 %vm9831_vm2, %v8272_v43 }
 0x16d   :  { %v8828_v44 = vpop.permute.xlu0 %8827  ;;  %v544_v45 = vpop.permute.xlu1 %543 }
 0x16e   :  { %v8830_v46 = vunpack.i.h.bf16 %v8828_v44  ;;  %v8829_v47 = vunpack.i.l.bf16 %v8828_v44 }
 0x170   :  { %v8258_v50 = vpack.c.bf16 %v8830_v46, %v8829_v47 }
 0x171   :  { %v548_v51 = vpop.permute.xlu1 %547  ;;  %v8838_v53 = vpop.permute.xlu0 %8837 }
 0x172   :  { %7495 = vmatmul.mubr.msk.f32.vlgmr.msra.gmra.mrb[0].mxu1 %vm217_vm1, %v9773_v12  ;;  %8259 = vmatprep.subr.bf16.mxu0 %v8258_v50  ;;  %v8840_v55 = vunpack.i.h.bf16 %v8838_v53  ;;  %v8839_v56 = vunpack.i.l.bf16 %v8838_v53 }
 0x173   :  { %7497 = vmatprep.mubr.msk.f32.mxu1 %vm217_vm1, %v9787_v16  ;;  %8261 = vmatpush3.bf16.msra.mxu0 %v8258_v50 }
 0x174   :  { %8277 = vmatpush3.bf16.xpose.msk.msra.mxu1 %vm9831_vm2, %v8272_v43  ;;  %v8266_v63 = vpack.c.bf16 %v8840_v55, %v8839_v56 }
 0x175   :  { %8280 = vmatprep.subr.msk.bf16.mxu1 %vm9831_vm2, %v8278_v52  ;;  %v8833_v54 = vpop.permute.xlu1 %8832 }
 0x176   :  { %v8835_v57 = vunpack.i.h.bf16 %v8833_v54  ;;  %v8834_v58 = vunpack.i.l.bf16 %v8833_v54  ;;  %7498 = vmatmul.mubr.msk.f32.gmra.mrb[2].mxu1 %vm217_vm1, %v9785_v15 }
 0x177   :  { %7500 = vmatprep.mubr.msk.f32.mxu1 %vm217_vm1, %v9797_v19 }
 0x178   :  { %v8262_v61 = vpack.c.bf16 %v8835_v57, %v8834_v58 }
 0x17a   :  { %7501 = vmatmul.mubr.msk.f32.gmra.mrb[4].mxu1 %vm217_vm1, %v9795_v18  ;;  %8263 = vmatprep.subr.bf16.mxu0 %v8262_v61 }
 0x17b   :  { %8265 = vmatpush3.bf16.msra.mxu0 %v8262_v61  ;;  %7536 = vmatprep.mubr.msk.f32.mxu1 %vm217_vm1, %v538_v35 }
 0x17c   :  { %8283 = vmatpush3.bf16.xpose.msk.msra.mxu1 %vm9831_vm2, %v8278_v52  ;;  %8268 = vmatprep.subr.msk.bf16.mxu0 %vm9861_vm5, %v8266_v63 }
 0x17d   :  { %8286 = vmatprep.subr.msk.bf16.mxu1 %vm9831_vm2, %v8284_v0 }
 0x17f   :  { %8271 = vmatpush3.bf16.msk.msra.mxu0 %vm9861_vm5, %v8266_v63 }
 0x184   :  { %8289 = vmatpush3.bf16.xpose.msk.msra.mxu1 %vm9831_vm2, %v8284_v0 }
 0x18b   :  { %7537 = vmatmul.mubr.msk.f32.vlgmr.msra.gmra.mrb[6].mxu1 %vm217_vm1, %v540_v42 }
 0x18c   :  { %7539 = vmatprep.mubr.msk.f32.mxu1 %vm217_vm1, %v542_v37 }
 0x18f   :  { %7540 = vmatmul.mubr.msk.f32.gmra.mrb[8].mxu1 %vm217_vm1, %v544_v45 }
 0x190   :  { %7542 = vmatprep.mubr.msk.f32.mxu1 %vm217_vm1, %v546_v41 }
 0x193   :  { %7543 = vmatmul.mubr.msk.f32.gmra.mrb[10].mxu1 %vm217_vm1, %v548_v51 }
 0x245   :  { %v7496_v1 = vpop.f32.mrb[0].mxu1 }
 0x246   :  { %v308_v2 = vpop.f32.mrb[1].mxu1  ;;  %v341_v3 = vsel %vm337_vm6, %v7496_v1, -inf }
 0x247   :  { %342 = vmax.xlane.f32.xlu1 %v341_v3  ;;  %v338_v4 = vsel %vm337_vm6, %v308_v2, -inf }
 0x248   :  { %339 = vmax.xlane.f32.xlu0 %v338_v4 }
 0x249   :  { %v7499_v5 = vpop.f32.mrb[2].mxu1 }
 0x24a   :  { %v318_v6 = vpop.f32.mrb[3].mxu1  ;;  %v347_v7 = vsel %vm337_vm6, %v7499_v5, -inf }
 0x24b   :  { %v344_v10 = vsel %vm337_vm6, %v318_v6, -inf }
 0x24c   :  { %348 = vmax.xlane.f32.xlu0 %v347_v7 }
 0x24d   :  { %v7502_v8 = vpop.f32.mrb[4].mxu1 }
 0x24e   :  { %v328_v9 = vpop.f32.mrb[5].mxu1  ;;  %v353_v21 = vsel %vm337_vm6, %v7502_v8, -inf }
 0x24f   :  { %v350_v11 = vsel %vm337_vm6, %v328_v9, -inf }
 0x250   :  { %345 = vmax.xlane.f32.xlu0 %v344_v10  ;;  %351 = vmax.xlane.f32.xlu1 %v350_v11  ;;  %v24_v11 = vld [vmem:[%s11784_s0 + $0x38] sm:$0xff] }
 0x254   :  { %354 = vmax.xlane.f32.xlu0 %v353_v21  ;;  %v25_v21 = vld [vmem:[%s11784_s0 + $0x40] sm:$0xff] }
 0x25e   :  { %v9889_v22 = vpop.f32.mrb[6].mxu1 }
 0x25f   :  { %v9891_v23 = vpop.f32.mrb[7].mxu1  ;;  %v683_v25 = vsel %vm337_vm6, %v9889_v22, -inf }
 0x260   :  { %684 = vmax.xlane.f32.xlu0 %v683_v25  ;;  %v680_v26 = vsel %vm337_vm6, %v9891_v23, -inf }
 0x261   :  { %681 = vmax.xlane.f32.xlu1 %v680_v26 }
 0x262   :  { %v9897_v27 = vpop.f32.mrb[8].mxu1 }
 0x263   :  { %v9899_v28 = vpop.f32.mrb[9].mxu1  ;;  %v689_v29 = vsel %vm337_vm6, %v9897_v27, -inf }
 0x264   :  { %690 = vmax.xlane.f32.xlu0 %v689_v29  ;;  %v686_v30 = vsel %vm337_vm6, %v9899_v28, -inf }
 0x265   :  { %687 = vmax.xlane.f32.xlu1 %v686_v30 }
 0x266   :  { %v9905_v31 = vpop.f32.mrb[10].mxu1 }
 0x267   :  { %v9907_v32 = vpop.f32.mrb[11].mxu1  ;;  %v695_v33 = vsel %vm337_vm6, %v9905_v31, -inf }
 0x268   :  { %696 = vmax.xlane.f32.xlu0 %v695_v33  ;;  %v692_v34 = vsel %vm337_vm6, %v9907_v32, -inf }
 0x269   :  { %693 = vmax.xlane.f32.xlu1 %v692_v34 }
 0x27a   :  { %8842 = vrot.lane.b32.xlu1 %v9781_v14, %s9701_s13 }
 0x27e   :  { %8847 = vrot.lane.b32.xlu0 %v9791_v17, %s9701_s13 }
 0x282   :  { %8852 = vrot.lane.b32.xlu0 %v9801_v20, %s9701_s13 }
 0x2d4   :  { %v343_v35 = vpop.xlane.xlu1 %342 }
 0x2d5   :  { %v357_v36 = vsub.f32 %v7496_v1, %v343_v35  ;;  %v340_v37 = vpop.xlane.xlu0 %339  ;;  %v27_v35 = vld [vmem:[%s11784_s0 + $0x50] sm:$0xff] }
 0x2d6   :  { %v356_v38 = vsub.f32 %v308_v2, %v340_v37  ;;  %v28_v37 = vld [vmem:[%s11784_s0 + $0x58] sm:$0xff] }
 0x2d7   :  { %v364_v39 = vmul.f32 1.442695, %v357_v36 }
 0x2d8   :  { %v362_v40 = vmul.f32 1.442695, %v356_v38 }
 0x2d9   :  { %9276 = vpow2.f32 %v364_v39  ;;  %v349_v41 = vpop.xlane.xlu0 %348 }
 0x2da   :  { %9278 = vpow2.f32 %v362_v40  ;;  %v359_v42 = vsub.f32 %v7499_v5, %v349_v41 }
 0x2dc   :  { %v368_v43 = vmul.f32 1.442695, %v359_v42 }
 0x2dd   :  { %v346_v44 = vpop.xlane.xlu0 %345  ;;  %v352_v45 = vpop.xlane.xlu1 %351 }
 0x2de   :  { %9280 = vpow2.f32 %v368_v43  ;;  %v358_v46 = vsub.f32 %v318_v6, %v346_v44  ;;  %v360_v48 = vsub.f32 %v328_v9, %v352_v45  ;;  %v23_v9 = vld [vmem:[%s11784_s0 + $0x30] sm:$0xff] }
 0x2df   :  { %7473 = vmatprep.mubr.msk.f32.mxu0 %vm37_vm0, %v23_v9 }
 0x2e0   :  { %v366_v47 = vmul.f32 1.442695, %v358_v46  ;;  %v370_v53 = vmul.f32 1.442695, %v360_v48  ;;  %7474 = vmatmul.mubr.msk.f32.gmra.mrb[6].mxu0 %vm37_vm0, %v24_v11 }
 0x2e1   :  { %v355_v49 = vpop.xlane.xlu0 %354  ;;  %7476 = vmatprep.mubr.msk.f32.mxu0 %vm37_vm0, %v25_v21 }
 0x2e2   :  { %9282 = vpow2.f32 %v366_v47  ;;  %v361_v50 = vsub.f32 %v7502_v8, %v355_v49 }
 0x2e3   :  { %v9919_v51 = vpop.eup %9276 }
 0x2e4   :  { %v9921_v52 = vpop.eup %9278  ;;  %v372_v54 = vmul.f32 1.442695, %v361_v50  ;;  %v377_v55 = vsel %vm337_vm6, %v9919_v51, 0.0 }
 0x2e5   :  { %378 = vadd.xlane.f32.xlu0 %v377_v55  ;;  %v374_v56 = vsel %vm337_vm6, %v9921_v52, 0.0 }
 0x2e6   :  { %9284 = vpow2.f32 %v372_v54  ;;  %375 = vadd.xlane.f32.xlu1 %v374_v56 }
 0x2e7   :  { %9286 = vpow2.f32 %v370_v53 }
 0x2e8   :  { %v9927_v57 = vpop.eup %9280 }
 0x2e9   :  { %v383_v58 = vsel %vm337_vm6, %v9927_v57, 0.0 }
 0x2ea   :  { %384 = vadd.xlane.f32.xlu0 %v383_v58 }
 0x2ec   :  { %v9931_v59 = vpop.eup %9282 }
 0x2ed   :  { %v685_v60 = vpop.xlane.xlu0 %684  ;;  %v380_v61 = vsel %vm337_vm6, %v9931_v59, 0.0 }
 0x2ee   :  { %v699_v63 = vsub.f32 %v9889_v22, %v685_v60  ;;  %v682_v0 = vpop.xlane.xlu1 %681  ;;  %381 = vadd.xlane.f32.xlu1 %v380_v61 }
 0x2ef   :  { %v698_v1 = vsub.f32 %v9891_v23, %v682_v0  ;;  %v26_v23 = vld [vmem:[%s11784_s0 + $0x48] sm:$0xff] }
 0x2f0   :  { %v9937_v2 = vpop.eup %9284  ;;  %v706_v3 = vmul.f32 1.442695, %v699_v63  ;;  %7477 = vmatmul.mubr.msk.f32.gmra.mrb[8].mxu0 %vm37_vm0, %v26_v23 }
 0x2f1   :  { %v704_v4 = vmul.f32 1.442695, %v698_v1  ;;  %v389_v5 = vsel %vm337_vm6, %v9937_v2, 0.0  ;;  %v9941_v6 = vpop.eup %9286  ;;  %7479 = vmatprep.mubr.msk.f32.mxu0 %vm37_vm0, %v27_v35  ;;  %v691_v38 = vpop.xlane.xlu0 %690 }
 0x2f2   :  { %9288 = vpow2.f32 %v706_v3  ;;  %v688_v7 = vpop.xlane.xlu1 %687  ;;  %390 = vadd.xlane.f32.xlu1 %v389_v5  ;;  %v386_v8 = vsel %vm337_vm6, %v9941_v6, 0.0  ;;  %v701_v40 = vsub.f32 %v9897_v27, %v691_v38 }
 0x2f3   :  { %9290 = vpow2.f32 %v704_v4  ;;  %v700_v39 = vsub.f32 %v9899_v28, %v688_v7 }
 0x2f4   :  { %7480 = vmatmul.mubr.msk.f32.gmra.mrb[10].mxu0 %vm37_vm0, %v28_v37  ;;  %v710_v44 = vmul.f32 1.442695, %v701_v40 }
 0x2f5   :  { %v697_v41 = vpop.xlane.xlu0 %696  ;;  %v708_v42 = vmul.f32 1.442695, %v700_v39 }
 0x2f6   :  { %v694_v10 = vpop.xlane.xlu1 %693  ;;  %387 = vadd.xlane.f32.xlu1 %v386_v8  ;;  %v703_v43 = vsub.f32 %v9905_v31, %v697_v41 }
 0x2f7   :  { %9292 = vpow2.f32 %v708_v42  ;;  %v702_v46 = vsub.f32 %v9907_v32, %v694_v10 }
 0x2f8   :  { %v714_v45 = vmul.f32 1.442695, %v703_v43  ;;  %9294 = vpow2.f32 %v710_v44 }
 0x2f9   :  { %v712_v47 = vmul.f32 1.442695, %v702_v46  ;;  %v8848_v54 = vpop.permute.xlu0 %8847 }
 0x2fa   :  { %v8843_v22 = vpop.permute.xlu1 %8842  ;;  %9296 = vpow2.f32 %v714_v45  ;;  %v8850_v1 = vunpack.i.h.bf16 %v8848_v54  ;;  %v8849_v3 = vunpack.i.l.bf16 %v8848_v54 }
 0x2fb   :  { %v8845_v25 = vunpack.i.h.bf16 %v8843_v22  ;;  %v8844_v26 = vunpack.i.l.bf16 %v8843_v22  ;;  %9298 = vpow2.f32 %v712_v47 }
 0x2fc   :  { %v9961_v29 = vpop.eup %9288  ;;  %v8294_v10 = vpack.c.bf16 %v8850_v1, %v8849_v3 }
 0x2fd   :  { %v9963_v30 = vpop.eup %9290  ;;  %v719_v33 = vsel %vm337_vm6, %v9961_v29, 0.0  ;;  %v9967_v34 = vpack.c.bf16 %v8845_v25, %v8844_v26  ;;  %v8853_v55 = vpop.permute.xlu0 %8852 }
 0x2fe   :  { %720 = vadd.xlane.f32.xlu1 %v719_v33  ;;  %v716_v36 = vsel %vm337_vm6, %v9963_v30, 0.0  ;;  %v8855_v8 = vunpack.i.h.bf16 %v8853_v55  ;;  %v8854_v9 = vunpack.i.l.bf16 %v8853_v55 }
 0x2ff   :  { %717 = vadd.xlane.f32.xlu0 %v716_v36  ;;  %8291 = vmatprep.subr.bf16.mxu0 %v9967_v34 }
 0x300   :  { %v8298_v23 = vpack.c.bf16 %v8855_v8, %v8854_v9 }
 0x301   :  { %v9988_v48 = vpop.eup %9292 }
 0x302   :  { %v9990_v49 = vpop.eup %9294  ;;  %v722_v27 = vsel %vm337_vm6, %v9988_v48, 0.0 }
 0x303   :  { %v725_v31 = vsel %vm337_vm6, %v9990_v49, 0.0 }
 0x304   :  { %v9994_v28 = vpop.eup %9296 }
 0x305   :  { %v731_v32 = vsel %vm337_vm6, %v9994_v28, 0.0  ;;  %v10000_v50 = vpop.eup %9298 }
 0x306   :  { %v728_v53 = vsel %vm337_vm6, %v10000_v50, 0.0 }
 0x30f   :  { %8857 = vrot.lane.b32.xlu1 %v9781_v14, %s9702_s26 }
 0x315   :  { %8862 = vrot.lane.b32.xlu0 %v9791_v17, %s9702_s26 }
 0x333   :  { %723 = vadd.xlane.f32.xlu1 %v722_v27 }
 0x334   :  { %726 = vadd.xlane.f32.xlu0 %v725_v31 }
 0x337   :  { %732 = vadd.xlane.f32.xlu1 %v731_v32 }
 0x33b   :  { %729 = vadd.xlane.f32.xlu1 %v728_v53 }
 0x34a   :  { %8867 = vrot.lane.b32.xlu0 %v9801_v20, %s9702_s26 }
 0x34c   :  { %878 = vrot.lane.b32.xlu1 %v9775_v13, %s9703_s27 }
 0x34e   :  { %880 = vrot.lane.b32.xlu0 %v9773_v12, %s9703_s27 }
 0x350   :  { %882 = vrot.lane.b32.xlu1 %v9787_v16, %s9703_s27 }
 0x352   :  { %884 = vrot.lane.b32.xlu0 %v9785_v15, %s9703_s27 }
 0x354   :  { %886 = vrot.lane.b32.xlu1 %v9797_v19, %s9703_s27 }
 0x356   :  { %888 = vrot.lane.b32.xlu0 %v9795_v18, %s9703_s27 }
 0x35a   :  { %8872 = vrot.lane.b32.xlu0 %v9781_v14, %s9704_s28 }
 0x372   :  { %v379_v56 = vpop.xlane.xlu0 %378 }
 0x373   :  { %9300 = vrcp.f32 %v379_v56  ;;  %v376_v58 = vpop.xlane.xlu1 %375 }
 0x374   :  { %9302 = vrcp.f32 %v376_v58 }
 0x377   :  { %v385_v60 = vpop.xlane.xlu0 %384 }
 0x378   :  { %9304 = vrcp.f32 %v385_v60 }
 0x37b   :  { %v382_v61 = vpop.xlane.xlu1 %381 }
 0x37c   :  { %9306 = vrcp.f32 %v382_v61 }
 0x37d   :  { %v9301_v63 = vpop.eup %9300 }
 0x37e   :  { %v9303_v0 = vpop.eup %9302  ;;  %v399_v7 = vmul.f32 %v9301_v63, %v9919_v51 }
 0x37f   :  { %v391_v4 = vpop.xlane.xlu1 %390  ;;  %v398_v5 = vmul.f32 %v9303_v0, %v9921_v52 }
 0x380   :  { %9308 = vrcp.f32 %v391_v4 }
 0x381   :  { %7515 = vmatprep.mubr.msk.f32.mxu0 %vm337_vm6, %v398_v5 }
 0x382   :  { %7516 = vmatmul.mubr.msk.f32.vlgmr.msra.gmra.mrb[12].mxu0 %vm337_vm6, %v399_v7  ;;  %v9305_v21 = vpop.eup %9304 }
 0x383   :  { %8293 = vmatpush3.bf16.msra.mxu0 %v9967_v34  ;;  %v388_v11 = vpop.xlane.xlu1 %387  ;;  %v401_v51 = vmul.f32 %v9305_v21, %v9927_v57 }
 0x384   :  { %9310 = vrcp.f32 %v388_v11  ;;  %8295 = vmatprep.subr.bf16.mxu0 %v8294_v10 }
 0x386   :  { %v9307_v22 = vpop.eup %9306 }
 0x387   :  { %8297 = vmatpush3.bf16.msra.mxu0 %v8294_v10  ;;  %v400_v52 = vmul.f32 %v9307_v22, %v9931_v59 }
 0x388   :  { %8300 = vmatprep.subr.msk.bf16.mxu0 %vm9861_vm5, %v8298_v23 }
 0x389   :  { %7518 = vmatprep.mubr.msk.f32.mxu0 %vm337_vm6, %v400_v52 }
 0x38a   :  { %7519 = vmatmul.mubr.msk.f32.gmra.mrb[14].mxu0 %vm337_vm6, %v401_v51  ;;  %v9309_v33 = vpop.eup %9308 }
 0x38b   :  { %v721_v25 = vpop.xlane.xlu1 %720  ;;  %8303 = vmatpush3.bf16.msk.msra.mxu0 %vm9861_vm5, %v8298_v23  ;;  %v403_v57 = vmul.f32 %v9309_v33, %v9937_v2 }
 0x38c   :  { %9312 = vrcp.f32 %v721_v25  ;;  %v718_v26 = vpop.xlane.xlu0 %717 }
 0x38d   :  { %9314 = vrcp.f32 %v718_v26 }
 0x38e   :  { %v9311_v34 = vpop.eup %9310 }
 0x38f   :  { %v8858_v35 = vpop.permute.xlu1 %8857  ;;  %v402_v59 = vmul.f32 %v9311_v34, %v9941_v6 }
 0x390   :  { %v8860_v36 = vunpack.i.h.bf16 %v8858_v35  ;;  %v8859_v37 = vunpack.i.l.bf16 %v8858_v35  ;;  %v8863_v39 = vpop.permute.xlu0 %8862 }
 0x391   :  { %7521 = vmatprep.mubr.msk.f32.mxu0 %vm337_vm6, %v402_v59  ;;  %v8865_v42 = vunpack.i.h.bf16 %v8863_v39  ;;  %v8864_v43 = vunpack.i.l.bf16 %v8863_v39 }
 0x392   :  { %v8304_v38 = vpack.c.bf16 %v8860_v36, %v8859_v37  ;;  %7522 = vmatmul.mubr.msk.f32.gmra.mrb[16].mxu0 %vm337_vm6, %v403_v57 }
 0x393   :  { %v8310_v2 = vpack.c.bf16 %v8865_v42, %v8864_v43 }
 0x394   :  { %8306 = vmatprep.subr.msk.bf16.mxu0 %vm9831_vm2, %v8304_v38 }
 0x396   :  { %v9313_v40 = vpop.eup %9312 }
 0x397   :  { %v9315_v41 = vpop.eup %9314  ;;  %v741_v6 = vmul.f32 %v9313_v40, %v9961_v29 }
 0x398   :  { %v740_v44 = vmul.f32 %v9315_v41, %v9963_v30 }
 0x39a   :  { %7557 = vmatprep.mubr.msk.f32.mxu0 %vm337_vm6, %v740_v44 }
 0x39b   :  { %7558 = vmatmul.mubr.msk.f32.vlgmr.msra.gmra.mrb[18].mxu0 %vm337_vm6, %v741_v6 }
 0x39c   :  { %8309 = vmatpush3.bf16.xpose.msk.msra.mxu0 %vm9831_vm2, %v8304_v38 }
 0x39d   :  { %8312 = vmatprep.subr.msk.bf16.mxu0 %vm9831_vm2, %v8310_v2 }
 0x3a4   :  { %8315 = vmatpush3.bf16.xpose.msk.msra.mxu0 %vm9831_vm2, %v8310_v2 }
 0x3b3   :  { %v10051_v54 = vpop.f32.mrb[6].mxu0 }
 0x3b4   :  { %v10055_v56 = vpop.f32.mrb[7].mxu0 }
 0x3c0   :  { %v724_v45 = vpop.xlane.xlu1 %723 }
 0x3c1   :  { %9316 = vrcp.f32 %v724_v45  ;;  %v727_v46 = vpop.xlane.xlu0 %726 }
 0x3c2   :  { %9318 = vrcp.f32 %v727_v46 }
 0x3c3   :  { %v10060_v0 = vpop.f32.mrb[8].mxu0 }
 0x3c4   :  { %v733_v30 = vpop.xlane.xlu1 %732  ;;  %v10063_v1 = vpop.f32.mrb[9].mxu0 }
 0x3c5   :  { %v8868_v29 = vpop.permute.xlu0 %8867  ;;  %9320 = vrcp.f32 %v733_v30  ;;  %v10085_v52 = vpack.i.bf16 %v10060_v0, %v10063_v1 }
 0x3c6   :  { %v8870_v47 = vunpack.i.h.bf16 %v8868_v29  ;;  %v8869_v27 = vunpack.i.l.bf16 %v8868_v29 }
 0x3c7   :  { %v10065_v8 = vpop.f32.mrb[10].mxu0 }
 0x3c8   :  { %v8316_v31 = vpack.c.bf16 %v8870_v47, %v8869_v27  ;;  %v730_v32 = vpop.xlane.xlu1 %729 }
 0x3c9   :  { %9322 = vrcp.f32 %v730_v32  ;;  %v881_v53 = vpop.permute.xlu0 %880 }
 0x3ca   :  { %8318 = vmatprep.subr.msk.bf16.mxu0 %vm9831_vm2, %v8316_v31 }
 0x3cb   :  { %v9317_v55 = vpop.eup %9316  ;;  %8321 = vmatpush3.bf16.xpose.msk.msra.mxu0 %vm9831_vm2, %v8316_v31 }
 0x3cc   :  { %v9319_v58 = vpop.eup %9318  ;;  %v742_v60 = vmul.f32 %v9317_v55, %v9988_v48  ;;  %v879_v7 = vpop.permute.xlu1 %878 }
 0x3cd   :  { %v885_v61 = vpop.permute.xlu0 %884  ;;  %v743_v63 = vmul.f32 %v9319_v58, %v9990_v49  ;;  %v10068_v48 = vpop.f32.mrb[11].mxu0 }
 0x3ce   :  { %7560 = vmatprep.mubr.msk.f32.mxu0 %vm337_vm6, %v742_v60  ;;  %v10089_v51 = vpack.i.bf16 %v10065_v8, %v10068_v48 }
 0x3cf   :  { %7561 = vmatmul.mubr.msk.f32.gmra.mrb[20].mxu0 %vm337_vm6, %v743_v63  ;;  %v9321_v4 = vpop.eup %9320 }
 0x3d0   :  { %v745_v49 = vmul.f32 %v9321_v4, %v9994_v28  ;;  %v883_v23 = vpop.permute.xlu1 %882  ;;  %v10081_v28 = vpack.i.bf16 %v10051_v54, %v10055_v56 }
 0x3d1   :  { %v889_v3 = vpop.permute.xlu0 %888 }
 0x3d3   :  { %v9323_v5 = vpop.eup %9322 }
 0x3d4   :  { %v744_v9 = vmul.f32 %v9323_v5, %v10000_v50  ;;  %v887_v50 = vpop.permute.xlu1 %886 }
 0x3d5   :  { %v8873_v10 = vpop.permute.xlu0 %8872 }
 0x3d6   :  { %v8875_v11 = vunpack.i.h.bf16 %v8873_v10  ;;  %v8874_v21 = vunpack.i.l.bf16 %v8873_v10  ;;  %7563 = vmatprep.mubr.msk.f32.mxu0 %vm337_vm6, %v744_v9 }
 0x3d7   :  { %7564 = vmatmul.mubr.msk.f32.gmra.mrb[22].mxu0 %vm337_vm6, %v745_v49 }
 0x3d8   :  { %7578 = vmatprep.mubr.msk.f32.mxu0 %vm217_vm1, %v879_v7  ;;  %v8322_v22 = vpack.c.bf16 %v8875_v11, %v8874_v21 }
 0x3da   :  { %8323 = vmatprep.subr.bf16.mxu1 %v8322_v22 }
 0x3db   :  { %7579 = vmatmul.mubr.msk.f32.vlgmr.msra.gmra.mrb[24].mxu0 %vm217_vm1, %v881_v53  ;;  %8325 = vmatpush3.bf16.msra.mxu1 %v8322_v22 }
 0x3dc   :  { %7581 = vmatprep.mubr.msk.f32.mxu0 %vm217_vm1, %v883_v23 }
 0x3df   :  { %7582 = vmatmul.mubr.msk.f32.gmra.mrb[26].mxu0 %vm217_vm1, %v885_v61 }
 0x3e0   :  { %7584 = vmatprep.mubr.msk.f32.mxu0 %vm217_vm1, %v887_v50 }
 0x3e3   :  { %7585 = vmatmul.mubr.msk.f32.gmra.mrb[28].mxu0 %vm217_vm1, %v889_v3 }
 0x455   :  { %v10091_v25 = vpop.f32.mrb[12].mxu0 }
 0x456   :  { %v10093_v26 = vpop.f32.mrb[13].mxu0 }
 0x45d   :  { %v10095_v33 = vpop.f32.mrb[14].mxu0 }
 0x45e   :  { %v10097_v34 = vpop.f32.mrb[15].mxu0 }
 0x465   :  { %v10099_v35 = vpop.f32.mrb[16].mxu0 }
 0x466   :  { %v10101_v59 = vpop.f32.mrb[17].mxu0 }
 0x46e   :  { %v10103_v36 = vpop.f32.mrb[18].mxu0 }
 0x46f   :  { %v10105_v37 = vpop.f32.mrb[19].mxu0 }
 0x4a2   :  { %v10107_v57 = vpop.f32.mrb[20].mxu0 }
 0x4a3   :  { %v10109_v38 = vpop.f32.mrb[21].mxu0 }
 0x4aa   :  { %v10111_v39 = vpop.f32.mrb[22].mxu0 }
 0x4ab   :  { %v10113_v40 = vpop.f32.mrb[23].mxu0 }
 0x4ae   :  { %v7580_v41 = vpop.f32.mrb[24].mxu0 }
 0x4af   :  { %v992_v42 = vpop.f32.mrb[25].mxu0  ;;  %v1024_v43 = vsel %vm337_vm6, %v7580_v41, -inf }
 0x4b0   :  { %1025 = vmax.xlane.f32.xlu0 %v1024_v43  ;;  %v1021_v44 = vsel %vm337_vm6, %v992_v42, -inf }
 0x4b1   :  { %1022 = vmax.xlane.f32.xlu1 %v1021_v44 }
 0x4b2   :  { %v7583_v6 = vpop.f32.mrb[26].mxu0 }
 0x4b3   :  { %v1002_v2 = vpop.f32.mrb[27].mxu0  ;;  %v1030_v45 = vsel %vm337_vm6, %v7583_v6, -inf }
 0x4b4   :  { %v1027_v46 = vsel %vm337_vm6, %v1002_v2, -inf }
 0x4b5   :  { %1031 = vmax.xlane.f32.xlu1 %v1030_v45  ;;  %1028 = vmax.xlane.f32.xlu0 %v1027_v46 }
 0x4b6   :  { %v7586_v30 = vpop.f32.mrb[28].mxu0 }
 0x4b7   :  { %v1012_v29 = vpop.f32.mrb[29].mxu0  ;;  %v1036_v47 = vsel %vm337_vm6, %v7586_v30, -inf }
 0x4b8   :  { %v1033_v27 = vsel %vm337_vm6, %v1012_v29, -inf }
 0x4b9   :  { %1037 = vmax.xlane.f32.xlu1 %v1036_v47  ;;  %1034 = vmax.xlane.f32.xlu0 %v1033_v27 }
 0x4ca   :  { %8877 = vrot.lane.b32.xlu1 %v9791_v17, %s9704_s28 }
 0x4cf   :  { %8882 = vrot.lane.b32.xlu0 %v9801_v20, %s9704_s28 }
 0x53d   :  { %v1026_v31 = vpop.xlane.xlu0 %1025 }
 0x53e   :  { %v1040_v32 = vsub.f32 %v7580_v41, %v1026_v31  ;;  %v1023_v53 = vpop.xlane.xlu1 %1022 }
 0x53f   :  { %v1039_v55 = vsub.f32 %v992_v42, %v1023_v53 }
 0x540   :  { %v1047_v58 = vmul.f32 1.442695, %v1040_v32 }
 0x541   :  { %v1045_v60 = vmul.f32 1.442695, %v1039_v55 }
 0x542   :  { %9324 = vpow2.f32 %v1047_v58  ;;  %v1032_v61 = vpop.xlane.xlu1 %1031  ;;  %v1029_v63 = vpop.xlane.xlu0 %1028 }
 0x543   :  { %9326 = vpow2.f32 %v1045_v60  ;;  %v1041_v43 = vsub.f32 %v1002_v2, %v1029_v63  ;;  %v1042_v44 = vsub.f32 %v7583_v6, %v1032_v61 }
 0x545   :  { %v1049_v45 = vmul.f32 1.442695, %v1041_v43  ;;  %v1051_v47 = vmul.f32 1.442695, %v1042_v44 }
 0x546   :  { %v1038_v3 = vpop.xlane.xlu1 %1037  ;;  %v1035_v4 = vpop.xlane.xlu0 %1034 }
 0x547   :  { %v1044_v46 = vsub.f32 %v7586_v30, %v1038_v3  ;;  %9328 = vpow2.f32 %v1049_v45  ;;  %v1043_v31 = vsub.f32 %v1012_v29, %v1035_v4 }
 0x548   :  { %9330 = vpow2.f32 %v1051_v47 }
 0x549   :  { %v1055_v27 = vmul.f32 1.442695, %v1044_v46  ;;  %v1053_v32 = vmul.f32 1.442695, %v1043_v31 }
 0x54a   :  { %v8878_v5 = vpop.permute.xlu1 %8877  ;;  %v8883_v7 = vpop.permute.xlu0 %8882 }
 0x54b   :  { %v8880_v9 = vunpack.i.h.bf16 %v8878_v5  ;;  %v8879_v10 = vunpack.i.l.bf16 %v8878_v5  ;;  %v8885_v49 = vunpack.i.h.bf16 %v8883_v7  ;;  %v8884_v21 = vunpack.i.l.bf16 %v8883_v7 }
 0x54c   :  { %v10125_v11 = vpop.eup %9324  ;;  %9332 = vpow2.f32 %v1055_v27 }
 0x54d   :  { %v9327_v22 = vpop.eup %9326  ;;  %v1060_v23 = vsel %vm337_vm6, %v10125_v11, 0.0  ;;  %v8326_v50 = vpack.c.bf16 %v8880_v9, %v8879_v10  ;;  %v8330_v42 = vpack.c.bf16 %v8885_v49, %v8884_v21  ;;  %9334 = vpow2.f32 %v1053_v32 }
 0x54e   :  { %1061 = vadd.xlane.f32.xlu1 %v1060_v23  ;;  %v1057_v41 = vsel %vm337_vm6, %v9327_v22, 0.0 }
 0x54f   :  { %8327 = vmatprep.subr.bf16.mxu1 %v8326_v50  ;;  %1058 = vadd.xlane.f32.xlu0 %v1057_v41 }
 0x550   :  { %8329 = vmatpush3.bf16.msra.mxu1 %v8326_v50 }
 0x551   :  { %8332 = vmatprep.subr.msk.bf16.mxu1 %vm9861_vm5, %v8330_v42  ;;  %v9329_v53 = vpop.eup %9328 }
 0x552   :  { %v9331_v55 = vpop.eup %9330  ;;  %v1063_v58 = vsel %vm337_vm6, %v9329_v53, 0.0 }
 0x553   :  { %v1066_v2 = vsel %vm337_vm6, %v9331_v55, 0.0 }
 0x554   :  { %8335 = vmatpush3.bf16.msk.msra.mxu1 %vm9861_vm5, %v8330_v42 }
 0x556   :  { %v10139_v60 = vpop.eup %9332 }
 0x557   :  { %v1072_v6 = vsel %vm337_vm6, %v10139_v60, 0.0  ;;  %v9335_v30 = vpop.eup %9334 }
 0x558   :  { %v1069_v29 = vsel %vm337_vm6, %v9335_v30, 0.0 }
 0x55f   :  { %8887 = vrot.lane.b32.xlu1 %v9781_v14, %s9705_s29 }
 0x565   :  { %8892 = vrot.lane.b32.xlu0 %v9791_v17, %s9705_s29 }
 0x583   :  { %1064 = vadd.xlane.f32.xlu1 %v1063_v58 }
 0x584   :  { %1067 = vadd.xlane.f32.xlu0 %v1066_v2 }
 0x587   :  { %1073 = vadd.xlane.f32.xlu1 %v1072_v6 }
 0x58b   :  { %1070 = vadd.xlane.f32.xlu1 %v1069_v29 }
 0x59a   :  { %8897 = vrot.lane.b32.xlu0 %v9801_v20, %s9705_s29 }
 0x59c   :  { %1219 = vrot.lane.b32.xlu1 %v9775_v13, %s9706_s30 }
 0x59e   :  { %1221 = vrot.lane.b32.xlu0 %v9773_v12, %s9706_s30 }
 0x5a0   :  { %1223 = vrot.lane.b32.xlu1 %v9787_v16, %s9706_s30 }
 0x5a2   :  { %1225 = vrot.lane.b32.xlu0 %v9785_v15, %s9706_s30 }
 0x5a4   :  { %1227 = vrot.lane.b32.xlu1 %v9797_v19, %s9706_s30 }
 0x5a6   :  { %1229 = vrot.lane.b32.xlu0 %v9795_v18, %s9706_s30 }
 0x5db   :  { %v1062_v61 = vpop.xlane.xlu1 %1061 }
 0x5dc   :  { %9336 = vrcp.f32 %v1062_v61  ;;  %v1059_v63 = vpop.xlane.xlu0 %1058 }
 0x5dd   :  { %9338 = vrcp.f32 %v1059_v63 }
 0x5df   :  { %v8888_v13 = vpop.permute.xlu1 %8887 }
 0x5e0   :  { %v8890_v3 = vunpack.i.h.bf16 %v8888_v13  ;;  %v8889_v4 = vunpack.i.l.bf16 %v8888_v13  ;;  %v8893_v5 = vpop.permute.xlu0 %8892 }
 0x5e1   :  { %v8895_v7 = vunpack.i.h.bf16 %v8893_v5  ;;  %v8894_v9 = vunpack.i.l.bf16 %v8893_v5 }
 0x5e2   :  { %v8336_v12 = vpack.c.bf16 %v8890_v3, %v8889_v4 }
 0x5e3   :  { %v8342_v18 = vpack.c.bf16 %v8895_v7, %v8894_v9 }
 0x5e4   :  { %8338 = vmatprep.subr.msk.bf16.mxu1 %vm9831_vm2, %v8336_v12 }
 0x5e6   :  { %v9337_v16 = vpop.eup %9336 }
 0x5e7   :  { %v9339_v15 = vpop.eup %9338  ;;  %v1082_v10 = vmul.f32 %v9337_v16, %v10125_v11 }
 0x5e8   :  { %v1081_v19 = vmul.f32 %v9339_v15, %v9327_v22 }
 0x5ea   :  { %7599 = vmatprep.mubr.msk.f32.mxu1 %vm337_vm6, %v1081_v19 }
 0x5eb   :  { %7600 = vmatmul.mubr.msk.f32.vlgmr.msra.gmra.mrb[12].mxu1 %vm337_vm6, %v1082_v10 }
 0x5ec   :  { %8341 = vmatpush3.bf16.xpose.msk.msra.mxu1 %vm9831_vm2, %v8336_v12 }
 0x5ed   :  { %8344 = vmatprep.subr.msk.bf16.mxu1 %vm9831_vm2, %v8342_v18 }
 0x5f4   :  { %8347 = vmatpush3.bf16.xpose.msk.msra.mxu1 %vm9831_vm2, %v8342_v18 }
 0x610   :  { %v1065_v49 = vpop.xlane.xlu1 %1064 }
 0x611   :  { %9340 = vrcp.f32 %v1065_v49  ;;  %v1068_v21 = vpop.xlane.xlu0 %1067 }
 0x612   :  { %9342 = vrcp.f32 %v1068_v21 }
 0x614   :  { %v1074_v22 = vpop.xlane.xlu1 %1073 }
 0x615   :  { %v8898_v11 = vpop.permute.xlu0 %8897  ;;  %9344 = vrcp.f32 %v1074_v22 }
 0x616   :  { %v8900_v23 = vunpack.i.h.bf16 %v8898_v11  ;;  %v8899_v50 = vunpack.i.l.bf16 %v8898_v11 }
 0x618   :  { %v8348_v41 = vpack.c.bf16 %v8900_v23, %v8899_v50  ;;  %v1071_v42 = vpop.xlane.xlu1 %1070 }
 0x619   :  { %9346 = vrcp.f32 %v1071_v42  ;;  %v1222_v2 = vpop.permute.xlu0 %1221 }
 0x61a   :  { %8350 = vmatprep.subr.msk.bf16.mxu1 %vm9831_vm2, %v8348_v41 }
 0x61b   :  { %v9341_v43 = vpop.eup %9340  ;;  %8353 = vmatpush3.bf16.xpose.msk.msra.mxu1 %vm9831_vm2, %v8348_v41 }
 0x61c   :  { %v9343_v44 = vpop.eup %9342  ;;  %v1083_v45 = vmul.f32 %v9341_v43, %v9329_v53  ;;  %v1220_v31 = vpop.permute.xlu1 %1219 }
 0x61d   :  { %v1084_v46 = vmul.f32 %v9343_v44, %v9331_v55  ;;  %v1226_v53 = vpop.permute.xlu0 %1225 }
 0x61e   :  { %7602 = vmatprep.mubr.msk.f32.mxu1 %vm337_vm6, %v1083_v45 }
 0x61f   :  { %7603 = vmatmul.mubr.msk.f32.gmra.mrb[14].mxu1 %vm337_vm6, %v1084_v46  ;;  %v9345_v47 = vpop.eup %9344 }
 0x620   :  { %v1086_v58 = vmul.f32 %v9345_v47, %v10139_v60  ;;  %v1224_v6 = vpop.permute.xlu1 %1223 }
 0x623   :  { %v9347_v27 = vpop.eup %9346 }
 0x624   :  { %v1085_v32 = vmul.f32 %v9347_v27, %v9335_v30  ;;  %v1228_v55 = vpop.permute.xlu1 %1227  ;;  %v1230_v30 = vpop.permute.xlu0 %1229 }
 0x626   :  { %7605 = vmatprep.mubr.msk.f32.mxu1 %vm337_vm6, %v1085_v32 }
 0x627   :  { %7606 = vmatmul.mubr.msk.f32.gmra.mrb[16].mxu1 %vm337_vm6, %v1086_v58 }
 0x628   :  { %7620 = vmatprep.mubr.msk.f32.mxu1 %vm217_vm1, %v1220_v31 }
 0x62b   :  { %7621 = vmatmul.mubr.msk.f32.vlgmr.msra.gmra.mrb[18].mxu1 %vm217_vm1, %v1222_v2 }
 0x62c   :  { %7623 = vmatprep.mubr.msk.f32.mxu1 %vm217_vm1, %v1224_v6 }
 0x62f   :  { %7624 = vmatmul.mubr.msk.f32.gmra.mrb[20].mxu1 %vm217_vm1, %v1226_v53 }
 0x630   :  { %7626 = vmatprep.mubr.msk.f32.mxu1 %vm217_vm1, %v1228_v55 }
 0x633   :  { %7627 = vmatmul.mubr.msk.f32.gmra.mrb[22].mxu1 %vm217_vm1, %v1230_v30 }
 0x6be   :  { %v10185_v60 = vpop.f32.mrb[12].mxu1 }
 0x6bf   :  { %v10187_v29 = vpop.f32.mrb[13].mxu1 }
 0x6f2   :  { %v10189_v61 = vpop.f32.mrb[14].mxu1 }
 0x6f3   :  { %v10191_v63 = vpop.f32.mrb[15].mxu1 }
 0x6fa   :  { %v10193_v13 = vpop.f32.mrb[16].mxu1 }
 0x6fb   :  { %v10195_v3 = vpop.f32.mrb[17].mxu1 }
 0x6fe   :  { %v7622_v4 = vpop.f32.mrb[18].mxu1 }
 0x6ff   :  { %v1333_v12 = vpop.f32.mrb[19].mxu1  ;;  %v1365_v5 = vsel %vm337_vm6, %v7622_v4, -inf }
 0x700   :  { %1366 = vmax.xlane.f32.xlu0 %v1365_v5  ;;  %v1362_v16 = vsel %vm337_vm6, %v1333_v12, -inf }
 0x701   :  { %1363 = vmax.xlane.f32.xlu1 %v1362_v16 }
 0x702   :  { %v7625_v15 = vpop.f32.mrb[20].mxu1 }
 0x703   :  { %v1343_v7 = vpop.f32.mrb[21].mxu1  ;;  %v1371_v9 = vsel %vm337_vm6, %v7625_v15, -inf }
 0x704   :  { %v1368_v19 = vsel %vm337_vm6, %v1343_v7, -inf }
 0x705   :  { %1372 = vmax.xlane.f32.xlu1 %v1371_v9  ;;  %1369 = vmax.xlane.f32.xlu0 %v1368_v19 }
 0x706   :  { %v7628_v10 = vpop.f32.mrb[22].mxu1 }
 0x707   :  { %v1353_v18 = vpop.f32.mrb[23].mxu1  ;;  %v1377_v49 = vsel %vm337_vm6, %v7628_v10, -inf }
 0x708   :  { %v1374_v21 = vsel %vm337_vm6, %v1353_v18, -inf }
 0x709   :  { %1378 = vmax.xlane.f32.xlu1 %v1377_v49  ;;  %1375 = vmax.xlane.f32.xlu0 %v1374_v21 }
 0x71a   :  { %8907 = vrot.lane.b32.xlu1 %v9791_v17, %s9707_s5 }
 0x71f   :  { %8902 = vrot.lane.b32.xlu0 %v9781_v14, %s9707_s5 }
 0x723   :  { %8912 = vrot.lane.b32.xlu0 %v9801_v20, %s9707_s5 }
 0x78d   :  { %v1367_v22 = vpop.xlane.xlu0 %1366 }
 0x78e   :  { %v1381_v11 = vsub.f32 %v7622_v4, %v1367_v22  ;;  %v1364_v23 = vpop.xlane.xlu1 %1363 }
 0x78f   :  { %v1380_v50 = vsub.f32 %v1333_v12, %v1364_v23 }
 0x790   :  { %v1388_v41 = vmul.f32 1.442695, %v1381_v11 }
 0x791   :  { %v1386_v42 = vmul.f32 1.442695, %v1380_v50 }
 0x792   :  { %9348 = vpow2.f32 %v1388_v41  ;;  %v1373_v43 = vpop.xlane.xlu1 %1372  ;;  %v1370_v44 = vpop.xlane.xlu0 %1369 }
 0x793   :  { %9350 = vpow2.f32 %v1386_v42  ;;  %v1383_v45 = vsub.f32 %v7625_v15, %v1373_v43  ;;  %v1382_v46 = vsub.f32 %v1343_v7, %v1370_v44 }
 0x795   :  { %v1392_v47 = vmul.f32 1.442695, %v1383_v45  ;;  %v1390_v17 = vmul.f32 1.442695, %v1382_v46 }
 0x796   :  { %v1379_v27 = vpop.xlane.xlu1 %1378  ;;  %v1376_v31 = vpop.xlane.xlu0 %1375 }
 0x797   :  { %9352 = vpow2.f32 %v1392_v47  ;;  %v1385_v14 = vsub.f32 %v7628_v10, %v1379_v27  ;;  %v1384_v32 = vsub.f32 %v1353_v18, %v1376_v31 }
 0x798   :  { %9354 = vpow2.f32 %v1390_v17 }
 0x799   :  { %v1396_v20 = vmul.f32 1.442695, %v1385_v14  ;;  %v1394_v58 = vmul.f32 1.442695, %v1384_v32 }
 0x79a   :  { %v8908_v2 = vpop.permute.xlu1 %8907  ;;  %v8903_v6 = vpop.permute.xlu0 %8902 }
 0x79b   :  { %9356 = vpow2.f32 %v1396_v20  ;;  %v8905_v53 = vunpack.i.h.bf16 %v8903_v6  ;;  %v8910_v30 = vunpack.i.h.bf16 %v8908_v2  ;;  %v8909_v4 = vunpack.i.l.bf16 %v8908_v2 }
 0x79c   :  { %v9349_v55 = vpop.eup %9348  ;;  %v8904_v12 = vunpack.i.l.bf16 %v8903_v6  ;;  %9358 = vpow2.f32 %v1394_v58 }
 0x79d   :  { %v9351_v5 = vpop.eup %9350  ;;  %v1401_v16 = vsel %vm337_vm6, %v9349_v55, 0.0  ;;  %v8358_v18 = vpack.c.bf16 %v8910_v30, %v8909_v4 }
 0x79e   :  { %1402 = vadd.xlane.f32.xlu1 %v1401_v16  ;;  %v8913_v15 = vpop.permute.xlu0 %8912  ;;  %v1398_v7 = vsel %vm337_vm6, %v9351_v5, 0.0  ;;  %v8354_v9 = vpack.c.bf16 %v8905_v53, %v8904_v12 }
 0x79f   :  { %1399 = vadd.xlane.f32.xlu0 %v1398_v7  ;;  %v8915_v19 = vunpack.i.h.bf16 %v8913_v15  ;;  %v8914_v10 = vunpack.i.l.bf16 %v8913_v15 }
 0x7a0   :  { %8355 = vmatprep.subr.bf16.mxu0 %v8354_v9 }
 0x7a1   :  { %v9353_v49 = vpop.eup %9352  ;;  %8357 = vmatpush3.bf16.msra.mxu0 %v8354_v9  ;;  %v8362_v23 = vpack.c.bf16 %v8915_v19, %v8914_v10 }
 0x7a2   :  { %v9355_v21 = vpop.eup %9354  ;;  %8359 = vmatprep.subr.bf16.mxu0 %v8358_v18  ;;  %v1407_v22 = vsel %vm337_vm6, %v9353_v49, 0.0 }
 0x7a3   :  { %v1404_v11 = vsel %vm337_vm6, %v9355_v21, 0.0  ;;  %1408 = vadd.xlane.f32.xlu0 %v1407_v22 }
 0x7a4   :  { %1405 = vadd.xlane.f32.xlu1 %v1404_v11 }
 0x7a5   :  { %v9357_v50 = vpop.eup %9356  ;;  %8361 = vmatpush3.bf16.msra.mxu0 %v8358_v18 }
 0x7a6   :  { %8364 = vmatprep.subr.msk.bf16.mxu0 %vm9861_vm5, %v8362_v23  ;;  %v1413_v41 = vsel %vm337_vm6, %v9357_v50, 0.0  ;;  %v9359_v42 = vpop.eup %9358 }
 0x7a7   :  { %v1410_v43 = vsel %vm337_vm6, %v9359_v42, 0.0 }
 0x7a8   :  { %1414 = vadd.xlane.f32.xlu1 %v1413_v41 }
 0x7a9   :  { %8367 = vmatpush3.bf16.msk.msra.mxu0 %vm9861_vm5, %v8362_v23 }
 0x7ac   :  { %1411 = vadd.xlane.f32.xlu1 %v1410_v43 }
 0x7b9   :  { %8922 = vrot.lane.b32.xlu0 %v10085_v52, %s9696_s9 }
 0x7bd   :  { %8917 = vrot.lane.b32.xlu1 %v10081_v28, %s9696_s9  ;;  %8927 = vrot.lane.b32.xlu0 %v10089_v51, %s9696_s9 }
 0x7c1   :  { %8932 = vrot.lane.b32.xlu0 %v10081_v28, %s9699_s12 }
 0x82b   :  { %v1403_v44 = vpop.xlane.xlu1 %1402 }
 0x82c   :  { %9360 = vrcp.f32 %v1403_v44  ;;  %v1400_v45 = vpop.xlane.xlu0 %1399 }
 0x82d   :  { %9362 = vrcp.f32 %v1400_v45 }
 0x830   :  { %v1409_v46 = vpop.xlane.xlu0 %1408 }
 0x831   :  { %v1406_v47 = vpop.xlane.xlu1 %1405  ;;  %9364 = vrcp.f32 %v1409_v46 }
 0x832   :  { %9366 = vrcp.f32 %v1406_v47 }
 0x834   :  { %v8923_v17 = vpop.permute.xlu0 %8922 }
 0x835   :  { %v1415_v27 = vpop.xlane.xlu1 %1414  ;;  %v8925_v9 = vunpack.i.h.bf16 %v8923_v17  ;;  %v8924_v19 = vunpack.i.l.bf16 %v8923_v17 }
 0x836   :  { %v9361_v31 = vpop.eup %9360  ;;  %9368 = vrcp.f32 %v1415_v27 }
 0x837   :  { %v9363_v14 = vpop.eup %9362  ;;  %v1423_v58 = vmul.f32 %v9361_v31, %v9349_v55  ;;  %v8374_v22 = vpack.c.bf16 %v8925_v9, %v8924_v19 }
 0x838   :  { %v8928_v32 = vpop.permute.xlu0 %8927  ;;  %v1422_v20 = vmul.f32 %v9363_v14, %v9351_v5 }
 0x839   :  { %v1412_v2 = vpop.xlane.xlu1 %1411  ;;  %v8930_v23 = vunpack.i.h.bf16 %v8928_v32  ;;  %v8929_v41 = vunpack.i.l.bf16 %v8928_v32 }
 0x83a   :  { %9370 = vrcp.f32 %v1412_v2  ;;  %7641 = vmatprep.mubr.msk.f32.mxu0 %vm337_vm6, %v1422_v20 }
 0x83b   :  { %v9365_v6 = vpop.eup %9364  ;;  %7642 = vmatmul.mubr.msk.f32.vlgmr.msra.gmra.mrb[30].mxu0 %vm337_vm6, %v1423_v58  ;;  %v8380_v44 = vpack.c.bf16 %v8930_v23, %v8929_v41 }
 0x83c   :  { %v9367_v53 = vpop.eup %9366  ;;  %v8933_v30 = vpop.permute.xlu0 %8932  ;;  %v1425_v4 = vmul.f32 %v9365_v6, %v9353_v49 }
 0x83d   :  { %v8918_v12 = vpop.permute.xlu1 %8917  ;;  %v8935_v16 = vunpack.i.h.bf16 %v8933_v30  ;;  %v8934_v15 = vunpack.i.l.bf16 %v8933_v30  ;;  %v1424_v7 = vmul.f32 %v9367_v53, %v9355_v21 }
 0x83e   :  { %v8920_v10 = vunpack.i.h.bf16 %v8918_v12  ;;  %v8919_v5 = vunpack.i.l.bf16 %v8918_v12 }
 0x83f   :  { %7644 = vmatprep.mubr.msk.f32.mxu0 %vm337_vm6, %v1424_v7  ;;  %v8386_v55 = vpack.c.bf16 %v8935_v16, %v8934_v15 }
 0x840   :  { %v8368_v18 = vpack.c.bf16 %v8920_v10, %v8919_v5  ;;  %7645 = vmatmul.mubr.msk.f32.gmra.mrb[32].mxu0 %vm337_vm6, %v1425_v4  ;;  %v9369_v49 = vpop.eup %9368 }
 0x841   :  { %8387 = vmatprep.subr.bf16.mxu1 %v8386_v55  ;;  %v1427_v43 = vmul.f32 %v9369_v49, %v9357_v50 }
 0x842   :  { %8370 = vmatprep.subr.msk.bf16.mxu0 %vm9831_vm2, %v8368_v18  ;;  %8389 = vmatpush3.bf16.msra.mxu1 %v8386_v55 }
 0x843   :  { %8373 = vmatpush3.bf16.xpose.msk.msra.mxu0 %vm9831_vm2, %v8368_v18 }
 0x844   :  { %v9371_v21 = vpop.eup %9370  ;;  %8376 = vmatprep.subr.msk.bf16.mxu0 %vm9831_vm2, %v8374_v22 }
 0x845   :  { %v1426_v11 = vmul.f32 %v9371_v21, %v9359_v42 }
 0x847   :  { %7647 = vmatprep.mubr.msk.f32.mxu0 %vm337_vm6, %v1426_v11 }
 0x848   :  { %7648 = vmatmul.mubr.msk.f32.gmra.mrb[34].mxu0 %vm337_vm6, %v1427_v43 }
 0x849   :  { %7662 = vmatprep.mubr.msk.f32.mxu0 %vm217_vm1, %v10055_v56 }
 0x84b   :  { %8379 = vmatpush3.bf16.xpose.msk.msra.mxu0 %vm9831_vm2, %v8374_v22 }
 0x84c   :  { %8382 = vmatprep.subr.msk.bf16.mxu0 %vm9831_vm2, %v8380_v44 }
 0x853   :  { %8385 = vmatpush3.bf16.xpose.msk.msra.mxu0 %vm9831_vm2, %v8380_v44 }
 0x85a   :  { %7663 = vmatmul.mubr.msk.f32.vlgmr.msra.gmra.mrb[36].mxu0 %vm217_vm1, %v10051_v54 }
 0x85b   :  { %7665 = vmatprep.mubr.msk.f32.mxu0 %vm217_vm1, %v10063_v1 }
 0x85e   :  { %7666 = vmatmul.mubr.msk.f32.gmra.mrb[38].mxu0 %vm217_vm1, %v10060_v0 }
 0x85f   :  { %7668 = vmatprep.mubr.msk.f32.mxu0 %vm217_vm1, %v10068_v48 }
 0x862   :  { %7669 = vmatmul.mubr.msk.f32.gmra.mrb[40].mxu0 %vm217_vm1, %v10065_v8 }
 0x90e   :  { %v10257_v50 = vpop.f32.mrb[30].mxu0 }
 0x90f   :  { %v10259_v42 = vpop.f32.mrb[31].mxu0 }
 0x913   :  { %v10261_v45 = vpop.f32.mrb[32].mxu0 }
 0x914   :  { %v10263_v46 = vpop.f32.mrb[33].mxu0 }
 0x91b   :  { %v10265_v47 = vpop.f32.mrb[34].mxu0 }
 0x91c   :  { %v10267_v17 = vpop.f32.mrb[35].mxu0 }
 0x92d   :  { %v7664_v27 = vpop.f32.mrb[36].mxu0 }
 0x92e   :  { %v1760_v31 = vpop.f32.mrb[37].mxu0  ;;  %v1792_v14 = vsel %vm337_vm6, %v7664_v27, -inf }
 0x92f   :  { %1793 = vmax.xlane.f32.xlu0 %v1792_v14  ;;  %v1789_v32 = vsel %vm337_vm6, %v1760_v31, -inf }
 0x930   :  { %1790 = vmax.xlane.f32.xlu1 %v1789_v32 }
 0x931   :  { %v7667_v20 = vpop.f32.mrb[38].mxu0 }
 0x932   :  { %v1770_v58 = vpop.f32.mrb[39].mxu0  ;;  %v1798_v2 = vsel %vm337_vm6, %v7667_v20, -inf }
 0x933   :  { %v1795_v6 = vsel %vm337_vm6, %v1770_v58, -inf }
 0x934   :  { %1799 = vmax.xlane.f32.xlu1 %v1798_v2  ;;  %1796 = vmax.xlane.f32.xlu0 %v1795_v6 }
 0x935   :  { %v7670_v53 = vpop.f32.mrb[40].mxu0 }
 0x936   :  { %v1780_v30 = vpop.f32.mrb[41].mxu0  ;;  %v1804_v4 = vsel %vm337_vm6, %v7670_v53, -inf }
 0x937   :  { %v1801_v12 = vsel %vm337_vm6, %v1780_v30, -inf }
 0x938   :  { %1805 = vmax.xlane.f32.xlu1 %v1804_v4  ;;  %1802 = vmax.xlane.f32.xlu0 %v1801_v12 }
 0x949   :  { %8937 = vrot.lane.b32.xlu1 %v10085_v52, %s9699_s12 }
 0x94e   :  { %8942 = vrot.lane.b32.xlu0 %v10089_v51, %s9699_s12 }
 0x9bc   :  { %v1794_v16 = vpop.xlane.xlu0 %1793 }
 0x9bd   :  { %v1808_v15 = vsub.f32 %v7664_v27, %v1794_v16  ;;  %v1791_v7 = vpop.xlane.xlu1 %1790 }
 0x9be   :  { %v1807_v9 = vsub.f32 %v1760_v31, %v1791_v7 }
 0x9bf   :  { %v1815_v19 = vmul.f32 1.442695, %v1808_v15 }
 0x9c0   :  { %v1813_v10 = vmul.f32 1.442695, %v1807_v9 }
 0x9c1   :  { %9372 = vpow2.f32 %v1815_v19  ;;  %v1800_v5 = vpop.xlane.xlu1 %1799  ;;  %v1797_v55 = vpop.xlane.xlu0 %1796 }
 0x9c2   :  { %9374 = vpow2.f32 %v1813_v10  ;;  %v1809_v6 = vsub.f32 %v1770_v58, %v1797_v55  ;;  %v1810_v4 = vsub.f32 %v7667_v20, %v1800_v5 }
 0x9c4   :  { %v1817_v12 = vmul.f32 1.442695, %v1809_v6  ;;  %v1819_v15 = vmul.f32 1.442695, %v1810_v4 }
 0x9c5   :  { %v1806_v18 = vpop.xlane.xlu1 %1805  ;;  %v1803_v22 = vpop.xlane.xlu0 %1802 }
 0x9c6   :  { %v1812_v16 = vsub.f32 %v7670_v53, %v1806_v18  ;;  %9376 = vpow2.f32 %v1817_v12  ;;  %v1811_v9 = vsub.f32 %v1780_v30, %v1803_v22 }
 0x9c7   :  { %9378 = vpow2.f32 %v1819_v15 }
 0x9c8   :  { %v1823_v7 = vmul.f32 1.442695, %v1812_v16  ;;  %v1821_v19 = vmul.f32 1.442695, %v1811_v9 }
 0x9c9   :  { %v8938_v49 = vpop.permute.xlu1 %8937  ;;  %v8943_v21 = vpop.permute.xlu0 %8942 }
 0x9ca   :  { %v8940_v11 = vunpack.i.h.bf16 %v8938_v49  ;;  %v8939_v23 = vunpack.i.l.bf16 %v8938_v49  ;;  %v8945_v41 = vunpack.i.h.bf16 %v8943_v21  ;;  %v8944_v44 = vunpack.i.l.bf16 %v8943_v21 }
 0x9cb   :  { %v9373_v43 = vpop.eup %9372  ;;  %9380 = vpow2.f32 %v1823_v7 }
 0x9cc   :  { %v9375_v14 = vpop.eup %9374  ;;  %v1828_v27 = vsel %vm337_vm6, %v9373_v43, 0.0  ;;  %v8390_v32 = vpack.c.bf16 %v8940_v11, %v8939_v23  ;;  %v8394_v2 = vpack.c.bf16 %v8945_v41, %v8944_v44  ;;  %9382 = vpow2.f32 %v1821_v19 }
 0x9cd   :  { %1829 = vadd.xlane.f32.xlu1 %v1828_v27  ;;  %v1825_v31 = vsel %vm337_vm6, %v9375_v14, 0.0 }
 0x9ce   :  { %8391 = vmatprep.subr.bf16.mxu1 %v8390_v32  ;;  %1826 = vadd.xlane.f32.xlu0 %v1825_v31 }
 0x9cf   :  { %8393 = vmatpush3.bf16.msra.mxu1 %v8390_v32 }
 0x9d0   :  { %8396 = vmatprep.subr.msk.bf16.mxu1 %vm9861_vm5, %v8394_v2  ;;  %v9377_v10 = vpop.eup %9376 }
 0x9d1   :  { %v9379_v49 = vpop.eup %9378  ;;  %v1831_v21 = vsel %vm337_vm6, %v9377_v10, 0.0 }
 0x9d2   :  { %v1834_v58 = vsel %vm337_vm6, %v9379_v49, 0.0 }
 0x9d3   :  { %8399 = vmatpush3.bf16.msk.msra.mxu1 %vm9861_vm5, %v8394_v2 }
 0x9d5   :  { %v10290_v11 = vpop.eup %9380 }
 0x9d6   :  { %v1840_v20 = vsel %vm337_vm6, %v10290_v11, 0.0  ;;  %v9383_v53 = vpop.eup %9382 }
 0x9d7   :  { %v1837_v30 = vsel %vm337_vm6, %v9383_v53, 0.0 }
 0x9de   :  { %8947 = vrot.lane.b32.xlu1 %v10081_v28, %s9697_s10 }
 0x9e4   :  { %8952 = vrot.lane.b32.xlu0 %v10085_v52, %s9697_s10 }
 0xa02   :  { %1832 = vadd.xlane.f32.xlu1 %v1831_v21 }
 0xa03   :  { %1835 = vadd.xlane.f32.xlu0 %v1834_v58 }
 0xa06   :  { %1841 = vadd.xlane.f32.xlu1 %v1840_v20 }
 0xa0a   :  { %1838 = vadd.xlane.f32.xlu1 %v1837_v30 }
 0xa19   :  { %8957 = vrot.lane.b32.xlu0 %v10089_v51, %s9697_s10 }
 0xa1b   :  { %1987 = vrot.lane.b32.xlu1 %v10055_v56, %s9698_s11 }
 0xa1d   :  { %1989 = vrot.lane.b32.xlu0 %v10051_v54, %s9698_s11 }
 0xa1f   :  { %1991 = vrot.lane.b32.xlu1 %v10063_v1, %s9698_s11 }
 0xa21   :  { %1993 = vrot.lane.b32.xlu0 %v10060_v0, %s9698_s11 }
 0xa23   :  { %1995 = vrot.lane.b32.xlu1 %v10068_v48, %s9698_s11 }
 0xa25   :  { %1997 = vrot.lane.b32.xlu0 %v10065_v8, %s9698_s11 }
 0xa29   :  { %8962 = vrot.lane.b32.xlu0 %v10081_v28, %s9701_s13 }
 0xa5a   :  { %v1830_v5 = vpop.xlane.xlu1 %1829 }
 0xa5b   :  { %9384 = vrcp.f32 %v1830_v5  ;;  %v1827_v55 = vpop.xlane.xlu0 %1826 }
 0xa5c   :  { %9386 = vrcp.f32 %v1827_v55 }
 0xa5e   :  { %v8948_v18 = vpop.permute.xlu1 %8947 }
 0xa5f   :  { %v8950_v22 = vunpack.i.h.bf16 %v8948_v18  ;;  %v8949_v23 = vunpack.i.l.bf16 %v8948_v18  ;;  %v8953_v44 = vpop.permute.xlu0 %8952 }
 0xa60   :  { %v8955_v31 = vunpack.i.h.bf16 %v8953_v44  ;;  %v8954_v2 = vunpack.i.l.bf16 %v8953_v44 }
 0xa61   :  { %v8400_v41 = vpack.c.bf16 %v8950_v22, %v8949_v23 }
 0xa62   :  { %v8406_v12 = vpack.c.bf16 %v8955_v31, %v8954_v2 }
 0xa63   :  { %8402 = vmatprep.subr.msk.bf16.mxu1 %vm9831_vm2, %v8400_v41 }
 0xa65   :  { %v9385_v27 = vpop.eup %9384 }
 0xa66   :  { %v9387_v32 = vpop.eup %9386  ;;  %v1850_v4 = vmul.f32 %v9385_v27, %v9373_v43 }
 0xa67   :  { %v1849_v6 = vmul.f32 %v9387_v32, %v9375_v14 }
 0xa69   :  { %7683 = vmatprep.mubr.msk.f32.mxu1 %vm337_vm6, %v1849_v6 }
 0xa6a   :  { %7684 = vmatmul.mubr.msk.f32.vlgmr.msra.gmra.mrb[24].mxu1 %vm337_vm6, %v1850_v4 }
 0xa6b   :  { %8405 = vmatpush3.bf16.xpose.msk.msra.mxu1 %vm9831_vm2, %v8400_v41 }
 0xa6c   :  { %8408 = vmatprep.subr.msk.bf16.mxu1 %vm9831_vm2, %v8406_v12 }
 0xa73   :  { %8411 = vmatpush3.bf16.xpose.msk.msra.mxu1 %vm9831_vm2, %v8406_v12 }
 0xa8f   :  { %v1833_v16 = vpop.xlane.xlu1 %1832 }
 0xa90   :  { %9388 = vrcp.f32 %v1833_v16  ;;  %v1836_v15 = vpop.xlane.xlu0 %1835 }
 0xa91   :  { %9390 = vrcp.f32 %v1836_v15 }
 0xa93   :  { %v1842_v14 = vpop.xlane.xlu1 %1841 }
 0xa94   :  { %v8958_v43 = vpop.permute.xlu0 %8957  ;;  %9392 = vrcp.f32 %v1842_v14 }
 0xa95   :  { %v8960_v7 = vunpack.i.h.bf16 %v8958_v43  ;;  %v8959_v9 = vunpack.i.l.bf16 %v8958_v43 }
 0xa97   :  { %v8412_v19 = vpack.c.bf16 %v8960_v7, %v8959_v9  ;;  %v1839_v21 = vpop.xlane.xlu1 %1838 }
 0xa98   :  { %9394 = vrcp.f32 %v1839_v21  ;;  %v1990_v58 = vpop.permute.xlu0 %1989 }
 0xa99   :  { %8414 = vmatprep.subr.msk.bf16.mxu1 %vm9831_vm2, %v8412_v19 }
 0xa9a   :  { %v9389_v20 = vpop.eup %9388  ;;  %8417 = vmatpush3.bf16.xpose.msk.msra.mxu1 %vm9831_vm2, %v8412_v19 }
 0xa9b   :  { %v9391_v30 = vpop.eup %9390  ;;  %v1851_v5 = vmul.f32 %v9389_v20, %v9377_v10  ;;  %v1988_v44 = vpop.permute.xlu1 %1987 }
 0xa9c   :  { %v1994_v55 = vpop.permute.xlu0 %1993  ;;  %v1852_v18 = vmul.f32 %v9391_v30, %v9379_v49 }
 0xa9d   :  { %7686 = vmatprep.mubr.msk.f32.mxu1 %vm337_vm6, %v1851_v5 }
 0xa9e   :  { %7687 = vmatmul.mubr.msk.f32.gmra.mrb[26].mxu1 %vm337_vm6, %v1852_v18  ;;  %v9393_v23 = vpop.eup %9392 }
 0xa9f   :  { %v1854_v31 = vmul.f32 %v9393_v23, %v10290_v11  ;;  %v1992_v49 = vpop.permute.xlu1 %1991 }
 0xaa0   :  { %v1998_v22 = vpop.permute.xlu0 %1997 }
 0xaa2   :  { %v9395_v41 = vpop.eup %9394 }
 0xaa3   :  { %v1853_v27 = vmul.f32 %v9395_v41, %v9383_v53  ;;  %v1996_v53 = vpop.permute.xlu1 %1995 }
 0xaa4   :  { %v8963_v32 = vpop.permute.xlu0 %8962 }
 0xaa5   :  { %v8965_v2 = vunpack.i.h.bf16 %v8963_v32  ;;  %v8964_v6 = vunpack.i.l.bf16 %v8963_v32  ;;  %7689 = vmatprep.mubr.msk.f32.mxu1 %vm337_vm6, %v1853_v27 }
 0xaa6   :  { %7690 = vmatmul.mubr.msk.f32.gmra.mrb[28].mxu1 %vm337_vm6, %v1854_v31 }
 0xaa7   :  { %7704 = vmatprep.mubr.msk.f32.mxu1 %vm217_vm1, %v1988_v44  ;;  %v8418_v10 = vpack.c.bf16 %v8965_v2, %v8964_v6 }
 0xaa9   :  { %8419 = vmatprep.subr.bf16.mxu0 %v8418_v10 }
 0xaaa   :  { %7705 = vmatmul.mubr.msk.f32.vlgmr.msra.gmra.mrb[30].mxu1 %vm217_vm1, %v1990_v58  ;;  %8421 = vmatpush3.bf16.msra.mxu0 %v8418_v10 }
 0xaab   :  { %7707 = vmatprep.mubr.msk.f32.mxu1 %vm217_vm1, %v1992_v49 }
 0xaae   :  { %7708 = vmatmul.mubr.msk.f32.gmra.mrb[32].mxu1 %vm217_vm1, %v1994_v55 }
 0xaaf   :  { %7710 = vmatprep.mubr.msk.f32.mxu1 %vm217_vm1, %v1996_v53 }
 0xab2   :  { %7711 = vmatmul.mubr.msk.f32.gmra.mrb[34].mxu1 %vm217_vm1, %v1998_v22 }
 0xb3d   :  { %v10337_v11 = vpop.f32.mrb[24].mxu1 }
 0xb3e   :  { %11805 = vst [vmem:[#allocation5_spill] sm:$0xff] %v10337_v11  ;;  %v10339_v4 = vpop.f32.mrb[25].mxu1 }
 0xb3f   :  { %11806 = vst [vmem:[#allocation6_spill] sm:$0xff] %v10339_v4 }
 0xb71   :  { %v10341_v12 = vpop.f32.mrb[26].mxu1 }
 0xb72   :  { %11807 = vst [vmem:[#allocation7_spill] sm:$0xff] %v10341_v12  ;;  %v10343_v16 = vpop.f32.mrb[27].mxu1 }
 0xb73   :  { %11808 = vst [vmem:[#allocation8_spill] sm:$0xff] %v10343_v16 }
 0xb79   :  { %v10345_v15 = vpop.f32.mrb[28].mxu1 }
 0xb7a   :  { %11809 = vst [vmem:[#allocation9_spill] sm:$0xff] %v10345_v15  ;;  %v10347_v14 = vpop.f32.mrb[29].mxu1 }
 0xb7b   :  { %11810 = vst [vmem:[#allocation10_spill] sm:$0xff] %v10347_v14 }
 0xb7d   :  { %v7706_v43 = vpop.f32.mrb[30].mxu1 }
 0xb7e   :  { %v2101_v7 = vpop.f32.mrb[31].mxu1  ;;  %v2133_v9 = vsel %vm337_vm6, %v7706_v43, -inf }
 0xb7f   :  { %2134 = vmax.xlane.f32.xlu0 %v2133_v9  ;;  %v2130_v19 = vsel %vm337_vm6, %v2101_v7, -inf }
 0xb80   :  { %2131 = vmax.xlane.f32.xlu1 %v2130_v19 }
 0xb81   :  { %v7709_v21 = vpop.f32.mrb[32].mxu1 }
 0xb82   :  { %v2111_v58 = vpop.f32.mrb[33].mxu1  ;;  %v2139_v20 = vsel %vm337_vm6, %v7709_v21, -inf }
 0xb83   :  { %v2136_v30 = vsel %vm337_vm6, %v2111_v58, -inf }
 0xb84   :  { %2140 = vmax.xlane.f32.xlu1 %v2139_v20  ;;  %2137 = vmax.xlane.f32.xlu0 %v2136_v30 }
 0xb85   :  { %v7712_v5 = vpop.f32.mrb[34].mxu1 }
 0xb86   :  { %v2121_v55 = vpop.f32.mrb[35].mxu1  ;;  %v2145_v18 = vsel %vm337_vm6, %v7712_v5, -inf }
 0xb87   :  { %v2142_v22 = vsel %vm337_vm6, %v2121_v55, -inf }
 0xb88   :  { %2146 = vmax.xlane.f32.xlu1 %v2145_v18  ;;  %2143 = vmax.xlane.f32.xlu0 %v2142_v22 }
 0xb99   :  { %8967 = vrot.lane.b32.xlu1 %v10085_v52, %s9701_s13 }
 0xb9e   :  { %8972 = vrot.lane.b32.xlu0 %v10089_v51, %s9701_s13 }
 0xc0c   :  { %v2135_v23 = vpop.xlane.xlu0 %2134 }
 0xc0d   :  { %v2149_v41 = vsub.f32 %v7706_v43, %v2135_v23  ;;  %v2132_v44 = vpop.xlane.xlu1 %2131 }
 0xc0e   :  { %v2148_v27 = vsub.f32 %v2101_v7, %v2132_v44 }
 0xc0f   :  { %v2156_v32 = vmul.f32 1.442695, %v2149_v41 }
 0xc10   :  { %v2154_v31 = vmul.f32 1.442695, %v2148_v27 }
 0xc11   :  { %9396 = vpow2.f32 %v2156_v32  ;;  %v2141_v2 = vpop.xlane.xlu1 %2140  ;;  %v2138_v6 = vpop.xlane.xlu0 %2137 }
 0xc12   :  { %9398 = vpow2.f32 %v2154_v31  ;;  %v2150_v44 = vsub.f32 %v2111_v58, %v2138_v6  ;;  %v2151_v27 = vsub.f32 %v7709_v21, %v2141_v2 }
 0xc14   :  { %v2158_v32 = vmul.f32 1.442695, %v2150_v44 }
 0xc15   :  { %v2147_v10 = vpop.xlane.xlu1 %2146  ;;  %v2144_v49 = vpop.xlane.xlu0 %2143 }
 0xc16   :  { %v2153_v31 = vsub.f32 %v7712_v5, %v2147_v10  ;;  %9400 = vpow2.f32 %v2158_v32 }
 0xc19   :  { %v8968_v53 = vpop.permute.xlu1 %8967  ;;  %v8973_v9 = vpop.permute.xlu0 %8972 }
 0xc1a   :  { %v8970_v19 = vunpack.i.h.bf16 %v8968_v53  ;;  %v8969_v20 = vunpack.i.l.bf16 %v8968_v53  ;;  %v8975_v30 = vunpack.i.h.bf16 %v8973_v9  ;;  %v8974_v22 = vunpack.i.l.bf16 %v8973_v9 }
 0xc1b   :  { %v10359_v18 = vpop.eup %9396  ;;  %v2160_v53 = vmul.f32 1.442695, %v2151_v27  ;;  %v2164_v9 = vmul.f32 1.442695, %v2153_v31 }
 0xc1c   :  { %v9399_v15 = vpop.eup %9398  ;;  %v2169_v43 = vsel %vm337_vm6, %v10359_v18, 0.0  ;;  %v8422_v7 = vpack.c.bf16 %v8970_v19, %v8969_v20  ;;  %v8426_v41 = vpack.c.bf16 %v8975_v30, %v8974_v22  ;;  %v2152_v19 = vsub.f32 %v2121_v55, %v2144_v49 }
 0xc1d   :  { %2170 = vadd.xlane.f32.xlu1 %v2169_v43  ;;  %v2166_v23 = vsel %vm337_vm6, %v9399_v15, 0.0  ;;  %9402 = vpow2.f32 %v2160_v53 }
 0xc1e   :  { %8423 = vmatprep.subr.bf16.mxu0 %v8422_v7  ;;  %2167 = vadd.xlane.f32.xlu0 %v2166_v23  ;;  %9404 = vpow2.f32 %v2164_v9  ;;  %v2162_v20 = vmul.f32 1.442695, %v2152_v19 }
 0xc1f   :  { %8425 = vmatpush3.bf16.msra.mxu0 %v8422_v7 }
 0xc20   :  { %8428 = vmatprep.subr.msk.bf16.mxu0 %vm9861_vm5, %v8426_v41  ;;  %9406 = vpow2.f32 %v2162_v20  ;;  %v9401_v30 = vpop.eup %9400 }
 0xc21   :  { %v2172_v43 = vsel %vm337_vm6, %v9401_v30, 0.0 }
 0xc23   :  { %8431 = vmatpush3.bf16.msk.msra.mxu0 %vm9861_vm5, %v8426_v41 }
 0xc27   :  { %v9403_v22 = vpop.eup %9402 }
 0xc28   :  { %v10373_v7 = vpop.eup %9404  ;;  %v2175_v58 = vsel %vm337_vm6, %v9403_v22, 0.0 }
 0xc29   :  { %v2181_v21 = vsel %vm337_vm6, %v10373_v7, 0.0 }
 0xc2a   :  { %v10378_v5 = vpop.eup %9406 }
 0xc2b   :  { %v2178_v55 = vsel %vm337_vm6, %v10378_v5, 0.0 }
 0xc2e   :  { %8977 = vrot.lane.b32.xlu1 %v10081_v28, %s9702_s26 }
 0xc34   :  { %8982 = vrot.lane.b32.xlu0 %v10085_v52, %s9702_s26 }
 0xc52   :  { %2173 = vadd.xlane.f32.xlu1 %v2172_v43 }
 0xc53   :  { %2176 = vadd.xlane.f32.xlu0 %v2175_v58 }
 0xc56   :  { %2182 = vadd.xlane.f32.xlu1 %v2181_v21 }
 0xc5a   :  { %2179 = vadd.xlane.f32.xlu1 %v2178_v55 }
 0xc69   :  { %8987 = vrot.lane.b32.xlu0 %v10089_v51, %s9702_s26 }
 0xc6b   :  { %2328 = vrot.lane.b32.xlu1 %v10055_v56, %s9703_s27 }
 0xc6d   :  { %2330 = vrot.lane.b32.xlu0 %v10051_v54, %s9703_s27 }
 0xc6f   :  { %2332 = vrot.lane.b32.xlu1 %v10063_v1, %s9703_s27 }
 0xc71   :  { %2334 = vrot.lane.b32.xlu0 %v10060_v0, %s9703_s27 }
 0xc73   :  { %2336 = vrot.lane.b32.xlu1 %v10068_v48, %s9703_s27 }
 0xc75   :  { %2338 = vrot.lane.b32.xlu0 %v10065_v8, %s9703_s27 }
 0xc77   :  { %8997 = vrot.lane.b32.xlu1 %v10085_v52, %s9704_s28 }
 0xc79   :  { %8992 = vrot.lane.b32.xlu0 %v10081_v28, %s9704_s28 }
 0xcaa   :  { %v2171_v2 = vpop.xlane.xlu1 %2170 }
 0xcab   :  { %9408 = vrcp.f32 %v2171_v2  ;;  %v2168_v6 = vpop.xlane.xlu0 %2167 }
 0xcac   :  { %9410 = vrcp.f32 %v2168_v6 }
 0xcae   :  { %v8978_v10 = vpop.permute.xlu1 %8977 }
 0xcaf   :  { %v8980_v49 = vunpack.i.h.bf16 %v8978_v10  ;;  %v8979_v23 = vunpack.i.l.bf16 %v8978_v10  ;;  %v8983_v44 = vpop.permute.xlu0 %8982 }
 0xcb0   :  { %v8985_v31 = vunpack.i.h.bf16 %v8983_v44  ;;  %v8984_v53 = vunpack.i.l.bf16 %v8983_v44 }
 0xcb1   :  { %v8432_v41 = vpack.c.bf16 %v8980_v49, %v8979_v23 }
 0xcb2   :  { %v8438_v20 = vpack.c.bf16 %v8985_v31, %v8984_v53 }
 0xcb3   :  { %8434 = vmatprep.subr.msk.bf16.mxu0 %vm9831_vm2, %v8432_v41 }
 0xcb5   :  { %v9409_v27 = vpop.eup %9408 }
 0xcb6   :  { %v9411_v32 = vpop.eup %9410  ;;  %v2191_v19 = vmul.f32 %v9409_v27, %v10359_v18 }
 0xcb7   :  { %v2190_v9 = vmul.f32 %v9411_v32, %v9399_v15 }
 0xcb9   :  { %7725 = vmatprep.mubr.msk.f32.mxu0 %vm337_vm6, %v2190_v9 }
 0xcba   :  { %7726 = vmatmul.mubr.msk.f32.vlgmr.msra.gmra.mrb[42].mxu0 %vm337_vm6, %v2191_v19 }
 0xcbb   :  { %8437 = vmatpush3.bf16.xpose.msk.msra.mxu0 %vm9831_vm2, %v8432_v41 }
 0xcbc   :  { %8440 = vmatprep.subr.msk.bf16.mxu0 %vm9831_vm2, %v8438_v20 }
 0xcc3   :  { %8443 = vmatpush3.bf16.xpose.msk.msra.mxu0 %vm9831_vm2, %v8438_v20 }
 0xcdf   :  { %v2174_v43 = vpop.xlane.xlu1 %2173 }
 0xce0   :  { %9412 = vrcp.f32 %v2174_v43  ;;  %v2177_v58 = vpop.xlane.xlu0 %2176 }
 0xce1   :  { %9414 = vrcp.f32 %v2177_v58 }
 0xce3   :  { %v2183_v15 = vpop.xlane.xlu1 %2182 }
 0xce4   :  { %v8988_v18 = vpop.permute.xlu0 %8987  ;;  %9416 = vrcp.f32 %v2183_v15 }
 0xce5   :  { %v8990_v21 = vunpack.i.h.bf16 %v8988_v18  ;;  %v8989_v55 = vunpack.i.l.bf16 %v8988_v18 }
 0xce7   :  { %v8444_v2 = vpack.c.bf16 %v8990_v21, %v8989_v55  ;;  %v2180_v6 = vpop.xlane.xlu1 %2179 }
 0xce8   :  { %9418 = vrcp.f32 %v2180_v6  ;;  %v2331_v10 = vpop.permute.xlu0 %2330 }
 0xce9   :  { %8446 = vmatprep.subr.msk.bf16.mxu0 %vm9831_vm2, %v8444_v2 }
 0xcea   :  { %v9413_v49 = vpop.eup %9412  ;;  %8449 = vmatpush3.bf16.xpose.msk.msra.mxu0 %vm9831_vm2, %v8444_v2 }
 0xceb   :  { %v9415_v23 = vpop.eup %9414  ;;  %v2329_v41 = vpop.permute.xlu1 %2328  ;;  %v2192_v44 = vmul.f32 %v9413_v49, %v9401_v30 }
 0xcec   :  { %v2335_v27 = vpop.permute.xlu0 %2334  ;;  %v2193_v32 = vmul.f32 %v9415_v23, %v9403_v22 }
 0xced   :  { %7728 = vmatprep.mubr.msk.f32.mxu0 %vm337_vm6, %v2192_v44 }
 0xcee   :  { %7729 = vmatmul.mubr.msk.f32.gmra.mrb[44].mxu0 %vm337_vm6, %v2193_v32  ;;  %v9417_v9 = vpop.eup %9416 }
 0xcef   :  { %v2333_v31 = vpop.permute.xlu1 %2332  ;;  %v2195_v15 = vmul.f32 %v9417_v9, %v10373_v7 }
 0xcf0   :  { %v2339_v53 = vpop.permute.xlu0 %2338 }
 0xcf2   :  { %v9419_v19 = vpop.eup %9418 }
 0xcf3   :  { %v2337_v20 = vpop.permute.xlu1 %2336  ;;  %v2194_v43 = vmul.f32 %v9419_v19, %v10378_v5 }
 0xcf4   :  { %v8993_v58 = vpop.permute.xlu0 %8992 }
 0xcf5   :  { %v8995_v18 = vunpack.i.h.bf16 %v8993_v58  ;;  %v8994_v21 = vunpack.i.l.bf16 %v8993_v58  ;;  %7731 = vmatprep.mubr.msk.f32.mxu0 %vm337_vm6, %v2194_v43 }
 0xcf6   :  { %7732 = vmatmul.mubr.msk.f32.gmra.mrb[46].mxu0 %vm337_vm6, %v2195_v15 }
 0xcf7   :  { %v8998_v30 = vpop.permute.xlu1 %8997  ;;  %7746 = vmatprep.mubr.msk.f32.mxu0 %vm217_vm1, %v2329_v41  ;;  %v8450_v22 = vpack.c.bf16 %v8995_v18, %v8994_v21 }
 0xcf8   :  { %v9000_v55 = vunpack.i.h.bf16 %v8998_v30  ;;  %v8999_v2 = vunpack.i.l.bf16 %v8998_v30 }
 0xcf9   :  { %8451 = vmatprep.subr.bf16.mxu1 %v8450_v22 }
 0xcfa   :  { %7747 = vmatmul.mubr.msk.f32.vlgmr.msra.gmra.mrb[48].mxu0 %vm217_vm1, %v2331_v10  ;;  %8453 = vmatpush3.bf16.msra.mxu1 %v8450_v22  ;;  %v8454_v5 = vpack.c.bf16 %v9000_v55, %v8999_v2 }
 0xcfb   :  { %7749 = vmatprep.mubr.msk.f32.mxu0 %vm217_vm1, %v2333_v31 }
 0xcfc   :  { %8455 = vmatprep.subr.bf16.mxu1 %v8454_v5 }
 0xcfe   :  { %7750 = vmatmul.mubr.msk.f32.gmra.mrb[50].mxu0 %vm217_vm1, %v2335_v27  ;;  %8457 = vmatpush3.bf16.msra.mxu1 %v8454_v5 }
 0xcff   :  { %7752 = vmatprep.mubr.msk.f32.mxu0 %vm217_vm1, %v2337_v20 }
 0xd02   :  { %7753 = vmatmul.mubr.msk.f32.gmra.mrb[52].mxu0 %vm217_vm1, %v2339_v53 }
 0xd8d   :  { %v10427_v7 = vpop.f32.mrb[42].mxu0 }
 0xd8e   :  { %v10429_v6 = vpop.f32.mrb[43].mxu0 }
 0xdc1   :  { %v10431_v49 = vpop.f32.mrb[44].mxu0 }
 0xdc2   :  { %v10433_v23 = vpop.f32.mrb[45].mxu0 }
 0xdc9   :  { %v10435_v10 = vpop.f32.mrb[46].mxu0 }
 0xdca   :  { %11811 = vst [vmem:[#allocation11_spill] sm:$0xff] %v10435_v10  ;;  %v10437_v41 = vpop.f32.mrb[47].mxu0 }
 0xdcd   :  { %v7748_v44 = vpop.f32.mrb[48].mxu0 }
 0xdce   :  { %v2442_v32 = vpop.f32.mrb[49].mxu0  ;;  %v2474_v27 = vsel %vm337_vm6, %v7748_v44, -inf }
 0xdcf   :  { %2475 = vmax.xlane.f32.xlu0 %v2474_v27  ;;  %v2471_v31 = vsel %vm337_vm6, %v2442_v32, -inf }
 0xdd0   :  { %2472 = vmax.xlane.f32.xlu1 %v2471_v31 }
 0xdd1   :  { %v7751_v53 = vpop.f32.mrb[50].mxu0 }
 0xdd2   :  { %v2452_v9 = vpop.f32.mrb[51].mxu0  ;;  %v2480_v19 = vsel %vm337_vm6, %v7751_v53, -inf }
 0xdd3   :  { %v2477_v20 = vsel %vm337_vm6, %v2452_v9, -inf }
 0xdd4   :  { %2481 = vmax.xlane.f32.xlu1 %v2480_v19  ;;  %2478 = vmax.xlane.f32.xlu0 %v2477_v20 }
 0xdd5   :  { %v7754_v43 = vpop.f32.mrb[52].mxu0 }
 0xdd6   :  { %v2462_v58 = vpop.f32.mrb[53].mxu0  ;;  %v2486_v15 = vsel %vm337_vm6, %v7754_v43, -inf }
 0xdd7   :  { %v2483_v18 = vsel %vm337_vm6, %v2462_v58, -inf }
 0xdd8   :  { %2487 = vmax.xlane.f32.xlu1 %v2486_v15  ;;  %2484 = vmax.xlane.f32.xlu0 %v2483_v18 }
 0xde9   :  { %9007 = vrot.lane.b32.xlu1 %v10081_v28, %s9705_s29 }
 0xdee   :  { %9002 = vrot.lane.b32.xlu0 %v10089_v51, %s9704_s28 }
 0xe5c   :  { %v2476_v21 = vpop.xlane.xlu0 %2475 }
 0xe5d   :  { %v2490_v30 = vsub.f32 %v7748_v44, %v2476_v21  ;;  %v2473_v22 = vpop.xlane.xlu1 %2472 }
 0xe5e   :  { %v2489_v55 = vsub.f32 %v2442_v32, %v2473_v22 }
 0xe5f   :  { %v2497_v2 = vmul.f32 1.442695, %v2490_v30 }
 0xe60   :  { %v2495_v5 = vmul.f32 1.442695, %v2489_v55 }
 0xe61   :  { %9420 = vpow2.f32 %v2497_v2  ;;  %v2482_v27 = vpop.xlane.xlu1 %2481  ;;  %v2479_v31 = vpop.xlane.xlu0 %2478 }
 0xe62   :  { %9422 = vpow2.f32 %v2495_v5 }
 0xe65   :  { %v2488_v19 = vpop.xlane.xlu1 %2487  ;;  %v2485_v20 = vpop.xlane.xlu0 %2484 }
 0xe66   :  { %v2494_v55 = vsub.f32 %v7754_v43, %v2488_v19  ;;  %v2493_v2 = vsub.f32 %v2462_v58, %v2485_v20 }
 0xe68   :  { %v2503_v5 = vmul.f32 1.442695, %v2493_v2 }
 0xe69   :  { %v9008_v15 = vpop.permute.xlu1 %9007  ;;  %v9003_v18 = vpop.permute.xlu0 %9002 }
 0xe6a   :  { %v9005_v14 = vunpack.i.h.bf16 %v9003_v18  ;;  %v9010_v16 = vunpack.i.h.bf16 %v9008_v15  ;;  %v9009_v10 = vunpack.i.l.bf16 %v9008_v15  ;;  %v9004_v11 = vunpack.i.l.bf16 %v9003_v18 }
 0xe6b   :  { %v9421_v12 = vpop.eup %9420 }
 0xe6c   :  { %v9423_v4 = vpop.eup %9422  ;;  %v2510_v44 = vsel %vm337_vm6, %v9421_v12, 0.0  ;;  %v8458_v21 = vpack.c.bf16 %v9005_v14, %v9004_v11  ;;  %v8464_v30 = vpack.c.bf16 %v9010_v16, %v9009_v10  ;;  %v2491_v11 = vsub.f32 %v2452_v9, %v2479_v31 }
 0xe6d   :  { %2511 = vadd.xlane.f32.xlu1 %v2510_v44  ;;  %v2507_v32 = vsel %vm337_vm6, %v9423_v4, 0.0  ;;  %v2492_v14 = vsub.f32 %v7751_v53, %v2482_v27  ;;  %v2505_v10 = vmul.f32 1.442695, %v2494_v55 }
 0xe6e   :  { %2508 = vadd.xlane.f32.xlu0 %v2507_v32  ;;  %8460 = vmatprep.subr.msk.bf16.mxu1 %vm9861_vm5, %v8458_v21  ;;  %v2499_v22 = vmul.f32 1.442695, %v2491_v11 }
 0xe6f   :  { %8463 = vmatpush3.bf16.msk.msra.mxu1 %vm9861_vm5, %v8458_v21  ;;  %v2501_v16 = vmul.f32 1.442695, %v2492_v14 }
 0xe70   :  { %8466 = vmatprep.subr.msk.bf16.mxu1 %vm9831_vm2, %v8464_v30  ;;  %9424 = vpow2.f32 %v2499_v22 }
 0xe71   :  { %9426 = vpow2.f32 %v2501_v16 }
 0xe72   :  { %9428 = vpow2.f32 %v2505_v10 }
 0xe73   :  { %9430 = vpow2.f32 %v2503_v5 }
 0xe7a   :  { %v9425_v15 = vpop.eup %9424 }
 0xe7b   :  { %v9427_v18 = vpop.eup %9426  ;;  %v2513_v44 = vsel %vm337_vm6, %v9425_v15, 0.0 }
 0xe7c   :  { %v2516_v21 = vsel %vm337_vm6, %v9427_v18, 0.0 }
 0xe7e   :  { %2669 = vrot.lane.b32.xlu1 %v10055_v56, %s9706_s30  ;;  %v9429_v56 = vpop.eup %9428 }
 0xe7f   :  { %v2522_v53 = vsel %vm337_vm6, %v9429_v56, 0.0  ;;  %v9431_v9 = vpop.eup %9430 }
 0xe80   :  { %v2519_v43 = vsel %vm337_vm6, %v9431_v9, 0.0 }
 0xe84   :  { %9012 = vrot.lane.b32.xlu0 %v10085_v52, %s9705_s29 }
 0xea2   :  { %2514 = vadd.xlane.f32.xlu1 %v2513_v44 }
 0xea3   :  { %2517 = vadd.xlane.f32.xlu0 %v2516_v21 }
 0xea6   :  { %2523 = vadd.xlane.f32.xlu1 %v2522_v53 }
 0xeaa   :  { %2520 = vadd.xlane.f32.xlu1 %v2519_v43 }
 0xeb9   :  { %9017 = vrot.lane.b32.xlu0 %v10089_v51, %s9705_s29 }
 0xebb   :  { %2673 = vrot.lane.b32.xlu1 %v10063_v1, %s9706_s30 }
 0xebd   :  { %2671 = vrot.lane.b32.xlu0 %v10051_v54, %s9706_s30 }
 0xebf   :  { %2677 = vrot.lane.b32.xlu1 %v10068_v48, %s9706_s30 }
 0xec1   :  { %2675 = vrot.lane.b32.xlu0 %v10060_v0, %s9706_s30 }
 0xec5   :  { %2679 = vrot.lane.b32.xlu0 %v10065_v8, %s9706_s30 }
 0xefa   :  { %v2512_v58 = vpop.xlane.xlu1 %2511 }
 0xefb   :  { %9432 = vrcp.f32 %v2512_v58  ;;  %v2509_v27 = vpop.xlane.xlu0 %2508 }
 0xefc   :  { %9434 = vrcp.f32 %v2509_v27 }
 0xefe   :  { %v2670_v0 = vpop.permute.xlu1 %2669 }
 0xeff   :  { %v9013_v31 = vpop.permute.xlu0 %9012 }
 0xf00   :  { %v9015_v1 = vunpack.i.h.bf16 %v9013_v31  ;;  %v9014_v32 = vunpack.i.l.bf16 %v9013_v31 }
 0xf02   :  { %v8470_v48 = vpack.c.bf16 %v9015_v1, %v9014_v32 }
 0xf05   :  { %v9433_v19 = vpop.eup %9432 }
 0xf06   :  { %v9435_v20 = vpop.eup %9434  ;;  %v2532_v54 = vmul.f32 %v9433_v19, %v9421_v12 }
 0xf07   :  { %v2531_v11 = vmul.f32 %v9435_v20, %v9423_v4 }
 0xf09   :  { %7767 = vmatprep.mubr.msk.f32.mxu1 %vm337_vm6, %v2531_v11 }
 0xf0a   :  { %7768 = vmatmul.mubr.msk.f32.vlgmr.msra.gmra.mrb[36].mxu1 %vm337_vm6, %v2532_v54 }
 0xf0b   :  { %8469 = vmatpush3.bf16.xpose.msk.msra.mxu1 %vm9831_vm2, %v8464_v30 }
 0xf0c   :  { %8472 = vmatprep.subr.msk.bf16.mxu1 %vm9831_vm2, %v8470_v48 }
 0xf13   :  { %8475 = vmatpush3.bf16.xpose.msk.msra.mxu1 %vm9831_vm2, %v8470_v48 }
 0xf2f   :  { %v2515_v8 = vpop.xlane.xlu1 %2514 }
 0xf30   :  { %9436 = vrcp.f32 %v2515_v8  ;;  %v2518_v14 = vpop.xlane.xlu0 %2517 }
 0xf31   :  { %9438 = vrcp.f32 %v2518_v14 }
 0xf33   :  { %v2524_v4 = vpop.xlane.xlu1 %2523 }
 0xf34   :  { %v9018_v12 = vpop.permute.xlu0 %9017  ;;  %9440 = vrcp.f32 %v2524_v4 }
 0xf35   :  { %v9020_v22 = vunpack.i.h.bf16 %v9018_v12  ;;  %v9019_v55 = vunpack.i.l.bf16 %v9018_v12 }
 0xf37   :  { %v8476_v16 = vpack.c.bf16 %v9020_v22, %v9019_v55  ;;  %v2521_v10 = vpop.xlane.xlu1 %2520 }
 0xf38   :  { %9442 = vrcp.f32 %v2521_v10  ;;  %v2672_v27 = vpop.permute.xlu0 %2671 }
 0xf39   :  { %8478 = vmatprep.subr.msk.bf16.mxu1 %vm9831_vm2, %v8476_v16 }
 0xf3a   :  { %v9437_v30 = vpop.eup %9436  ;;  %8481 = vmatpush3.bf16.xpose.msk.msra.mxu1 %vm9831_vm2, %v8476_v16 }
 0xf3b   :  { %v9439_v2 = vpop.eup %9438  ;;  %v2533_v5 = vmul.f32 %v9437_v30, %v9425_v15  ;;  %v2674_v31 = vpop.permute.xlu1 %2673 }
 0xf3c   :  { %v2534_v44 = vmul.f32 %v9439_v2, %v9427_v18  ;;  %v2676_v15 = vpop.permute.xlu0 %2675 }
 0xf3d   :  { %7770 = vmatprep.mubr.msk.f32.mxu1 %vm337_vm6, %v2533_v5 }
 0xf3e   :  { %7771 = vmatmul.mubr.msk.f32.gmra.mrb[38].mxu1 %vm337_vm6, %v2534_v44  ;;  %v9441_v21 = vpop.eup %9440 }
 0xf3f   :  { %v2536_v58 = vmul.f32 %v9441_v21, %v9429_v56  ;;  %v2678_v18 = vpop.permute.xlu1 %2677 }
 0xf42   :  { %v9443_v53 = vpop.eup %9442 }
 0xf43   :  { %v2535_v43 = vmul.f32 %v9443_v53, %v9431_v9  ;;  %v2680_v9 = vpop.permute.xlu0 %2679 }
 0xf45   :  { %7773 = vmatprep.mubr.msk.f32.mxu1 %vm337_vm6, %v2535_v43 }
 0xf46   :  { %7774 = vmatmul.mubr.msk.f32.gmra.mrb[40].mxu1 %vm337_vm6, %v2536_v58 }
 0xf47   :  { %7788 = vmatprep.mubr.msk.f32.mxu1 %vm217_vm1, %v2670_v0 }
 0xf4a   :  { %7789 = vmatmul.mubr.msk.f32.vlgmr.msra.gmra.mrb[42].mxu1 %vm217_vm1, %v2672_v27 }
 0xf4b   :  { %7791 = vmatprep.mubr.msk.f32.mxu1 %vm217_vm1, %v2674_v31 }
 0xf4e   :  { %7792 = vmatmul.mubr.msk.f32.gmra.mrb[44].mxu1 %vm217_vm1, %v2676_v15 }
 0xf4f   :  { %7794 = vmatprep.mubr.msk.f32.mxu1 %vm217_vm1, %v2678_v18 }
 0xf52   :  { %7795 = vmatmul.mubr.msk.f32.gmra.mrb[46].mxu1 %vm217_vm1, %v2680_v9 }
 0xfdd   :  { %v10499_v56 = vpop.f32.mrb[36].mxu1 }
 0xfde   :  { %v10501_v19 = vpop.f32.mrb[37].mxu1 }
0x1011   :  { %v10503_v20 = vpop.f32.mrb[38].mxu1 }
0x1012   :  { %v10505_v1 = vpop.f32.mrb[39].mxu1 }
0x1019   :  { %v10507_v32 = vpop.f32.mrb[40].mxu1 }
0x101a   :  { %v10509_v11 = vpop.f32.mrb[41].mxu1 }
0x101d   :  { %v7790_v54 = vpop.f32.mrb[42].mxu1 }
0x101e   :  { %v2783_v48 = vpop.f32.mrb[43].mxu1  ;;  %v2815_v0 = vsel %vm337_vm6, %v7790_v54, -inf }
0x101f   :  { %2816 = vmax.xlane.f32.xlu0 %v2815_v0  ;;  %v2812_v8 = vsel %vm337_vm6, %v2783_v48, -inf }
0x1020   :  { %2813 = vmax.xlane.f32.xlu1 %v2812_v8 }
0x1021   :  { %v7793_v14 = vpop.f32.mrb[44].mxu1 }
0x1022   :  { %v2793_v4 = vpop.f32.mrb[45].mxu1  ;;  %v2821_v12 = vsel %vm337_vm6, %v7793_v14, -inf }
0x1023   :  { %v2818_v22 = vsel %vm337_vm6, %v2793_v4, -inf }
0x1024   :  { %2822 = vmax.xlane.f32.xlu1 %v2821_v12  ;;  %2819 = vmax.xlane.f32.xlu0 %v2818_v22 }
0x1025   :  { %v7796_v55 = vpop.f32.mrb[46].mxu1 }
0x1026   :  { %v2803_v16 = vpop.f32.mrb[47].mxu1  ;;  %v2827_v10 = vsel %vm337_vm6, %v7796_v55, -inf }
0x1027   :  { %v2824_v30 = vsel %vm337_vm6, %v2803_v16, -inf }
0x1028   :  { %2828 = vmax.xlane.f32.xlu1 %v2827_v10  ;;  %2825 = vmax.xlane.f32.xlu0 %v2824_v30 }
0x1039   :  { %9027 = vrot.lane.b32.xlu1 %v10085_v52, %s9707_s5 }
0x103d   :  { %9032 = vrot.lane.b32.xlu1 %v10089_v51, %s9707_s5 }
0x103e   :  { %9022 = vrot.lane.b32.xlu0 %v10081_v28, %s9707_s5 }
0x1041   :  { %1568 = vrot.lane.b32.xlu1 %v10103_v36, %s9708_s6 }
0x1042   :  { %1566 = vrot.lane.b32.xlu0 %v10105_v37, %s9708_s6 }
0x1045   :  { %1592 = vrot.lane.b32.xlu1 %v10185_v60, %s9709_s7 }
0x1046   :  { %1590 = vrot.lane.b32.xlu0 %v10187_v29, %s9709_s7 }
0x1049   :  { %1616 = vrot.lane.b32.xlu1 %v10257_v50, %s9710_s8 }
0x104a   :  { %1614 = vrot.lane.b32.xlu0 %v10259_v42, %s9710_s8 }
0x104d   :  { %1572 = vrot.lane.b32.xlu1 %v10107_v57, %s9708_s6 }
0x104e   :  { %1570 = vrot.lane.b32.xlu0 %v10109_v38, %s9708_s6 }
0x10ac   :  { %v2817_v28 = vpop.xlane.xlu0 %2816 }
0x10ad   :  { %v2831_v52 = vsub.f32 %v7790_v54, %v2817_v28  ;;  %v2814_v51 = vpop.xlane.xlu1 %2813 }
0x10ae   :  { %v2830_v36 = vsub.f32 %v2783_v48, %v2814_v51 }
0x10af   :  { %v2838_v37 = vmul.f32 1.442695, %v2831_v52 }
0x10b0   :  { %v2836_v60 = vmul.f32 1.442695, %v2830_v36 }
0x10b1   :  { %9444 = vpow2.f32 %v2838_v37  ;;  %v2823_v29 = vpop.xlane.xlu1 %2822  ;;  %v2820_v2 = vpop.xlane.xlu0 %2819 }
0x10b2   :  { %9446 = vpow2.f32 %v2836_v60  ;;  %v2833_v50 = vsub.f32 %v7793_v14, %v2823_v29  ;;  %v2832_v5 = vsub.f32 %v2793_v4, %v2820_v2  ;;  %v33_v2 = vld [vmem:[%s11786_s2] sm:$0xff] }
0x10b4   :  { %v2842_v44 = vmul.f32 1.442695, %v2833_v50  ;;  %v2840_v42 = vmul.f32 1.442695, %v2832_v5  ;;  %v34_v50 = vld [vmem:[%s11786_s2 + $0x8] sm:$0xff] }
0x10b5   :  { %v2829_v21 = vpop.xlane.xlu1 %2828  ;;  %v2826_v53 = vpop.xlane.xlu0 %2825  ;;  %v8496_v5 = vpack.c.bf16 %v34_v50, %v33_v2 }
0x10b6   :  { %9448 = vpow2.f32 %v2842_v44  ;;  %v2835_v57 = vsub.f32 %v7796_v55, %v2829_v21  ;;  %v2834_v43 = vsub.f32 %v2803_v16, %v2826_v53  ;;  %v36_v44 = vld [vmem:[%s11786_s2 + $0x18] sm:$0xff] }
0x10b7   :  { %9450 = vpow2.f32 %v2840_v42 }
0x10b8   :  { %v2846_v38 = vmul.f32 1.442695, %v2835_v57  ;;  %v2844_v58 = vmul.f32 1.442695, %v2834_v43 }
0x10b9   :  { %v9028_v27 = vpop.permute.xlu1 %9027  ;;  %v9023_v31 = vpop.permute.xlu0 %9022 }
0x10ba   :  { %9452 = vpow2.f32 %v2846_v38  ;;  %v9025_v15 = vunpack.i.h.bf16 %v9023_v31  ;;  %v9030_v9 = vunpack.i.h.bf16 %v9028_v27  ;;  %v9029_v54 = vunpack.i.l.bf16 %v9028_v27 }
0x10bb   :  { %v10539_v18 = vpop.eup %9444  ;;  %9454 = vpow2.f32 %v2844_v58  ;;  %v9024_v48 = vunpack.i.l.bf16 %v9023_v31 }
0x10bc   :  { %v10541_v0 = vpop.eup %9446  ;;  %v2851_v8 = vsel %vm337_vm6, %v10539_v18, 0.0  ;;  %v8486_v16 = vpack.c.bf16 %v9030_v9, %v9029_v54 }
0x10bd   :  { %2852 = vadd.xlane.f32.xlu1 %v2851_v8  ;;  %v9033_v14 = vpop.permute.xlu1 %9032  ;;  %v2848_v4 = vsel %vm337_vm6, %v10541_v0, 0.0  ;;  %v8482_v12 = vpack.c.bf16 %v9025_v15, %v9024_v48 }
0x10be   :  { %2849 = vadd.xlane.f32.xlu0 %v2848_v4  ;;  %v9035_v22 = vunpack.i.h.bf16 %v9033_v14  ;;  %v9034_v55 = vunpack.i.l.bf16 %v9033_v14 }
0x10bf   :  { %8483 = vmatprep.subr.bf16.mxu0 %v8482_v12 }
0x10c0   :  { %v10547_v10 = vpop.eup %9448  ;;  %8485 = vmatpush3.bf16.msra.mxu0 %v8482_v12  ;;  %v8490_v51 = vpack.c.bf16 %v9035_v22, %v9034_v55 }
0x10c1   :  { %v10549_v30 = vpop.eup %9450  ;;  %8487 = vmatprep.subr.bf16.mxu0 %v8486_v16  ;;  %v2857_v28 = vsel %vm337_vm6, %v10547_v10, 0.0 }
0x10c2   :  { %2858 = vadd.xlane.f32.xlu1 %v2857_v28  ;;  %v2854_v52 = vsel %vm337_vm6, %v10549_v30, 0.0 }
0x10c3   :  { %2855 = vadd.xlane.f32.xlu0 %v2854_v52 }
0x10c4   :  { %v10555_v36 = vpop.eup %9452  ;;  %8489 = vmatpush3.bf16.msra.mxu0 %v8486_v16 }
0x10c5   :  { %v10557_v37 = vpop.eup %9454  ;;  %8492 = vmatprep.subr.msk.bf16.mxu0 %vm9861_vm5, %v8490_v51  ;;  %v2863_v60 = vsel %vm337_vm6, %v10555_v36, 0.0 }
0x10c6   :  { %2864 = vadd.xlane.f32.xlu1 %v2863_v60  ;;  %v2860_v29 = vsel %vm337_vm6, %v10557_v37, 0.0 }
0x10c7   :  { %2861 = vadd.xlane.f32.xlu0 %v2860_v29 }
0x10c8   :  { %8495 = vmatpush3.bf16.msk.msra.mxu0 %vm9861_vm5, %v8490_v51 }
0x10c9   :  { %8497 = vmatprep.subr.bf16.mxu0 %v8496_v5 }
0x10d7   :  { %1596 = vrot.lane.b32.xlu1 %v10189_v61, %s9709_s7 }
0x10db   :  { %1620 = vrot.lane.b32.xlu1 %v10261_v45, %s9710_s8 }
0x10dd   :  { %1594 = vrot.lane.b32.xlu0 %v10191_v63, %s9709_s7 }
0x10df   :  { %1576 = vrot.lane.b32.xlu1 %v10111_v39, %s9708_s6  ;;  %v1569_v39 = vpop.permute.xlu1 %1568 }
0x10e0   :  { %v1633_v16 = vsel %vm217_vm1, %v10091_v25, %v1569_v39 }
0x10e1   :  { %1618 = vrot.lane.b32.xlu0 %v10263_v46, %s9710_s8 }
0x10e3   :  { %1600 = vrot.lane.b32.xlu1 %v10193_v13, %s9709_s7  ;;  %v1593_v61 = vpop.permute.xlu1 %1592 }
0x10e5   :  { %1574 = vrot.lane.b32.xlu0 %v10113_v40, %s9708_s6  ;;  %v1567_v40 = vpop.permute.xlu0 %1566 }
0x10e6   :  { %v1632_v12 = vsel %vm217_vm1, %v10093_v26, %v1567_v40 }
0x10e7   :  { %1624 = vrot.lane.b32.xlu1 %v10265_v47, %s9710_s8  ;;  %v1617_v13 = vpop.permute.xlu1 %1616 }
0x10e9   :  { %1598 = vrot.lane.b32.xlu0 %v10195_v3, %s9709_s7  ;;  %v1591_v63 = vpop.permute.xlu0 %1590 }
0x10ea   :  { %v1639_v22 = vsel %vm1638_vm7, %v1632_v12, %v1591_v63  ;;  %v11818_v12 = vld [vmem:[#allocation6_spill] sm:$0xff] }
0x10eb   :  { %3018 = vrot.lane.b32.xlu1 %v10427_v7, %s9708_s6  ;;  %v1573_v45 = vpop.permute.xlu1 %1572 }
0x10ec   :  { %v1635_v25 = vsel %vm217_vm1, %v10095_v33, %v1573_v45 }
0x10ed   :  { %1622 = vrot.lane.b32.xlu0 %v10267_v17, %s9710_s8  ;;  %v1615_v3 = vpop.permute.xlu0 %1614 }
0x10ee   :  { %v1646_v55 = vsel %vm1645_vm8, %v1639_v22, %v1615_v3 }
0x10ef   :  { %3042 = vrot.lane.b32.xlu1 %v10499_v56, %s9709_s7 }
0x10f1   :  { %3016 = vrot.lane.b32.xlu0 %v10429_v6, %s9708_s6  ;;  %v1571_v46 = vpop.permute.xlu0 %1570 }
0x10f2   :  { %v1634_v28 = vsel %vm217_vm1, %v10097_v34, %v1571_v46 }
0x10f3   :  { %3022 = vrot.lane.b32.xlu1 %v10431_v49, %s9708_s6 }
0x10f5   :  { %3040 = vrot.lane.b32.xlu0 %v10501_v19, %s9709_s7  ;;  %v35_v19 = vld [vmem:[%s11786_s2 + $0x10] sm:$0xff] }
0x10f6   :  { %v8500_v38 = vpack.c.bf16 %v36_v44, %v35_v19  ;;  %v9661_v44 = vld [vmem:[%s11784_s0 + $0x8] sm:$0xff] }
0x10f9   :  { %3020 = vrot.lane.b32.xlu0 %v10433_v23, %s9708_s6 }
0x114a   :  { %v2853_v47 = vpop.xlane.xlu1 %2852 }
0x114b   :  { %9456 = vrcp.f32 %v2853_v47  ;;  %v2850_v17 = vpop.xlane.xlu0 %2849 }
0x114c   :  { %9458 = vrcp.f32 %v2850_v17 }
0x114f   :  { %v2859_v7 = vpop.xlane.xlu1 %2858 }
0x1150   :  { %9460 = vrcp.f32 %v2859_v7  ;;  %v2856_v6 = vpop.xlane.xlu0 %2855 }
0x1151   :  { %9462 = vrcp.f32 %v2856_v6 }
0x1153   :  { %v2865_v49 = vpop.xlane.xlu1 %2864 }
0x1154   :  { %9464 = vrcp.f32 %v2865_v49  ;;  %v2862_v56 = vpop.xlane.xlu0 %2861 }
0x1155   :  { %v9457_v23 = vpop.eup %9456  ;;  %9466 = vrcp.f32 %v2862_v56 }
0x1156   :  { %v9459_v42 = vpop.eup %9458  ;;  %v2873_v57 = vmul.f32 %v9457_v23, %v10539_v18  ;;  %v9660_v23 = vld [vmem:[%s11784_s0] sm:$0xff] }
0x1157   :  { %v1597_v21 = vpop.permute.xlu1 %1596  ;;  %v2872_v53 = vmul.f32 %v9459_v42, %v10541_v0 }
0x1158   :  { %v1595_v43 = vpop.permute.xlu0 %1594  ;;  %v1642_v60 = vsel %vm1638_vm7, %v1635_v25, %v1597_v21 }
0x1159   :  { %7809 = vmatprep.mubr.msk.f32.mxu0 %vm337_vm6, %v2872_v53  ;;  %v1641_v51 = vsel %vm1638_vm7, %v1634_v28, %v1595_v43  ;;  %v9663_v43 = vld [vmem:[%s11784_s0 + $0x18] sm:$0xff] }
0x115a   :  { %v9461_v58 = vpop.eup %9460  ;;  %7810 = vmatmul.mubr.msk.f32.vlgmr.msra.gmra.mrb[54].mxu0 %vm337_vm6, %v2873_v57 }
0x115b   :  { %v9463_v27 = vpop.eup %9462  ;;  %v1621_v31 = vpop.permute.xlu1 %1620  ;;  %8499 = vmatpush3.bf16.msra.mxu0 %v8496_v5  ;;  %v2875_v15 = vmul.f32 %v9461_v58, %v10547_v10 }
0x115c   :  { %v1619_v9 = vpop.permute.xlu0 %1618  ;;  %v2874_v54 = vmul.f32 %v9463_v27, %v10549_v30  ;;  %8501 = vmatprep.subr.bf16.mxu0 %v8500_v38  ;;  %v1640_v30 = vsel %vm1638_vm7, %v1633_v16, %v1593_v61  ;;  %v1649_v29 = vsel %vm1645_vm8, %v1642_v60, %v1621_v31  ;;  %v6825_v61 = vld [vmem:[%s11785_s1 + $0x28] sm:$0xff]  ;;  %v9664_v31 = vld [vmem:[%s11784_s0 + $0x20] sm:$0xff] }
0x115d   :  { %v1647_v52 = vsel %vm1645_vm8, %v1640_v30, %v1617_v13  ;;  %v6827_v13 = vld [vmem:[%s11785_s1 + $0x38] sm:$0xff]  ;;  %v11819_v16 = vld [vmem:[#allocation5_spill] sm:$0xff] }
0x115e   :  { %v9465_v48 = vpop.eup %9464  ;;  %7812 = vmatprep.mubr.msk.f32.mxu0 %vm337_vm6, %v2874_v54 }
0x115f   :  { %v9467_v18 = vpop.eup %9466  ;;  %7813 = vmatmul.mubr.msk.f32.gmra.mrb[56].mxu0 %vm337_vm6, %v2875_v15  ;;  %v1577_v0 = vpop.permute.xlu1 %1576  ;;  %v2877_v8 = vmul.f32 %v9465_v48, %v10555_v36  ;;  %v1648_v36 = vsel %vm1645_vm8, %v1641_v51, %v1619_v9  ;;  %v9665_v9 = vld [vmem:[%s11784_s0 + $0x28] sm:$0xff] }
0x1160   :  { %v1575_v14 = vpop.permute.xlu0 %1574  ;;  %v2876_v4 = vmul.f32 %v9467_v18, %v10557_v37  ;;  %8503 = vmatpush3.bf16.msra.mxu0 %v8500_v38  ;;  %v1637_v33 = vsel %vm217_vm1, %v10099_v35, %v1577_v0  ;;  %v6826_v35 = vld [vmem:[%s11785_s1 + $0x30] sm:$0xff] }
0x1161   :  { %v1636_v34 = vsel %vm217_vm1, %v10101_v59, %v1575_v14  ;;  %v6824_v59 = vld [vmem:[%s11785_s1 + $0x20] sm:$0xff]  ;;  %v8508_v3 = vpack.c.bf16 %v6827_v13, %v6826_v35 }
0x1162   :  { %7815 = vmatprep.mubr.msk.f32.mxu0 %vm337_vm6, %v2876_v4  ;;  %v8504_v63 = vpack.c.bf16 %v6825_v61, %v6824_v59 }
0x1163   :  { %7816 = vmatmul.mubr.msk.f32.gmra.mrb[58].mxu0 %vm337_vm6, %v2877_v8  ;;  %v1601_v26 = vpop.permute.xlu1 %1600 }
0x1164   :  { %v1599_v10 = vpop.permute.xlu0 %1598  ;;  %7826 = vmatprep.mubr.msk.f32.mxu0 %vm37_vm0, %v1646_v55  ;;  %v1644_v39 = vsel %vm1638_vm7, %v1637_v33, %v1601_v26  ;;  %8505 = vmatprep.subr.bf16.mxu1 %v8504_v63 }
0x1165   :  { %v1643_v2 = vsel %vm1638_vm7, %v1636_v34, %v1599_v10  ;;  %8507 = vmatpush3.bf16.msra.mxu1 %v8504_v63 }
0x1166   :  { %8509 = vmatprep.subr.bf16.mxu1 %v8508_v3 }
0x1167   :  { %7827 = vmatmul.mubr.msk.f32.vlgmr.msra.gmra.mrb[60].mxu0 %vm37_vm0, %v1647_v52  ;;  %v1625_v50 = vpop.permute.xlu1 %1624 }
0x1168   :  { %v1623_v37 = vpop.permute.xlu0 %1622  ;;  %7829 = vmatprep.mubr.msk.f32.mxu0 %vm37_vm0, %v1648_v36  ;;  %v1651_v40 = vsel %vm1645_vm8, %v1644_v39, %v1625_v50  ;;  %v9667_v39 = vld [vmem:[%s11784_s0 + $0x38] sm:$0xff] }
0x1169   :  { %v1650_v5 = vsel %vm1645_vm8, %v1643_v2, %v1623_v37  ;;  %8511 = vmatpush3.bf16.msra.mxu1 %v8508_v3 }
0x116b   :  { %7830 = vmatmul.mubr.msk.f32.gmra.mrb[62].mxu0 %vm37_vm0, %v1649_v29  ;;  %v3019_v48 = vpop.permute.xlu1 %3018 }
0x116c   :  { %7832 = vmatprep.mubr.msk.f32.mxu0 %vm37_vm0, %v1650_v5  ;;  %v3017_v18 = vpop.permute.xlu0 %3016  ;;  %v3083_v10 = vsel %vm217_vm1, %v11819_v16, %v3019_v48 }
0x116d   :  { %v3082_v22 = vsel %vm217_vm1, %v11818_v12, %v3017_v18  ;;  %v11825_v18 = vld [vmem:[#allocation10_spill] sm:$0xff] }
0x116f   :  { %7833 = vmatmul.mubr.msk.f32.gmra.mrb[64].mxu0 %vm37_vm0, %v1651_v40  ;;  %v3043_v0 = vpop.permute.xlu1 %3042 }
0x1170   :  { %v3041_v8 = vpop.permute.xlu0 %3040  ;;  %v3089_v26 = vsel %vm1638_vm7, %v3083_v10, %v3043_v0 }
0x1171   :  { %v3088_v30 = vsel %vm1638_vm7, %v3082_v22, %v3041_v8 }
0x1173   :  { %v10712_v14 = vpop.permute.xlu1 %3022 }
0x1174   :  { %v3021_v4 = vpop.permute.xlu0 %3020 }
0x122d   :  { %v7811_v45 = vpop.f32.mrb[54].mxu0 }
0x122e   :  { %3066 = vrot.lane.b32.xlu1 %v7811_v45, %s9710_s8  ;;  %v2981_v46 = vpop.f32.mrb[55].mxu0  ;;  %v11823_v45 = vld [vmem:[#allocation8_spill] sm:$0xff] }
0x122f   :  { %3064 = vrot.lane.b32.xlu0 %v2981_v46, %s9710_s8  ;;  %v3084_v46 = vsel %vm217_vm1, %v11823_v45, %v3021_v4 }
0x1232   :  { %v7814_v47 = vpop.f32.mrb[56].mxu0 }
0x1233   :  { %v2991_v17 = vpop.f32.mrb[57].mxu0 }
0x1234   :  { %3068 = vrot.lane.b32.xlu1 %v2991_v17, %s9710_s8 }
0x1236   :  { %v7817_v7 = vpop.f32.mrb[58].mxu0 }
0x1237   :  { %v3001_v6 = vpop.f32.mrb[59].mxu0 }
0x1238   :  { %3024 = vrot.lane.b32.xlu1 %v10437_v41, %s9708_s6  ;;  %v9662_v41 = vld [vmem:[%s11784_s0 + $0x10] sm:$0xff] }
0x123a   :  { %v7828_v49 = vpop.f32.mrb[60].mxu0 }
0x123b   :  { %v3202_v56 = vpop.f32.mrb[61].mxu0  ;;  %v10678_v42 = vadd.f32 %v9661_v44, %v7828_v49 }
0x123c   :  { %v10673_v19 = vadd.f32 %v9660_v23, %v3202_v56 }
0x123d   :  { %11813 = vst [vmem:[#allocation13_spill] sm:$0xff] %v10678_v42 }
0x123e   :  { %11812 = vst [vmem:[#allocation12_spill] sm:$0xff] %v10673_v19  ;;  %v7831_v21 = vpop.f32.mrb[62].mxu0  ;;  %7852 = vmatprep.mubr.msk.f32.mxu1 %vm37_vm0, %v10673_v19 }
0x123f   :  { %v3212_v53 = vpop.f32.mrb[63].mxu0  ;;  %7853 = vmatmul.mubr.msk.f32.vlgmr.msra.gmra.mrb[48].mxu1 %vm37_vm0, %v10678_v42  ;;  %v10692_v38 = vadd.f32 %v9663_v43, %v7831_v21 }
0x1240   :  { %v10687_v57 = vadd.f32 %v9662_v41, %v3212_v53  ;;  %v11824_v53 = vld [vmem:[#allocation7_spill] sm:$0xff] }
0x1241   :  { %11815 = vst [vmem:[#allocation15_spill] sm:$0xff] %v10692_v38  ;;  %v3085_v41 = vsel %vm217_vm1, %v11824_v53, %v10712_v14 }
0x1242   :  { %11814 = vst [vmem:[#allocation14_spill] sm:$0xff] %v10687_v57  ;;  %v7834_v58 = vpop.f32.mrb[64].mxu0  ;;  %7855 = vmatprep.mubr.msk.f32.mxu1 %vm37_vm0, %v10687_v57 }
0x1243   :  { %v3222_v27 = vpop.f32.mrb[65].mxu0  ;;  %7856 = vmatmul.mubr.msk.f32.gmra.mrb[50].mxu1 %vm37_vm0, %v10692_v38  ;;  %v10706_v54 = vadd.f32 %v9665_v9, %v7834_v58 }
0x1244   :  { %v10701_v15 = vadd.f32 %v9664_v31, %v3222_v27 }
0x1245   :  { %11817 = vst [vmem:[#allocation17_spill] sm:$0xff] %v10706_v54 }
0x1246   :  { %11816 = vst [vmem:[#allocation16_spill] sm:$0xff] %v10701_v15  ;;  %7858 = vmatprep.mubr.msk.f32.mxu1 %vm37_vm0, %v10701_v15 }
0x1247   :  { %7859 = vmatmul.mubr.msk.f32.gmra.mrb[52].mxu1 %vm37_vm0, %v10706_v54 }
0x12a0   :  { %v3067_v55 = vpop.permute.xlu1 %3066 }
0x12a1   :  { %v3065_v28 = vpop.permute.xlu0 %3064  ;;  %v3095_v51 = vsel %vm1645_vm8, %v3089_v26, %v3067_v55 }
0x12a2   :  { %v3094_v52 = vsel %vm1645_vm8, %v3088_v30, %v3065_v28  ;;  %v11826_v28 = vld [vmem:[#allocation9_spill] sm:$0xff] }
0x12a3   :  { %7835 = vmatprep.mubr.msk.f32.mxu0 %vm37_vm0, %v3094_v52 }
0x12a4   :  { %7836 = vmatmul.mubr.msk.f32.gmra.mrb[66].mxu0 %vm37_vm0, %v3095_v51 }
0x12a6   :  { %v3069_v59 = vpop.permute.xlu1 %3068 }
0x12aa   :  { %v3025_v61 = vpop.permute.xlu1 %3024 }
0x12ab   :  { %v3086_v0 = vsel %vm217_vm1, %v11825_v18, %v3025_v61 }
0x1312   :  { %v10724_v36 = vpop.f32.mrb[48].mxu1 }
0x1313   :  { %v10726_v25 = vpop.f32.mrb[49].mxu1 }
0x1314   :  { %v10730_v37 = vpack.i.bf16 %v10724_v36, %v10726_v25 }
0x1316   :  { %9037 = vrot.lane.b32.xlu0 %v10730_v37, %s9696_s9  ;;  %v10734_v60 = vpop.f32.mrb[50].mxu1 }
0x1317   :  { %v10736_v34 = vpop.f32.mrb[51].mxu1 }
0x1318   :  { %v10740_v29 = vpack.i.bf16 %v10734_v60, %v10736_v34 }
0x131a   :  { %3044 = vrot.lane.b32.xlu0 %v10505_v1, %s9709_s7  ;;  %9042 = vrot.lane.b32.xlu1 %v10740_v29, %s9696_s9  ;;  %v10746_v2 = vpop.f32.mrb[52].mxu1  ;;  %v11820_v1 = vld [vmem:[#allocation11_spill] sm:$0xff] }
0x131b   :  { %v10748_v50 = vpop.f32.mrb[53].mxu1 }
0x131c   :  { %v10752_v5 = vpack.i.bf16 %v10746_v2, %v10748_v50 }
0x131e   :  { %3046 = vrot.lane.b32.xlu0 %v10503_v20, %s9709_s7  ;;  %3048 = vrot.lane.b32.xlu1 %v10509_v11, %s9709_s7  ;;  %v9666_v11 = vld [vmem:[%s11784_s0 + $0x30] sm:$0xff] }
0x1322   :  { %3070 = vrot.lane.b32.xlu0 %v7814_v47, %s9710_s8  ;;  %9047 = vrot.lane.b32.xlu1 %v10752_v5, %s9696_s9 }
0x1326   :  { %3026 = vrot.lane.b32.xlu0 %v11820_v1, %s9708_s6  ;;  %3072 = vrot.lane.b32.xlu1 %v3001_v6, %s9710_s8 }
0x132a   :  { %3050 = vrot.lane.b32.xlu0 %v10507_v32, %s9709_s7  ;;  %9052 = vrot.lane.b32.xlu1 %v10730_v37, %s9697_s10 }
0x132e   :  { %3074 = vrot.lane.b32.xlu0 %v7817_v7, %s9710_s8  ;;  %9062 = vrot.lane.b32.xlu1 %v10752_v5, %s9697_s10 }
0x1332   :  { %9057 = vrot.lane.b32.xlu0 %v10740_v29, %s9697_s10  ;;  %3781 = vrot.lane.b32.xlu1 %v10724_v36, %s9698_s11 }
0x1336   :  { %3779 = vrot.lane.b32.xlu0 %v10726_v25, %s9698_s11  ;;  %3785 = vrot.lane.b32.xlu1 %v10734_v60, %s9698_s11 }
0x133a   :  { %3783 = vrot.lane.b32.xlu0 %v10736_v34, %s9698_s11  ;;  %3789 = vrot.lane.b32.xlu1 %v10746_v2, %s9698_s11 }
0x133e   :  { %3787 = vrot.lane.b32.xlu0 %v10748_v50, %s9698_s11  ;;  %9072 = vrot.lane.b32.xlu1 %v10740_v29, %s9699_s12 }
0x1342   :  { %9067 = vrot.lane.b32.xlu0 %v10730_v37, %s9699_s12 }
0x1346   :  { %9077 = vrot.lane.b32.xlu0 %v10752_v5, %s9699_s12 }
0x1377   :  { %v7837_v20 = vpop.f32.mrb[66].mxu0 }
0x1378   :  { %v3232_v32 = vpop.f32.mrb[67].mxu0  ;;  %v10799_v40 = vadd.f32 %v9667_v39, %v7837_v20 }
0x1379   :  { %v10794_v33 = vadd.f32 %v9666_v11, %v3232_v32 }
0x137a   :  { %11822 = vst [vmem:[#allocation5_spill] sm:$0xff] %v10799_v40 }
0x137b   :  { %11821 = vst [vmem:[#allocation6_spill] sm:$0xff] %v10794_v33  ;;  %7861 = vmatprep.mubr.msk.f32.mxu1 %vm37_vm0, %v10794_v33 }
0x137c   :  { %7862 = vmatmul.mubr.msk.f32.gmra.mrb[54].mxu1 %vm37_vm0, %v10799_v40 }
0x1388   :  { %v9038_v63 = vpop.permute.xlu0 %9037 }
0x1389   :  { %v9040_v35 = vunpack.i.h.bf16 %v9038_v63  ;;  %v9039_v13 = vunpack.i.l.bf16 %v9038_v63 }
0x138b   :  { %v8512_v3 = vpack.c.bf16 %v9040_v35, %v9039_v13 }
0x138c   :  { %v3045_v47 = vpop.permute.xlu0 %3044  ;;  %v9043_v17 = vpop.permute.xlu1 %9042 }
0x138d   :  { %v3090_v7 = vsel %vm1638_vm7, %v3084_v46, %v3045_v47  ;;  %v9045_v6 = vunpack.i.h.bf16 %v9043_v17  ;;  %v9044_v49 = vunpack.i.l.bf16 %v9043_v17  ;;  %8514 = vmatprep.subr.msk.bf16.mxu0 %vm9831_vm2, %v8512_v3 }
0x138e   :  { %8517 = vmatpush3.bf16.xpose.msk.msra.mxu0 %vm9831_vm2, %v8512_v3  ;;  %v3096_v56 = vsel %vm1645_vm8, %v3090_v7, %v3069_v59 }
0x138f   :  { %v8518_v23 = vpack.c.bf16 %v9045_v6, %v9044_v49  ;;  %7838 = vmatprep.mubr.msk.f32.mxu0 %vm37_vm0, %v3096_v56 }
0x1390   :  { %v3047_v44 = vpop.permute.xlu0 %3046  ;;  %v3049_v21 = vpop.permute.xlu1 %3048 }
0x1391   :  { %8520 = vmatprep.subr.msk.bf16.mxu0 %vm9831_vm2, %v8518_v23  ;;  %v3091_v43 = vsel %vm1638_vm7, %v3085_v41, %v3047_v44  ;;  %v3092_v4 = vsel %vm1638_vm7, %v3086_v0, %v3049_v21 }
0x1394   :  { %v3071_v58 = vpop.permute.xlu0 %3070  ;;  %v9048_v27 = vpop.permute.xlu1 %9047 }
0x1395   :  { %v3097_v31 = vsel %vm1645_vm8, %v3091_v43, %v3071_v58  ;;  %v9050_v9 = vunpack.i.h.bf16 %v9048_v27  ;;  %v9049_v48 = vunpack.i.l.bf16 %v9048_v27 }
0x1396   :  { %7839 = vmatmul.mubr.msk.f32.gmra.mrb[68].mxu0 %vm37_vm0, %v3097_v31 }
0x1397   :  { %v8524_v8 = vpack.c.bf16 %v9050_v9, %v9049_v48  ;;  %8523 = vmatpush3.bf16.xpose.msk.msra.mxu0 %vm9831_vm2, %v8518_v23 }
0x1398   :  { %v3027_v14 = vpop.permute.xlu0 %3026  ;;  %v3073_v12 = vpop.permute.xlu1 %3072 }
0x1399   :  { %v3098_v22 = vsel %vm1645_vm8, %v3092_v4, %v3073_v12  ;;  %8526 = vmatprep.subr.msk.bf16.mxu0 %vm9831_vm2, %v8524_v8  ;;  %v3087_v26 = vsel %vm217_vm1, %v11826_v28, %v3027_v14  ;;  %v9668_v4 = vld [vmem:[%s11784_s0 + $0x40] sm:$0xff]  ;;  %v9669_v12 = vld [vmem:[%s11784_s0 + $0x48] sm:$0xff]  ;;  %v9671_v28 = vld [vmem:[%s11784_s0 + $0x58] sm:$0xff] }
0x139a   :  { %7841 = vmatprep.mubr.msk.f32.mxu0 %vm37_vm0, %v3098_v22 }
0x139c   :  { %v3051_v55 = vpop.permute.xlu0 %3050  ;;  %v9053_v16 = vpop.permute.xlu1 %9052 }
0x139d   :  { %v9055_v10 = vunpack.i.h.bf16 %v9053_v16  ;;  %v9054_v30 = vunpack.i.l.bf16 %v9053_v16  ;;  %v3093_v51 = vsel %vm1638_vm7, %v3087_v26, %v3051_v55 }
0x139f   :  { %v8544_v52 = vpack.c.bf16 %v9055_v10, %v9054_v30  ;;  %8529 = vmatpush3.bf16.xpose.msk.msra.mxu0 %vm9831_vm2, %v8524_v8  ;;  %v9670_v10 = vld [vmem:[%s11784_s0 + $0x50] sm:$0xff] }
0x13a0   :  { %v3075_v1 = vpop.permute.xlu0 %3074  ;;  %v9063_v20 = vpop.permute.xlu1 %9062 }
0x13a1   :  { %v3099_v32 = vsel %vm1645_vm8, %v3093_v51, %v3075_v1  ;;  %8546 = vmatprep.subr.msk.bf16.mxu0 %vm9831_vm2, %v8544_v52  ;;  %v9065_v3 = vunpack.i.h.bf16 %v9063_v20  ;;  %v9064_v45 = vunpack.i.l.bf16 %v9063_v20 }
0x13a2   :  { %7842 = vmatmul.mubr.msk.f32.gmra.mrb[70].mxu0 %vm37_vm0, %v3099_v32 }
0x13a3   :  { %7882 = vmatprep.mubr.msk.f32.mxu0 %vm217_vm1, %v10726_v25  ;;  %v8556_v17 = vpack.c.bf16 %v9065_v3, %v9064_v45 }
0x13a4   :  { %v9058_v11 = vpop.permute.xlu0 %9057  ;;  %v3782_v39 = vpop.permute.xlu1 %3781 }
0x13a5   :  { %v9060_v59 = vunpack.i.h.bf16 %v9058_v11  ;;  %v9059_v61 = vunpack.i.l.bf16 %v9058_v11 }
0x13a6   :  { %7883 = vmatmul.mubr.msk.f32.vlgmr.msra.gmra.mrb[72].mxu0 %vm217_vm1, %v10724_v36 }
0x13a7   :  { %v8550_v63 = vpack.c.bf16 %v9060_v59, %v9059_v61  ;;  %8549 = vmatpush3.bf16.xpose.msk.msra.mxu0 %vm9831_vm2, %v8544_v52  ;;  %7885 = vmatprep.mubr.msk.f32.mxu0 %vm217_vm1, %v10736_v34 }
0x13a8   :  { %v3780_v35 = vpop.permute.xlu0 %3779  ;;  %v3786_v13 = vpop.permute.xlu1 %3785 }
0x13a9   :  { %8552 = vmatprep.subr.msk.bf16.mxu0 %vm9831_vm2, %v8550_v63 }
0x13aa   :  { %7886 = vmatmul.mubr.msk.f32.gmra.mrb[74].mxu0 %vm217_vm1, %v10734_v60 }
0x13ab   :  { %7888 = vmatprep.mubr.msk.f32.mxu0 %vm217_vm1, %v10748_v50 }
0x13ac   :  { %v3784_v46 = vpop.permute.xlu0 %3783  ;;  %v3790_v47 = vpop.permute.xlu1 %3789 }
0x13ae   :  { %7889 = vmatmul.mubr.msk.f32.gmra.mrb[76].mxu0 %vm217_vm1, %v10746_v2 }
0x13af   :  { %8555 = vmatpush3.bf16.xpose.msk.msra.mxu0 %vm9831_vm2, %v8550_v63  ;;  %7924 = vmatprep.mubr.msk.f32.mxu0 %vm217_vm1, %v3780_v35 }
0x13b0   :  { %8558 = vmatprep.subr.msk.bf16.mxu0 %vm9831_vm2, %v8556_v17  ;;  %v3788_v7 = vpop.permute.xlu0 %3787  ;;  %v9073_v6 = vpop.permute.xlu1 %9072 }
0x13b1   :  { %v9075_v56 = vunpack.i.h.bf16 %v9073_v6  ;;  %v9074_v23 = vunpack.i.l.bf16 %v9073_v6 }
0x13b3   :  { %v8534_v27 = vpack.c.bf16 %v9075_v56, %v9074_v23 }
0x13b4   :  { %v9068_v49 = vpop.permute.xlu0 %9067 }
0x13b5   :  { %v9070_v44 = vunpack.i.h.bf16 %v9068_v49  ;;  %v9069_v21 = vunpack.i.l.bf16 %v9068_v49 }
0x13b7   :  { %8561 = vmatpush3.bf16.xpose.msk.msra.mxu0 %vm9831_vm2, %v8556_v17  ;;  %v8530_v53 = vpack.c.bf16 %v9070_v44, %v9069_v21 }
0x13b8   :  { %v9078_v41 = vpop.permute.xlu0 %9077 }
0x13b9   :  { %v9080_v43 = vunpack.i.h.bf16 %v9078_v41  ;;  %v9079_v58 = vunpack.i.l.bf16 %v9078_v41  ;;  %8531 = vmatprep.subr.bf16.mxu1 %v8530_v53 }
0x13ba   :  { %8533 = vmatpush3.bf16.msra.mxu1 %v8530_v53 }
0x13bb   :  { %8535 = vmatprep.subr.bf16.mxu1 %v8534_v27  ;;  %v8538_v31 = vpack.c.bf16 %v9080_v43, %v9079_v58 }
0x13be   :  { %7925 = vmatmul.mubr.msk.f32.vlgmr.msra.gmra.mrb[78].mxu0 %vm217_vm1, %v3782_v39  ;;  %8537 = vmatpush3.bf16.msra.mxu1 %v8534_v27 }
0x13bf   :  { %7927 = vmatprep.mubr.msk.f32.mxu0 %vm217_vm1, %v3784_v46  ;;  %8540 = vmatprep.subr.msk.bf16.mxu1 %vm9861_vm5, %v8538_v31 }
0x13c2   :  { %7928 = vmatmul.mubr.msk.f32.gmra.mrb[80].mxu0 %vm217_vm1, %v3786_v13  ;;  %8543 = vmatpush3.bf16.msk.msra.mxu1 %vm9861_vm5, %v8538_v31 }
0x13c3   :  { %7930 = vmatprep.mubr.msk.f32.mxu0 %vm217_vm1, %v3788_v7 }
0x13c6   :  { %7931 = vmatmul.mubr.msk.f32.gmra.mrb[82].mxu0 %vm217_vm1, %v3790_v47 }
0x144f   :  { %v10872_v9 = vpop.f32.mrb[54].mxu1 }
0x1450   :  { %v10874_v48 = vpop.f32.mrb[55].mxu1 }
0x1451   :  { %v10878_v18 = vpack.i.bf16 %v10872_v9, %v10874_v48 }
0x1469   :  { %v7840_v0 = vpop.f32.mrb[68].mxu0 }
0x146a   :  { %v3242_v8 = vpop.f32.mrb[69].mxu0  ;;  %v10888_v22 = vadd.f32 %v9669_v12, %v7840_v0 }
0x146b   :  { %v10883_v14 = vadd.f32 %v9668_v4, %v3242_v8 }
0x146c   :  { %11828 = vst [vmem:[#allocation8_spill] sm:$0xff] %v10888_v22 }
0x146d   :  { %11827 = vst [vmem:[#allocation11_spill] sm:$0xff] %v10883_v14  ;;  %7864 = vmatprep.mubr.msk.f32.mxu1 %vm37_vm0, %v10883_v14 }
0x146e   :  { %7865 = vmatmul.mubr.msk.f32.gmra.mrb[56].mxu1 %vm37_vm0, %v10888_v22 }
0x1475   :  { %v7843_v55 = vpop.f32.mrb[70].mxu0 }
0x1476   :  { %v3252_v16 = vpop.f32.mrb[71].mxu0  ;;  %v10902_v26 = vadd.f32 %v9671_v28, %v7843_v55 }
0x1477   :  { %v10897_v30 = vadd.f32 %v9670_v10, %v3252_v16 }
0x1478   :  { %11830 = vst [vmem:[#allocation10_spill] sm:$0xff] %v10902_v26 }
0x1479   :  { %11829 = vst [vmem:[#allocation7_spill] sm:$0xff] %v10897_v30  ;;  %7867 = vmatprep.mubr.msk.f32.mxu1 %vm37_vm0, %v10897_v30  ;;  %v7884_v52 = vpop.f32.mrb[72].mxu0 }
0x147a   :  { %7868 = vmatmul.mubr.msk.f32.gmra.mrb[58].mxu1 %vm37_vm0, %v10902_v26  ;;  %v3552_v51 = vpop.f32.mrb[73].mxu0  ;;  %v3584_v1 = vsel %vm337_vm6, %v7884_v52, -inf }
0x147b   :  { %3585 = vmax.xlane.f32.xlu1 %v3584_v1  ;;  %v3581_v20 = vsel %vm337_vm6, %v3552_v51, -inf }
0x147c   :  { %3582 = vmax.xlane.f32.xlu0 %v3581_v20 }
0x147d   :  { %v7887_v32 = vpop.f32.mrb[74].mxu0 }
0x147e   :  { %v3562_v11 = vpop.f32.mrb[75].mxu0  ;;  %v3590_v39 = vsel %vm337_vm6, %v7887_v32, -inf }
0x147f   :  { %v3587_v63 = vsel %vm337_vm6, %v3562_v11, -inf }
0x1480   :  { %3591 = vmax.xlane.f32.xlu0 %v3590_v39 }
0x1481   :  { %v7890_v59 = vpop.f32.mrb[76].mxu0 }
0x1482   :  { %v3572_v61 = vpop.f32.mrb[77].mxu0  ;;  %v3596_v13 = vsel %vm337_vm6, %v7890_v59, -inf }
0x1483   :  { %v3593_v35 = vsel %vm337_vm6, %v3572_v61, -inf }
0x1484   :  { %3588 = vmax.xlane.f32.xlu0 %v3587_v63  ;;  %3594 = vmax.xlane.f32.xlu1 %v3593_v35 }
0x1488   :  { %3597 = vmax.xlane.f32.xlu0 %v3596_v13 }
0x1491   :  { %v7926_v3 = vpop.f32.mrb[78].mxu0 }
0x1492   :  { %v3893_v45 = vpop.f32.mrb[79].mxu0  ;;  %v3925_v46 = vsel %vm337_vm6, %v7926_v3, -inf }
0x1493   :  { %3926 = vmax.xlane.f32.xlu0 %v3925_v46  ;;  %v3922_v47 = vsel %vm337_vm6, %v3893_v45, -inf }
0x1494   :  { %3923 = vmax.xlane.f32.xlu1 %v3922_v47 }
0x1495   :  { %v10916_v17 = vpop.f32.mrb[80].mxu0 }
0x1496   :  { %v10918_v7 = vpop.f32.mrb[81].mxu0  ;;  %v3931_v6 = vsel %vm337_vm6, %v10916_v17, -inf }
0x1497   :  { %3932 = vmax.xlane.f32.xlu0 %v3931_v6  ;;  %v3928_v49 = vsel %vm337_vm6, %v10918_v7, -inf }
0x1498   :  { %3929 = vmax.xlane.f32.xlu1 %v3928_v49 }
0x1499   :  { %v10924_v56 = vpop.f32.mrb[82].mxu0 }
0x149a   :  { %v10926_v23 = vpop.f32.mrb[83].mxu0  ;;  %v3937_v44 = vsel %vm337_vm6, %v10924_v56, -inf }
0x149b   :  { %3938 = vmax.xlane.f32.xlu0 %v3937_v44  ;;  %v3934_v21 = vsel %vm337_vm6, %v10926_v23, -inf }
0x149c   :  { %3935 = vmax.xlane.f32.xlu1 %v3934_v21 }
0x14ad   :  { %9082 = vrot.lane.b32.xlu1 %v10730_v37, %s9701_s13 }
0x14b1   :  { %9087 = vrot.lane.b32.xlu0 %v10740_v29, %s9701_s13 }
0x14b5   :  { %9092 = vrot.lane.b32.xlu0 %v10752_v5, %s9701_s13 }
0x1508   :  { %v3586_v53 = vpop.xlane.xlu1 %3585 }
0x1509   :  { %v3600_v41 = vsub.f32 %v7884_v52, %v3586_v53  ;;  %v3583_v43 = vpop.xlane.xlu0 %3582 }
0x150a   :  { %v3599_v58 = vsub.f32 %v3552_v51, %v3583_v43 }
0x150b   :  { %v3607_v27 = vmul.f32 1.442695, %v3600_v41 }
0x150c   :  { %v3605_v31 = vmul.f32 1.442695, %v3599_v58 }
0x150d   :  { %9468 = vpow2.f32 %v3607_v27  ;;  %v3592_v0 = vpop.xlane.xlu0 %3591 }
0x150e   :  { %9470 = vpow2.f32 %v3605_v31  ;;  %v3602_v8 = vsub.f32 %v7887_v32, %v3592_v0 }
0x1510   :  { %v3611_v4 = vmul.f32 1.442695, %v3602_v8 }
0x1511   :  { %v3589_v12 = vpop.xlane.xlu0 %3588  ;;  %v3595_v55 = vpop.xlane.xlu1 %3594 }
0x1512   :  { %9472 = vpow2.f32 %v3611_v4  ;;  %v3601_v16 = vsub.f32 %v3562_v11, %v3589_v12  ;;  %v3603_v28 = vsub.f32 %v3572_v61, %v3595_v55 }
0x1514   :  { %v3609_v10 = vmul.f32 1.442695, %v3601_v16  ;;  %v3613_v51 = vmul.f32 1.442695, %v3603_v28 }
0x1515   :  { %v3598_v1 = vpop.xlane.xlu0 %3597 }
0x1516   :  { %9474 = vpow2.f32 %v3609_v10  ;;  %v3604_v20 = vsub.f32 %v7890_v59, %v3598_v1 }
0x1517   :  { %v10938_v39 = vpop.eup %9468 }
0x1518   :  { %v10940_v52 = vpop.eup %9470  ;;  %v3615_v63 = vmul.f32 1.442695, %v3604_v20  ;;  %v3620_v35 = vsel %vm337_vm6, %v10938_v39, 0.0 }
0x1519   :  { %3621 = vadd.xlane.f32.xlu0 %v3620_v35  ;;  %v3617_v32 = vsel %vm337_vm6, %v10940_v52, 0.0 }
0x151a   :  { %9476 = vpow2.f32 %v3615_v63  ;;  %3618 = vadd.xlane.f32.xlu1 %v3617_v32 }
0x151b   :  { %9478 = vpow2.f32 %v3613_v51 }
0x151c   :  { %v10946_v11 = vpop.eup %9472 }
0x151d   :  { %v3626_v59 = vsel %vm337_vm6, %v10946_v11, 0.0 }
0x151e   :  { %3627 = vadd.xlane.f32.xlu0 %v3626_v59 }
0x1520   :  { %v10950_v61 = vpop.eup %9474  ;;  %v3927_v13 = vpop.xlane.xlu0 %3926 }
0x1521   :  { %v3941_v46 = vsub.f32 %v7926_v3, %v3927_v13  ;;  %v3924_v47 = vpop.xlane.xlu1 %3923  ;;  %v3623_v6 = vsel %vm337_vm6, %v10950_v61, 0.0 }
0x1522   :  { %v3940_v49 = vsub.f32 %v3893_v45, %v3924_v47  ;;  %3624 = vadd.xlane.f32.xlu1 %v3623_v6 }
0x1523   :  { %v3948_v44 = vmul.f32 1.442695, %v3941_v46 }
0x1524   :  { %v10954_v21 = vpop.eup %9476  ;;  %v3946_v53 = vmul.f32 1.442695, %v3940_v49  ;;  %v3933_v20 = vpop.xlane.xlu0 %3932 }
0x1525   :  { %9480 = vpow2.f32 %v3948_v44  ;;  %v3930_v41 = vpop.xlane.xlu1 %3929  ;;  %v3632_v43 = vsel %vm337_vm6, %v10954_v21, 0.0  ;;  %v10958_v58 = vpop.eup %9478  ;;  %v3943_v59 = vsub.f32 %v10916_v17, %v3933_v20 }
0x1526   :  { %9482 = vpow2.f32 %v3946_v53  ;;  %3633 = vadd.xlane.f32.xlu1 %v3632_v43  ;;  %v3629_v27 = vsel %vm337_vm6, %v10958_v58, 0.0  ;;  %v3942_v63 = vsub.f32 %v10918_v7, %v3930_v41 }
0x1527   :  { %v3952_v6 = vmul.f32 1.442695, %v3943_v59 }
0x1528   :  { %v3939_v13 = vpop.xlane.xlu0 %3938  ;;  %v3950_v46 = vmul.f32 1.442695, %v3942_v63 }
0x1529   :  { %v3936_v3 = vpop.xlane.xlu1 %3935  ;;  %v3945_v47 = vsub.f32 %v10924_v56, %v3939_v13 }
0x152a   :  { %3630 = vadd.xlane.f32.xlu1 %v3629_v27  ;;  %9484 = vpow2.f32 %v3950_v46  ;;  %v3944_v44 = vsub.f32 %v10926_v23, %v3936_v3 }
0x152b   :  { %v3956_v49 = vmul.f32 1.442695, %v3945_v47  ;;  %9486 = vpow2.f32 %v3952_v6 }
0x152c   :  { %v3954_v7 = vmul.f32 1.442695, %v3944_v44 }
0x152d   :  { %v9083_v45 = vpop.permute.xlu1 %9082  ;;  %9488 = vpow2.f32 %v3956_v49 }
0x152e   :  { %v9085_v31 = vunpack.i.h.bf16 %v9083_v45  ;;  %v9084_v0 = vunpack.i.l.bf16 %v9083_v45  ;;  %9490 = vpow2.f32 %v3954_v7  ;;  %v9088_v45 = vpop.permute.xlu0 %9087 }
0x152f   :  { %v10962_v8 = vpop.eup %9480  ;;  %v9090_v13 = vunpack.i.h.bf16 %v9088_v45  ;;  %v9089_v46 = vunpack.i.l.bf16 %v9088_v45 }
0x1530   :  { %v10964_v4 = vpop.eup %9482  ;;  %v3961_v12 = vsel %vm337_vm6, %v10962_v8, 0.0  ;;  %v10968_v55 = vpack.c.bf16 %v9085_v31, %v9084_v0 }
0x1531   :  { %3962 = vadd.xlane.f32.xlu1 %v3961_v12  ;;  %v3958_v16 = vsel %vm337_vm6, %v10964_v4, 0.0 }
0x1532   :  { %3959 = vadd.xlane.f32.xlu0 %v3958_v16  ;;  %8563 = vmatprep.subr.bf16.mxu1 %v10968_v55  ;;  %v9093_v31 = vpop.permute.xlu0 %9092 }
0x1533   :  { %v9095_v44 = vunpack.i.h.bf16 %v9093_v31  ;;  %v9094_v7 = vunpack.i.l.bf16 %v9093_v31 }
0x1534   :  { %v10997_v53 = vpop.eup %9484 }
0x1535   :  { %v10999_v41 = vpop.eup %9486  ;;  %v3964_v17 = vsel %vm337_vm6, %v10997_v53, 0.0  ;;  %v8570_v45 = vpack.c.bf16 %v9095_v44, %v9094_v7 }
0x1536   :  { %v3967_v56 = vsel %vm337_vm6, %v10999_v41, 0.0 }
0x1537   :  { %v11003_v43 = vpop.eup %9488 }
0x1538   :  { %v3973_v23 = vsel %vm337_vm6, %v11003_v43, 0.0  ;;  %v11009_v3 = vpop.eup %9490 }
0x1539   :  { %v3970_v27 = vsel %vm337_vm6, %v11009_v3, 0.0 }
0x1541   :  { %v10973_v10 = vpop.f32.mrb[56].mxu1 }
0x1542   :  { %9097 = vrot.lane.b32.xlu1 %v10730_v37, %s9702_s26  ;;  %v10977_v28 = vpop.f32.mrb[57].mxu1 }
0x1543   :  { %v10981_v1 = vpack.i.bf16 %v10973_v10, %v10977_v28 }
0x1548   :  { %9102 = vrot.lane.b32.xlu0 %v10740_v29, %s9702_s26 }
0x154d   :  { %v10985_v51 = vpop.f32.mrb[58].mxu1 }
0x154e   :  { %v10988_v35 = vpop.f32.mrb[59].mxu1 }
0x154f   :  { %v10992_v32 = vpack.i.bf16 %v10985_v51, %v10988_v35 }
0x1566   :  { %3965 = vadd.xlane.f32.xlu1 %v3964_v17  ;;  %v8566_v17 = vpack.c.bf16 %v9090_v13, %v9089_v46 }
0x1567   :  { %3968 = vadd.xlane.f32.xlu0 %v3967_v56 }
0x156a   :  { %3974 = vadd.xlane.f32.xlu1 %v3973_v23 }
0x156e   :  { %3971 = vadd.xlane.f32.xlu1 %v3970_v27 }
0x157d   :  { %9107 = vrot.lane.b32.xlu0 %v10752_v5, %s9702_s26 }
0x157f   :  { %4120 = vrot.lane.b32.xlu1 %v10726_v25, %s9703_s27 }
0x1581   :  { %4122 = vrot.lane.b32.xlu0 %v10724_v36, %s9703_s27 }
0x1583   :  { %4124 = vrot.lane.b32.xlu1 %v10736_v34, %s9703_s27 }
0x1585   :  { %4126 = vrot.lane.b32.xlu0 %v10734_v60, %s9703_s27 }
0x1587   :  { %4128 = vrot.lane.b32.xlu1 %v10748_v50, %s9703_s27 }
0x1589   :  { %4130 = vrot.lane.b32.xlu0 %v10746_v2, %s9703_s27 }
0x158d   :  { %9112 = vrot.lane.b32.xlu0 %v10730_v37, %s9704_s28 }
0x15a6   :  { %v3622_v0 = vpop.xlane.xlu0 %3621 }
0x15a7   :  { %9492 = vrcp.f32 %v3622_v0  ;;  %v3619_v12 = vpop.xlane.xlu1 %3618 }
0x15a8   :  { %9494 = vrcp.f32 %v3619_v12 }
0x15ab   :  { %v3628_v16 = vpop.xlane.xlu0 %3627 }
0x15ac   :  { %9496 = vrcp.f32 %v3628_v16 }
0x15af   :  { %v3625_v20 = vpop.xlane.xlu1 %3624 }
0x15b0   :  { %9498 = vrcp.f32 %v3625_v20 }
0x15b1   :  { %v9493_v63 = vpop.eup %9492 }
0x15b2   :  { %v9495_v59 = vpop.eup %9494  ;;  %v3642_v49 = vmul.f32 %v9493_v63, %v10938_v39 }
0x15b3   :  { %v3634_v47 = vpop.xlane.xlu1 %3633  ;;  %v3641_v6 = vmul.f32 %v9495_v59, %v10940_v52 }
0x15b4   :  { %9500 = vrcp.f32 %v3634_v47 }
0x15b5   :  { %7903 = vmatprep.mubr.msk.f32.mxu1 %vm337_vm6, %v3641_v6 }
0x15b6   :  { %7904 = vmatmul.mubr.msk.f32.vlgmr.msra.gmra.mrb[60].mxu1 %vm337_vm6, %v3642_v49  ;;  %v9497_v23 = vpop.eup %9496 }
0x15b7   :  { %8565 = vmatpush3.bf16.msra.mxu1 %v10968_v55  ;;  %v3631_v56 = vpop.xlane.xlu1 %3630  ;;  %v3644_v39 = vmul.f32 %v9497_v23, %v10946_v11 }
0x15b8   :  { %9502 = vrcp.f32 %v3631_v56  ;;  %8567 = vmatprep.subr.bf16.mxu1 %v8566_v17 }
0x15ba   :  { %v9499_v27 = vpop.eup %9498 }
0x15bb   :  { %8569 = vmatpush3.bf16.msra.mxu1 %v8566_v17  ;;  %v3643_v52 = vmul.f32 %v9499_v27, %v10950_v61 }
0x15bc   :  { %8572 = vmatprep.subr.msk.bf16.mxu1 %vm9861_vm5, %v8570_v45 }
0x15bd   :  { %7906 = vmatprep.mubr.msk.f32.mxu1 %vm337_vm6, %v3643_v52 }
0x15be   :  { %v3963_v31 = vpop.xlane.xlu1 %3962  ;;  %7907 = vmatmul.mubr.msk.f32.gmra.mrb[62].mxu1 %vm337_vm6, %v3644_v39  ;;  %v9501_v0 = vpop.eup %9500 }
0x15bf   :  { %9504 = vrcp.f32 %v3963_v31  ;;  %v3960_v55 = vpop.xlane.xlu0 %3959  ;;  %8575 = vmatpush3.bf16.msk.msra.mxu1 %vm9861_vm5, %v8570_v45  ;;  %v3646_v11 = vmul.f32 %v9501_v0, %v10954_v21 }
0x15c0   :  { %9506 = vrcp.f32 %v3960_v55 }
0x15c2   :  { %v9503_v12 = vpop.eup %9502  ;;  %v9098_v16 = vpop.permute.xlu1 %9097 }
0x15c3   :  { %v9100_v61 = vunpack.i.h.bf16 %v9098_v16  ;;  %v9099_v20 = vunpack.i.l.bf16 %v9098_v16  ;;  %v3645_v63 = vmul.f32 %v9503_v12, %v10958_v58  ;;  %v9103_v13 = vpop.permute.xlu0 %9102 }
0x15c4   :  { %v9105_v6 = vunpack.i.h.bf16 %v9103_v13  ;;  %v9104_v49 = vunpack.i.l.bf16 %v9103_v13 }
0x15c5   :  { %v8576_v59 = vpack.c.bf16 %v9100_v61, %v9099_v20  ;;  %7909 = vmatprep.mubr.msk.f32.mxu1 %vm337_vm6, %v3645_v63 }
0x15c6   :  { %7910 = vmatmul.mubr.msk.f32.gmra.mrb[64].mxu1 %vm337_vm6, %v3646_v11  ;;  %v8582_v21 = vpack.c.bf16 %v9105_v6, %v9104_v49 }
0x15c7   :  { %8578 = vmatprep.subr.msk.bf16.mxu1 %vm9831_vm2, %v8576_v59 }
0x15c9   :  { %v9505_v46 = vpop.eup %9504 }
0x15ca   :  { %v9507_v47 = vpop.eup %9506  ;;  %v3983_v7 = vmul.f32 %v9505_v46, %v10962_v8 }
0x15cb   :  { %v3982_v44 = vmul.f32 %v9507_v47, %v10964_v4 }
0x15cd   :  { %7945 = vmatprep.mubr.msk.f32.mxu1 %vm337_vm6, %v3982_v44 }
0x15ce   :  { %7946 = vmatmul.mubr.msk.f32.vlgmr.msra.gmra.mrb[66].mxu1 %vm337_vm6, %v3983_v7 }
0x15cf   :  { %8581 = vmatpush3.bf16.xpose.msk.msra.mxu1 %vm9831_vm2, %v8576_v59 }
0x15d0   :  { %8584 = vmatprep.subr.msk.bf16.mxu1 %vm9831_vm2, %v8582_v21 }
0x15d7   :  { %8587 = vmatpush3.bf16.xpose.msk.msra.mxu1 %vm9831_vm2, %v8582_v21 }
0x15f3   :  { %v3966_v58 = vpop.xlane.xlu1 %3965 }
0x15f4   :  { %9508 = vrcp.f32 %v3966_v58  ;;  %v3969_v17 = vpop.xlane.xlu0 %3968 }
0x15f5   :  { %9510 = vrcp.f32 %v3969_v17 }
0x15f7   :  { %v3975_v4 = vpop.xlane.xlu1 %3974 }
0x15f8   :  { %v9108_v8 = vpop.permute.xlu0 %9107  ;;  %9512 = vrcp.f32 %v3975_v4 }
0x15f9   :  { %v9110_v56 = vunpack.i.h.bf16 %v9108_v8  ;;  %v9109_v23 = vunpack.i.l.bf16 %v9108_v8 }
0x15fb   :  { %v8588_v27 = vpack.c.bf16 %v9110_v56, %v9109_v23  ;;  %v3972_v45 = vpop.xlane.xlu1 %3971 }
0x15fc   :  { %9514 = vrcp.f32 %v3972_v45  ;;  %v4123_v52 = vpop.permute.xlu0 %4122 }
0x15fd   :  { %8590 = vmatprep.subr.msk.bf16.mxu1 %vm9831_vm2, %v8588_v27 }
0x15fe   :  { %v9509_v39 = vpop.eup %9508  ;;  %8593 = vmatpush3.bf16.xpose.msk.msra.mxu1 %vm9831_vm2, %v8588_v27 }
0x15ff   :  { %v9511_v31 = vpop.eup %9510  ;;  %v3984_v55 = vmul.f32 %v9509_v39, %v10997_v53  ;;  %v4121_v63 = vpop.permute.xlu1 %4120 }
0x1600   :  { %v4127_v0 = vpop.permute.xlu0 %4126  ;;  %v3985_v12 = vmul.f32 %v9511_v31, %v10999_v41 }
0x1601   :  { %7948 = vmatprep.mubr.msk.f32.mxu1 %vm337_vm6, %v3984_v55 }
0x1602   :  { %7949 = vmatmul.mubr.msk.f32.gmra.mrb[68].mxu1 %vm337_vm6, %v3985_v12  ;;  %v9513_v61 = vpop.eup %9512 }
0x1603   :  { %v3987_v13 = vmul.f32 %v9513_v61, %v11003_v43  ;;  %v4125_v41 = vpop.permute.xlu1 %4124 }
0x1604   :  { %v4131_v16 = vpop.permute.xlu0 %4130 }
0x1606   :  { %v9515_v20 = vpop.eup %9514 }
0x1607   :  { %v3986_v11 = vmul.f32 %v9515_v20, %v11009_v3  ;;  %v4129_v3 = vpop.permute.xlu1 %4128 }
0x1608   :  { %v9113_v59 = vpop.permute.xlu0 %9112 }
0x1609   :  { %v9115_v46 = vunpack.i.h.bf16 %v9113_v59  ;;  %v9114_v47 = vunpack.i.l.bf16 %v9113_v59  ;;  %7951 = vmatprep.mubr.msk.f32.mxu1 %vm337_vm6, %v3986_v11 }
0x160a   :  { %7952 = vmatmul.mubr.msk.f32.gmra.mrb[70].mxu1 %vm337_vm6, %v3987_v13 }
0x160b   :  { %7966 = vmatprep.mubr.msk.f32.mxu1 %vm217_vm1, %v4121_v63  ;;  %v8594_v53 = vpack.c.bf16 %v9115_v46, %v9114_v47 }
0x160d   :  { %8595 = vmatprep.subr.bf16.mxu0 %v8594_v53 }
0x160e   :  { %7967 = vmatmul.mubr.msk.f32.vlgmr.msra.gmra.mrb[72].mxu1 %vm217_vm1, %v4123_v52  ;;  %8597 = vmatpush3.bf16.msra.mxu0 %v8594_v53 }
0x160f   :  { %7969 = vmatprep.mubr.msk.f32.mxu1 %vm217_vm1, %v4125_v41 }
0x1612   :  { %7970 = vmatmul.mubr.msk.f32.gmra.mrb[74].mxu1 %vm217_vm1, %v4127_v0 }
0x1613   :  { %7972 = vmatprep.mubr.msk.f32.mxu1 %vm217_vm1, %v4129_v3 }
0x1616   :  { %7973 = vmatmul.mubr.msk.f32.gmra.mrb[76].mxu1 %vm217_vm1, %v4131_v16 }
0x1689   :  { %v11076_v43 = vpop.f32.mrb[60].mxu1 }
0x168a   :  { %11831 = vst [vmem:[#allocation9_spill] sm:$0xff] %v11076_v43  ;;  %v11078_v6 = vpop.f32.mrb[61].mxu1 }
0x1691   :  { %v11080_v49 = vpop.f32.mrb[62].mxu1 }
0x1692   :  { %11832 = vst [vmem:[#allocation18_spill] sm:$0xff] %v11080_v49  ;;  %v11082_v44 = vpop.f32.mrb[63].mxu1 }
0x1693   :  { %11833 = vst [vmem:[#allocation19_spill] sm:$0xff] %v11082_v44 }
0x1699   :  { %v11084_v7 = vpop.f32.mrb[64].mxu1 }
0x169a   :  { %v11086_v21 = vpop.f32.mrb[65].mxu1 }
0x16a1   :  { %v11088_v58 = vpop.f32.mrb[66].mxu1 }
0x16a2   :  { %v11090_v17 = vpop.f32.mrb[67].mxu1 }
0x16d5   :  { %v11092_v4 = vpop.f32.mrb[68].mxu1 }
0x16d6   :  { %v11094_v8 = vpop.f32.mrb[69].mxu1 }
0x16dd   :  { %v11096_v56 = vpop.f32.mrb[70].mxu1 }
0x16de   :  { %v11098_v23 = vpop.f32.mrb[71].mxu1 }
0x16e1   :  { %v7968_v27 = vpop.f32.mrb[72].mxu1 }
0x16e2   :  { %v4234_v45 = vpop.f32.mrb[73].mxu1  ;;  %v4266_v52 = vsel %vm337_vm6, %v7968_v27, -inf }
0x16e3   :  { %4267 = vmax.xlane.f32.xlu0 %v4266_v52  ;;  %v4263_v39 = vsel %vm337_vm6, %v4234_v45, -inf }
0x16e4   :  { %4264 = vmax.xlane.f32.xlu1 %v4263_v39 }
0x16e5   :  { %v7971_v31 = vpop.f32.mrb[74].mxu1 }
0x16e6   :  { %v4244_v55 = vpop.f32.mrb[75].mxu1  ;;  %v4272_v0 = vsel %vm337_vm6, %v7971_v31, -inf }
0x16e7   :  { %v4269_v12 = vsel %vm337_vm6, %v4244_v55, -inf }
0x16e8   :  { %4273 = vmax.xlane.f32.xlu1 %v4272_v0  ;;  %4270 = vmax.xlane.f32.xlu0 %v4269_v12 }
0x16e9   :  { %v7974_v16 = vpop.f32.mrb[76].mxu1 }
0x16ea   :  { %v4254_v61 = vpop.f32.mrb[77].mxu1  ;;  %v4278_v20 = vsel %vm337_vm6, %v7974_v16, -inf }
0x16eb   :  { %v4275_v63 = vsel %vm337_vm6, %v4254_v61, -inf }
0x16ec   :  { %4279 = vmax.xlane.f32.xlu1 %v4278_v20  ;;  %4276 = vmax.xlane.f32.xlu0 %v4275_v63 }
0x16fd   :  { %9117 = vrot.lane.b32.xlu1 %v10740_v29, %s9704_s28 }
0x1702   :  { %9122 = vrot.lane.b32.xlu0 %v10752_v5, %s9704_s28 }
0x1770   :  { %v4268_v11 = vpop.xlane.xlu0 %4267 }
0x1771   :  { %v4282_v59 = vsub.f32 %v7968_v27, %v4268_v11  ;;  %v4265_v13 = vpop.xlane.xlu1 %4264 }
0x1772   :  { %v4281_v46 = vsub.f32 %v4234_v45, %v4265_v13 }
0x1773   :  { %v4289_v47 = vmul.f32 1.442695, %v4282_v59 }
0x1774   :  { %v4287_v53 = vmul.f32 1.442695, %v4281_v46 }
0x1775   :  { %9516 = vpow2.f32 %v4289_v47  ;;  %v4274_v41 = vpop.xlane.xlu1 %4273  ;;  %v4271_v3 = vpop.xlane.xlu0 %4270 }
0x1776   :  { %9518 = vpow2.f32 %v4287_v53  ;;  %v4283_v13 = vsub.f32 %v4244_v55, %v4271_v3  ;;  %v4284_v46 = vsub.f32 %v7971_v31, %v4274_v41 }
0x1778   :  { %v4291_v47 = vmul.f32 1.442695, %v4283_v13 }
0x1779   :  { %v4280_v52 = vpop.xlane.xlu1 %4279  ;;  %v4277_v39 = vpop.xlane.xlu0 %4276 }
0x177a   :  { %v4286_v53 = vsub.f32 %v7974_v16, %v4280_v52  ;;  %9520 = vpow2.f32 %v4291_v47 }
0x177d   :  { %v9118_v0 = vpop.permute.xlu1 %9117  ;;  %v9123_v12 = vpop.permute.xlu0 %9122 }
0x177e   :  { %v9120_v20 = vunpack.i.h.bf16 %v9118_v0  ;;  %v9119_v63 = vunpack.i.l.bf16 %v9118_v0  ;;  %v9125_v30 = vunpack.i.h.bf16 %v9123_v12  ;;  %v9124_v14 = vunpack.i.l.bf16 %v9123_v12 }
0x177f   :  { %v9517_v26 = vpop.eup %9516  ;;  %v4285_v0 = vsub.f32 %v4254_v61, %v4277_v39 }
0x1780   :  { %v9519_v22 = vpop.eup %9518  ;;  %v4302_v27 = vsel %vm337_vm6, %v9517_v26, 0.0  ;;  %v8598_v11 = vpack.c.bf16 %v9120_v20, %v9119_v63  ;;  %v8602_v59 = vpack.c.bf16 %v9125_v30, %v9124_v14  ;;  %v4293_v14 = vmul.f32 1.442695, %v4284_v46 }
0x1781   :  { %4303 = vadd.xlane.f32.xlu1 %v4302_v27  ;;  %v4299_v45 = vsel %vm337_vm6, %v9519_v22, 0.0  ;;  %v4297_v30 = vmul.f32 1.442695, %v4286_v53  ;;  %v4295_v12 = vmul.f32 1.442695, %v4285_v0 }
0x1782   :  { %8599 = vmatprep.subr.bf16.mxu0 %v8598_v11  ;;  %4300 = vadd.xlane.f32.xlu0 %v4299_v45  ;;  %9522 = vpow2.f32 %v4293_v14 }
0x1783   :  { %8601 = vmatpush3.bf16.msra.mxu0 %v8598_v11  ;;  %9524 = vpow2.f32 %v4297_v30 }
0x1784   :  { %8604 = vmatprep.subr.msk.bf16.mxu0 %vm9861_vm5, %v8602_v59  ;;  %9526 = vpow2.f32 %v4295_v12  ;;  %v9521_v20 = vpop.eup %9520 }
0x1785   :  { %v4305_v27 = vsel %vm337_vm6, %v9521_v20, 0.0 }
0x1787   :  { %8607 = vmatpush3.bf16.msk.msra.mxu0 %vm9861_vm5, %v8602_v59 }
0x178c   :  { %v9523_v63 = vpop.eup %9522 }
0x178d   :  { %v9525_v11 = vpop.eup %9524  ;;  %v4308_v45 = vsel %vm337_vm6, %v9523_v63, 0.0 }
0x178e   :  { %v4314_v31 = vsel %vm337_vm6, %v9525_v11, 0.0  ;;  %v9527_v55 = vpop.eup %9526 }
0x178f   :  { %v4311_v16 = vsel %vm337_vm6, %v9527_v55, 0.0 }
0x1792   :  { %9127 = vrot.lane.b32.xlu1 %v10730_v37, %s9705_s29 }
0x1798   :  { %9132 = vrot.lane.b32.xlu0 %v10740_v29, %s9705_s29 }
0x17b6   :  { %4306 = vadd.xlane.f32.xlu1 %v4305_v27 }
0x17b7   :  { %4309 = vadd.xlane.f32.xlu0 %v4308_v45 }
0x17ba   :  { %4315 = vadd.xlane.f32.xlu1 %v4314_v31 }
0x17be   :  { %4312 = vadd.xlane.f32.xlu1 %v4311_v16 }
0x17cd   :  { %9137 = vrot.lane.b32.xlu0 %v10752_v5, %s9705_s29 }
0x17cf   :  { %4461 = vrot.lane.b32.xlu1 %v10726_v25, %s9706_s30 }
0x17d1   :  { %4463 = vrot.lane.b32.xlu0 %v10724_v36, %s9706_s30 }
0x17d3   :  { %4465 = vrot.lane.b32.xlu1 %v10736_v34, %s9706_s30 }
0x17d5   :  { %4467 = vrot.lane.b32.xlu0 %v10734_v60, %s9706_s30 }
0x17d7   :  { %4469 = vrot.lane.b32.xlu1 %v10748_v50, %s9706_s30 }
0x17d9   :  { %4471 = vrot.lane.b32.xlu0 %v10746_v2, %s9706_s30 }
0x180e   :  { %v4304_v61 = vpop.xlane.xlu1 %4303 }
0x180f   :  { %9528 = vrcp.f32 %v4304_v61  ;;  %v4301_v41 = vpop.xlane.xlu0 %4300 }
0x1810   :  { %9530 = vrcp.f32 %v4301_v41 }
0x1812   :  { %v9128_v25 = vpop.permute.xlu1 %9127 }
0x1813   :  { %v9130_v3 = vunpack.i.h.bf16 %v9128_v25  ;;  %v9129_v52 = vunpack.i.l.bf16 %v9128_v25  ;;  %v9133_v39 = vpop.permute.xlu0 %9132 }
0x1814   :  { %v9135_v59 = vunpack.i.h.bf16 %v9133_v39  ;;  %v9134_v13 = vunpack.i.l.bf16 %v9133_v39 }
0x1815   :  { %v8608_v36 = vpack.c.bf16 %v9130_v3, %v9129_v52 }
0x1816   :  { %v8614_v2 = vpack.c.bf16 %v9135_v59, %v9134_v13 }
0x1817   :  { %8610 = vmatprep.subr.msk.bf16.mxu0 %vm9831_vm2, %v8608_v36 }
0x1819   :  { %v9529_v34 = vpop.eup %9528 }
0x181a   :  { %v9531_v60 = vpop.eup %9530  ;;  %v4324_v46 = vmul.f32 %v9529_v34, %v9517_v26 }
0x181b   :  { %v4323_v50 = vmul.f32 %v9531_v60, %v9519_v22 }
0x181d   :  { %7987 = vmatprep.mubr.msk.f32.mxu0 %vm337_vm6, %v4323_v50 }
0x181e   :  { %7988 = vmatmul.mubr.msk.f32.vlgmr.msra.gmra.mrb[84].mxu0 %vm337_vm6, %v4324_v46 }
0x181f   :  { %8613 = vmatpush3.bf16.xpose.msk.msra.mxu0 %vm9831_vm2, %v8608_v36 }
0x1820   :  { %8616 = vmatprep.subr.msk.bf16.mxu0 %vm9831_vm2, %v8614_v2 }
0x1827   :  { %8619 = vmatpush3.bf16.xpose.msk.msra.mxu0 %vm9831_vm2, %v8614_v2 }
0x1843   :  { %v4307_v47 = vpop.xlane.xlu1 %4306 }
0x1844   :  { %9532 = vrcp.f32 %v4307_v47  ;;  %v4310_v53 = vpop.xlane.xlu0 %4309 }
0x1845   :  { %9534 = vrcp.f32 %v4310_v53 }
0x1847   :  { %v4316_v22 = vpop.xlane.xlu1 %4315 }
0x1848   :  { %v9138_v26 = vpop.permute.xlu0 %9137  ;;  %9536 = vrcp.f32 %v4316_v22 }
0x1849   :  { %v9140_v14 = vunpack.i.h.bf16 %v9138_v26  ;;  %v9139_v30 = vunpack.i.l.bf16 %v9138_v26 }
0x184b   :  { %v8620_v0 = vpack.c.bf16 %v9140_v14, %v9139_v30  ;;  %v4313_v12 = vpop.xlane.xlu1 %4312 }
0x184c   :  { %9538 = vrcp.f32 %v4313_v12  ;;  %v4464_v36 = vpop.permute.xlu0 %4463 }
0x184d   :  { %8622 = vmatprep.subr.msk.bf16.mxu0 %vm9831_vm2, %v8620_v0 }
0x184e   :  { %v9533_v27 = vpop.eup %9532  ;;  %8625 = vmatpush3.bf16.xpose.msk.msra.mxu0 %vm9831_vm2, %v8620_v0 }
0x184f   :  { %v9535_v45 = vpop.eup %9534  ;;  %v4325_v31 = vmul.f32 %v9533_v27, %v9521_v20  ;;  %v4462_v25 = vpop.permute.xlu1 %4461 }
0x1850   :  { %v4326_v16 = vmul.f32 %v9535_v45, %v9523_v63  ;;  %v4468_v20 = vpop.permute.xlu0 %4467 }
0x1851   :  { %7990 = vmatprep.mubr.msk.f32.mxu0 %vm337_vm6, %v4325_v31 }
0x1852   :  { %7991 = vmatmul.mubr.msk.f32.gmra.mrb[86].mxu0 %vm337_vm6, %v4326_v16  ;;  %v9537_v61 = vpop.eup %9536 }
0x1853   :  { %v4328_v52 = vmul.f32 %v9537_v61, %v9525_v11  ;;  %v4466_v39 = vpop.permute.xlu1 %4465 }
0x1856   :  { %v9539_v41 = vpop.eup %9538 }
0x1857   :  { %v4327_v3 = vmul.f32 %v9539_v41, %v9527_v55  ;;  %v4470_v63 = vpop.permute.xlu1 %4469  ;;  %v4472_v55 = vpop.permute.xlu0 %4471 }
0x1859   :  { %7993 = vmatprep.mubr.msk.f32.mxu0 %vm337_vm6, %v4327_v3 }
0x185a   :  { %7994 = vmatmul.mubr.msk.f32.gmra.mrb[88].mxu0 %vm337_vm6, %v4328_v52 }
0x185b   :  { %8008 = vmatprep.mubr.msk.f32.mxu0 %vm217_vm1, %v4462_v25 }
0x185e   :  { %8009 = vmatmul.mubr.msk.f32.vlgmr.msra.gmra.mrb[90].mxu0 %vm217_vm1, %v4464_v36 }
0x185f   :  { %8011 = vmatprep.mubr.msk.f32.mxu0 %vm217_vm1, %v4466_v39 }
0x1862   :  { %8012 = vmatmul.mubr.msk.f32.gmra.mrb[92].mxu0 %vm217_vm1, %v4468_v20 }
0x1863   :  { %8014 = vmatprep.mubr.msk.f32.mxu0 %vm217_vm1, %v4470_v63 }
0x1866   :  { %8015 = vmatmul.mubr.msk.f32.gmra.mrb[94].mxu0 %vm217_vm1, %v4472_v55 }
0x18f1   :  { %v11162_v11 = vpop.f32.mrb[84].mxu0 }
0x18f2   :  { %v11164_v34 = vpop.f32.mrb[85].mxu0 }
0x1925   :  { %v11166_v60 = vpop.f32.mrb[86].mxu0 }
0x1926   :  { %v11168_v59 = vpop.f32.mrb[87].mxu0 }
0x192d   :  { %v11170_v13 = vpop.f32.mrb[88].mxu0 }
0x192e   :  { %v11172_v50 = vpop.f32.mrb[89].mxu0 }
0x1931   :  { %v8010_v46 = vpop.f32.mrb[90].mxu0 }
0x1932   :  { %v4575_v2 = vpop.f32.mrb[91].mxu0  ;;  %v4607_v47 = vsel %vm337_vm6, %v8010_v46, -inf }
0x1933   :  { %4608 = vmax.xlane.f32.xlu0 %v4607_v47  ;;  %v4604_v53 = vsel %vm337_vm6, %v4575_v2, -inf }
0x1934   :  { %4605 = vmax.xlane.f32.xlu1 %v4604_v53 }
0x1935   :  { %v8013_v22 = vpop.f32.mrb[92].mxu0 }
0x1936   :  { %v4585_v26 = vpop.f32.mrb[93].mxu0  ;;  %v4613_v14 = vsel %vm337_vm6, %v8013_v22, -inf }
0x1937   :  { %v4610_v30 = vsel %vm337_vm6, %v4585_v26, -inf }
0x1938   :  { %4614 = vmax.xlane.f32.xlu1 %v4613_v14  ;;  %4611 = vmax.xlane.f32.xlu0 %v4610_v30 }
0x1939   :  { %v8016_v0 = vpop.f32.mrb[94].mxu0 }
0x193a   :  { %v4595_v12 = vpop.f32.mrb[95].mxu0  ;;  %v4619_v27 = vsel %vm337_vm6, %v8016_v0, -inf }
0x193b   :  { %v4616_v45 = vsel %vm337_vm6, %v4595_v12, -inf }
0x193c   :  { %4620 = vmax.xlane.f32.xlu1 %v4619_v27  ;;  %4617 = vmax.xlane.f32.xlu0 %v4616_v45 }
0x194d   :  { %9147 = vrot.lane.b32.xlu1 %v10740_v29, %s9707_s5 }
0x1952   :  { %9142 = vrot.lane.b32.xlu0 %v10730_v37, %s9707_s5 }
0x1956   :  { %9152 = vrot.lane.b32.xlu0 %v10752_v5, %s9707_s5 }
0x19c0   :  { %v4609_v31 = vpop.xlane.xlu0 %4608 }
0x19c1   :  { %v4623_v16 = vsub.f32 %v8010_v46, %v4609_v31  ;;  %v4606_v61 = vpop.xlane.xlu1 %4605 }
0x19c2   :  { %v4622_v41 = vsub.f32 %v4575_v2, %v4606_v61 }
0x19c3   :  { %v4630_v25 = vmul.f32 1.442695, %v4623_v16 }
0x19c4   :  { %v4628_v3 = vmul.f32 1.442695, %v4622_v41 }
0x19c5   :  { %9540 = vpow2.f32 %v4630_v25  ;;  %v4615_v52 = vpop.xlane.xlu1 %4614  ;;  %v4612_v36 = vpop.xlane.xlu0 %4611 }
0x19c6   :  { %9542 = vpow2.f32 %v4628_v3  ;;  %v4625_v39 = vsub.f32 %v8013_v22, %v4615_v52  ;;  %v4624_v20 = vsub.f32 %v4585_v26, %v4612_v36 }
0x19c8   :  { %v4634_v63 = vmul.f32 1.442695, %v4625_v39  ;;  %v4632_v29 = vmul.f32 1.442695, %v4624_v20 }
0x19c9   :  { %v4621_v55 = vpop.xlane.xlu1 %4620  ;;  %v4618_v47 = vpop.xlane.xlu0 %4617 }
0x19ca   :  { %9544 = vpow2.f32 %v4634_v63  ;;  %v4627_v37 = vsub.f32 %v8016_v0, %v4621_v55  ;;  %v4626_v53 = vsub.f32 %v4595_v12, %v4618_v47 }
0x19cb   :  { %9546 = vpow2.f32 %v4632_v29 }
0x19cc   :  { %v4638_v5 = vmul.f32 1.442695, %v4627_v37  ;;  %v4636_v46 = vmul.f32 1.442695, %v4626_v53 }
0x19cd   :  { %v9148_v14 = vpop.permute.xlu1 %9147  ;;  %v9143_v2 = vpop.permute.xlu0 %9142 }
0x19ce   :  { %9548 = vpow2.f32 %v4638_v5  ;;  %v9145_v30 = vunpack.i.h.bf16 %v9143_v2  ;;  %v9150_v45 = vunpack.i.h.bf16 %v9148_v14  ;;  %v9149_v31 = vunpack.i.l.bf16 %v9148_v14 }
0x19cf   :  { %v9541_v27 = vpop.eup %9540  ;;  %v9144_v16 = vunpack.i.l.bf16 %v9143_v2  ;;  %9550 = vpow2.f32 %v4636_v46 }
0x19d0   :  { %v9543_v22 = vpop.eup %9542  ;;  %v4643_v26 = vsel %vm337_vm6, %v9541_v27, 0.0  ;;  %v8630_v3 = vpack.c.bf16 %v9150_v45, %v9149_v31 }
0x19d1   :  { %4644 = vadd.xlane.f32.xlu1 %v4643_v26  ;;  %v9153_v61 = vpop.permute.xlu0 %9152  ;;  %v4640_v0 = vsel %vm337_vm6, %v9543_v22, 0.0  ;;  %v8626_v12 = vpack.c.bf16 %v9145_v30, %v9144_v16 }
0x19d2   :  { %4641 = vadd.xlane.f32.xlu0 %v4640_v0  ;;  %v9155_v41 = vunpack.i.h.bf16 %v9153_v61  ;;  %v9154_v25 = vunpack.i.l.bf16 %v9153_v61 }
0x19d3   :  { %8627 = vmatprep.subr.bf16.mxu1 %v8626_v12 }
0x19d4   :  { %v9545_v52 = vpop.eup %9544  ;;  %8629 = vmatpush3.bf16.msra.mxu1 %v8626_v12  ;;  %v8634_v63 = vpack.c.bf16 %v9155_v41, %v9154_v25 }
0x19d5   :  { %v9547_v36 = vpop.eup %9546  ;;  %8631 = vmatprep.subr.bf16.mxu1 %v8630_v3  ;;  %v4649_v39 = vsel %vm337_vm6, %v9545_v52, 0.0 }
0x19d6   :  { %v4646_v20 = vsel %vm337_vm6, %v9547_v36, 0.0  ;;  %4650 = vadd.xlane.f32.xlu0 %v4649_v39 }
0x19d7   :  { %4647 = vadd.xlane.f32.xlu1 %v4646_v20 }
0x19d8   :  { %v9549_v29 = vpop.eup %9548  ;;  %8633 = vmatpush3.bf16.msra.mxu1 %v8630_v3 }
0x19d9   :  { %8636 = vmatprep.subr.msk.bf16.mxu1 %vm9861_vm5, %v8634_v63  ;;  %v4655_v55 = vsel %vm337_vm6, %v9549_v29, 0.0  ;;  %v9551_v47 = vpop.eup %9550 }
0x19da   :  { %v4652_v37 = vsel %vm337_vm6, %v9551_v47, 0.0 }
0x19db   :  { %4656 = vadd.xlane.f32.xlu1 %v4655_v55 }
0x19dc   :  { %8639 = vmatpush3.bf16.msk.msra.mxu1 %vm9861_vm5, %v8634_v63 }
0x19df   :  { %4653 = vadd.xlane.f32.xlu1 %v4652_v37 }
0x19ec   :  { %9162 = vrot.lane.b32.xlu0 %v10981_v1, %s9696_s9 }
0x19f0   :  { %9157 = vrot.lane.b32.xlu1 %v10878_v18, %s9696_s9  ;;  %9167 = vrot.lane.b32.xlu0 %v10992_v32, %s9696_s9 }
0x19f4   :  { %9172 = vrot.lane.b32.xlu0 %v10878_v18, %s9699_s12 }
0x1a5e   :  { %v4645_v53 = vpop.xlane.xlu1 %4644 }
0x1a5f   :  { %9552 = vrcp.f32 %v4645_v53  ;;  %v4642_v5 = vpop.xlane.xlu0 %4641 }
0x1a60   :  { %9554 = vrcp.f32 %v4642_v5 }
0x1a63   :  { %v4651_v46 = vpop.xlane.xlu0 %4650 }
0x1a64   :  { %v4648_v14 = vpop.xlane.xlu1 %4647  ;;  %9556 = vrcp.f32 %v4651_v46 }
0x1a65   :  { %9558 = vrcp.f32 %v4648_v14 }
0x1a67   :  { %v9163_v2 = vpop.permute.xlu0 %9162 }
0x1a68   :  { %v4657_v30 = vpop.xlane.xlu1 %4656  ;;  %v9165_v37 = vunpack.i.h.bf16 %v9163_v2  ;;  %v9164_v53 = vunpack.i.l.bf16 %v9163_v2 }
0x1a69   :  { %v9553_v45 = vpop.eup %9552  ;;  %9560 = vrcp.f32 %v4657_v30 }
0x1a6a   :  { %v9555_v31 = vpop.eup %9554  ;;  %v4665_v61 = vmul.f32 %v9553_v45, %v9541_v27  ;;  %v8646_v14 = vpack.c.bf16 %v9165_v37, %v9164_v53 }
0x1a6b   :  { %v9168_v16 = vpop.permute.xlu0 %9167  ;;  %v4664_v26 = vmul.f32 %v9555_v31, %v9543_v22 }
0x1a6c   :  { %v4654_v0 = vpop.xlane.xlu1 %4653  ;;  %v9170_v30 = vunpack.i.h.bf16 %v9168_v16  ;;  %v9169_v45 = vunpack.i.l.bf16 %v9168_v16 }
0x1a6d   :  { %9562 = vrcp.f32 %v4654_v0  ;;  %8029 = vmatprep.mubr.msk.f32.mxu1 %vm337_vm6, %v4664_v26 }
0x1a6e   :  { %v9557_v12 = vpop.eup %9556  ;;  %8030 = vmatmul.mubr.msk.f32.vlgmr.msra.gmra.mrb[78].mxu1 %vm337_vm6, %v4665_v61  ;;  %v8652_v26 = vpack.c.bf16 %v9170_v30, %v9169_v45 }
0x1a6f   :  { %v9559_v41 = vpop.eup %9558  ;;  %v9173_v25 = vpop.permute.xlu0 %9172  ;;  %v4667_v3 = vmul.f32 %v9557_v12, %v9545_v52 }
0x1a70   :  { %v9158_v39 = vpop.permute.xlu1 %9157  ;;  %v9175_v20 = vunpack.i.h.bf16 %v9173_v25  ;;  %v9174_v63 = vunpack.i.l.bf16 %v9173_v25  ;;  %v4666_v55 = vmul.f32 %v9559_v41, %v9547_v36 }
0x1a71   :  { %v9160_v5 = vunpack.i.h.bf16 %v9158_v39  ;;  %v9159_v22 = vunpack.i.l.bf16 %v9158_v39 }
0x1a72   :  { %8032 = vmatprep.mubr.msk.f32.mxu1 %vm337_vm6, %v4666_v55  ;;  %v8658_v27 = vpack.c.bf16 %v9175_v20, %v9174_v63 }
0x1a73   :  { %v8640_v46 = vpack.c.bf16 %v9160_v5, %v9159_v22  ;;  %8033 = vmatmul.mubr.msk.f32.gmra.mrb[80].mxu1 %vm337_vm6, %v4667_v3  ;;  %v9561_v52 = vpop.eup %9560 }
0x1a74   :  { %8659 = vmatprep.subr.bf16.mxu0 %v8658_v27  ;;  %v4669_v31 = vmul.f32 %v9561_v52, %v9549_v29 }
0x1a75   :  { %8642 = vmatprep.subr.msk.bf16.mxu1 %vm9831_vm2, %v8640_v46  ;;  %8661 = vmatpush3.bf16.msra.mxu0 %v8658_v27 }
0x1a76   :  { %8645 = vmatpush3.bf16.xpose.msk.msra.mxu1 %vm9831_vm2, %v8640_v46 }
0x1a77   :  { %v9563_v36 = vpop.eup %9562  ;;  %8648 = vmatprep.subr.msk.bf16.mxu1 %vm9831_vm2, %v8646_v14 }
0x1a78   :  { %v4668_v2 = vmul.f32 %v9563_v36, %v9551_v47 }
0x1a7a   :  { %8035 = vmatprep.mubr.msk.f32.mxu1 %vm337_vm6, %v4668_v2 }
0x1a7b   :  { %8036 = vmatmul.mubr.msk.f32.gmra.mrb[82].mxu1 %vm337_vm6, %v4669_v31 }
0x1a7c   :  { %8050 = vmatprep.mubr.msk.f32.mxu1 %vm217_vm1, %v10874_v48 }
0x1a7e   :  { %8651 = vmatpush3.bf16.xpose.msk.msra.mxu1 %vm9831_vm2, %v8646_v14 }
0x1a7f   :  { %8654 = vmatprep.subr.msk.bf16.mxu1 %vm9831_vm2, %v8652_v26 }
0x1a86   :  { %8657 = vmatpush3.bf16.xpose.msk.msra.mxu1 %vm9831_vm2, %v8652_v26 }
0x1a8d   :  { %8051 = vmatmul.mubr.msk.f32.vlgmr.msra.gmra.mrb[84].mxu1 %vm217_vm1, %v10872_v9 }
0x1a8e   :  { %8053 = vmatprep.mubr.msk.f32.mxu1 %vm217_vm1, %v10977_v28 }
0x1a91   :  { %8054 = vmatmul.mubr.msk.f32.gmra.mrb[86].mxu1 %vm217_vm1, %v10973_v10 }
0x1a92   :  { %8056 = vmatprep.mubr.msk.f32.mxu1 %vm217_vm1, %v10988_v35 }
0x1a95   :  { %8057 = vmatmul.mubr.msk.f32.gmra.mrb[88].mxu1 %vm217_vm1, %v10985_v51 }
0x1b41   :  { %v11234_v29 = vpop.f32.mrb[78].mxu1 }
0x1b42   :  { %v11236_v47 = vpop.f32.mrb[79].mxu1 }
0x1b46   :  { %v11238_v16 = vpop.f32.mrb[80].mxu1 }
0x1b47   :  { %v11240_v61 = vpop.f32.mrb[81].mxu1 }
0x1b4e   :  { %v11242_v0 = vpop.f32.mrb[82].mxu1 }
0x1b4f   :  { %v11244_v12 = vpop.f32.mrb[83].mxu1 }
0x1b60   :  { %v8052_v41 = vpop.f32.mrb[84].mxu1 }
0x1b61   :  { %v5000_v25 = vpop.f32.mrb[85].mxu1  ;;  %v5032_v3 = vsel %vm337_vm6, %v8052_v41, -inf }
0x1b62   :  { %5033 = vmax.xlane.f32.xlu0 %v5032_v3  ;;  %v5029_v39 = vsel %vm337_vm6, %v5000_v25, -inf }
0x1b63   :  { %5030 = vmax.xlane.f32.xlu1 %v5029_v39 }
0x1b64   :  { %v8055_v20 = vpop.f32.mrb[86].mxu1 }
0x1b65   :  { %v5010_v63 = vpop.f32.mrb[87].mxu1  ;;  %v5038_v55 = vsel %vm337_vm6, %v8055_v20, -inf }
0x1b66   :  { %v5035_v37 = vsel %vm337_vm6, %v5010_v63, -inf }
0x1b67   :  { %5039 = vmax.xlane.f32.xlu1 %v5038_v55  ;;  %5036 = vmax.xlane.f32.xlu0 %v5035_v37 }
0x1b68   :  { %v8058_v53 = vpop.f32.mrb[88].mxu1 }
0x1b69   :  { %v5020_v5 = vpop.f32.mrb[89].mxu1  ;;  %v5044_v22 = vsel %vm337_vm6, %v8058_v53, -inf }
0x1b6a   :  { %v5041_v27 = vsel %vm337_vm6, %v5020_v5, -inf }
0x1b6b   :  { %5045 = vmax.xlane.f32.xlu1 %v5044_v22  ;;  %5042 = vmax.xlane.f32.xlu0 %v5041_v27 }
0x1b7c   :  { %9177 = vrot.lane.b32.xlu1 %v10981_v1, %s9699_s12 }
0x1b81   :  { %9182 = vrot.lane.b32.xlu0 %v10992_v32, %s9699_s12 }
0x1bef   :  { %v5034_v46 = vpop.xlane.xlu0 %5033 }
0x1bf0   :  { %v5048_v14 = vsub.f32 %v8052_v41, %v5034_v46  ;;  %v5031_v52 = vpop.xlane.xlu1 %5030 }
0x1bf1   :  { %v5047_v36 = vsub.f32 %v5000_v25, %v5031_v52 }
0x1bf2   :  { %v5055_v2 = vmul.f32 1.442695, %v5048_v14 }
0x1bf3   :  { %v5053_v30 = vmul.f32 1.442695, %v5047_v36 }
0x1bf4   :  { %9564 = vpow2.f32 %v5055_v2  ;;  %v5040_v45 = vpop.xlane.xlu1 %5039  ;;  %v5037_v31 = vpop.xlane.xlu0 %5036 }
0x1bf5   :  { %9566 = vpow2.f32 %v5053_v30  ;;  %v5049_v52 = vsub.f32 %v5010_v63, %v5037_v31  ;;  %v5050_v36 = vsub.f32 %v8055_v20, %v5040_v45 }
0x1bf7   :  { %v5057_v2 = vmul.f32 1.442695, %v5049_v52 }
0x1bf8   :  { %v5046_v26 = vpop.xlane.xlu1 %5045  ;;  %v5043_v3 = vpop.xlane.xlu0 %5042 }
0x1bf9   :  { %v5052_v30 = vsub.f32 %v8058_v53, %v5046_v26  ;;  %9568 = vpow2.f32 %v5057_v2 }
0x1bfc   :  { %v9178_v39 = vpop.permute.xlu1 %9177  ;;  %v9183_v55 = vpop.permute.xlu0 %9182 }
0x1bfd   :  { %v9180_v37 = vunpack.i.h.bf16 %v9178_v39  ;;  %v9179_v22 = vunpack.i.l.bf16 %v9178_v39  ;;  %v9185_v27 = vunpack.i.h.bf16 %v9183_v55  ;;  %v9184_v40 = vunpack.i.l.bf16 %v9183_v55 }
0x1bfe   :  { %v9565_v33 = vpop.eup %9564  ;;  %v5063_v39 = vmul.f32 1.442695, %v5052_v30  ;;  %v5051_v55 = vsub.f32 %v5020_v5, %v5043_v3 }
0x1bff   :  { %v9567_v57 = vpop.eup %9566  ;;  %v5068_v41 = vsel %vm337_vm6, %v9565_v33, 0.0  ;;  %v8662_v46 = vpack.c.bf16 %v9180_v37, %v9179_v22  ;;  %v8666_v14 = vpack.c.bf16 %v9185_v27, %v9184_v40  ;;  %v5059_v40 = vmul.f32 1.442695, %v5050_v36 }
0x1c00   :  { %5069 = vadd.xlane.f32.xlu1 %v5068_v41  ;;  %v5065_v25 = vsel %vm337_vm6, %v9567_v57, 0.0  ;;  %v5061_v37 = vmul.f32 1.442695, %v5051_v55 }
0x1c01   :  { %8663 = vmatprep.subr.bf16.mxu0 %v8662_v46  ;;  %5066 = vadd.xlane.f32.xlu0 %v5065_v25  ;;  %9570 = vpow2.f32 %v5059_v40 }
0x1c02   :  { %8665 = vmatpush3.bf16.msra.mxu0 %v8662_v46  ;;  %9572 = vpow2.f32 %v5063_v39 }
0x1c03   :  { %8668 = vmatprep.subr.msk.bf16.mxu0 %vm9861_vm5, %v8666_v14  ;;  %9574 = vpow2.f32 %v5061_v37  ;;  %v9569_v22 = vpop.eup %9568 }
0x1c04   :  { %v5071_v41 = vsel %vm337_vm6, %v9569_v22, 0.0 }
0x1c06   :  { %8671 = vmatpush3.bf16.msk.msra.mxu0 %vm9861_vm5, %v8666_v14 }
0x1c0b   :  { %v9571_v27 = vpop.eup %9570 }
0x1c0c   :  { %v11267_v46 = vpop.eup %9572  ;;  %v5074_v63 = vsel %vm337_vm6, %v9571_v27, 0.0 }
0x1c0d   :  { %v5080_v20 = vsel %vm337_vm6, %v11267_v46, 0.0  ;;  %v9575_v53 = vpop.eup %9574 }
0x1c0e   :  { %v5077_v5 = vsel %vm337_vm6, %v9575_v53, 0.0 }
0x1c11   :  { %9187 = vrot.lane.b32.xlu1 %v10878_v18, %s9697_s10 }
0x1c17   :  { %9192 = vrot.lane.b32.xlu0 %v10981_v1, %s9697_s10 }
0x1c35   :  { %5072 = vadd.xlane.f32.xlu1 %v5071_v41 }
0x1c36   :  { %5075 = vadd.xlane.f32.xlu0 %v5074_v63 }
0x1c39   :  { %5081 = vadd.xlane.f32.xlu1 %v5080_v20 }
0x1c3d   :  { %5078 = vadd.xlane.f32.xlu1 %v5077_v5 }
0x1c4c   :  { %9197 = vrot.lane.b32.xlu0 %v10992_v32, %s9697_s10 }
0x1c4e   :  { %5227 = vrot.lane.b32.xlu1 %v10874_v48, %s9698_s11 }
0x1c50   :  { %5229 = vrot.lane.b32.xlu0 %v10872_v9, %s9698_s11 }
0x1c52   :  { %5231 = vrot.lane.b32.xlu1 %v10977_v28, %s9698_s11 }
0x1c54   :  { %5233 = vrot.lane.b32.xlu0 %v10973_v10, %s9698_s11 }
0x1c56   :  { %5235 = vrot.lane.b32.xlu1 %v10988_v35, %s9698_s11 }
0x1c58   :  { %5237 = vrot.lane.b32.xlu0 %v10985_v51, %s9698_s11 }
0x1c5c   :  { %9202 = vrot.lane.b32.xlu0 %v10878_v18, %s9701_s13 }
0x1c8d   :  { %v5070_v45 = vpop.xlane.xlu1 %5069 }
0x1c8e   :  { %9576 = vrcp.f32 %v5070_v45  ;;  %v5067_v31 = vpop.xlane.xlu0 %5066 }
0x1c8f   :  { %9578 = vrcp.f32 %v5067_v31 }
0x1c91   :  { %v9188_v26 = vpop.permute.xlu1 %9187 }
0x1c92   :  { %v9190_v3 = vunpack.i.h.bf16 %v9188_v26  ;;  %v9189_v25 = vunpack.i.l.bf16 %v9188_v26  ;;  %v9193_v52 = vpop.permute.xlu0 %9192 }
0x1c93   :  { %v9195_v30 = vunpack.i.h.bf16 %v9193_v52  ;;  %v9194_v40 = vunpack.i.l.bf16 %v9193_v52 }
0x1c94   :  { %v8672_v14 = vpack.c.bf16 %v9190_v3, %v9189_v25 }
0x1c95   :  { %v8678_v37 = vpack.c.bf16 %v9195_v30, %v9194_v40 }
0x1c96   :  { %8674 = vmatprep.subr.msk.bf16.mxu0 %vm9831_vm2, %v8672_v14 }
0x1c98   :  { %v9577_v36 = vpop.eup %9576 }
0x1c99   :  { %v9579_v2 = vpop.eup %9578  ;;  %v5090_v55 = vmul.f32 %v9577_v36, %v9565_v33 }
0x1c9a   :  { %v5089_v39 = vmul.f32 %v9579_v2, %v9567_v57 }
0x1c9c   :  { %8071 = vmatprep.mubr.msk.f32.mxu0 %vm337_vm6, %v5089_v39 }
0x1c9d   :  { %8072 = vmatmul.mubr.msk.f32.vlgmr.msra.gmra.mrb[96].mxu0 %vm337_vm6, %v5090_v55 }
0x1c9e   :  { %8677 = vmatpush3.bf16.xpose.msk.msra.mxu0 %vm9831_vm2, %v8672_v14 }
0x1c9f   :  { %8680 = vmatprep.subr.msk.bf16.mxu0 %vm9831_vm2, %v8678_v37 }
0x1ca6   :  { %8683 = vmatpush3.bf16.xpose.msk.msra.mxu0 %vm9831_vm2, %v8678_v37 }
0x1cc2   :  { %v5073_v41 = vpop.xlane.xlu1 %5072 }
0x1cc3   :  { %9580 = vrcp.f32 %v5073_v41  ;;  %v5076_v63 = vpop.xlane.xlu0 %5075 }
0x1cc4   :  { %9582 = vrcp.f32 %v5076_v63 }
0x1cc6   :  { %v5082_v57 = vpop.xlane.xlu1 %5081 }
0x1cc7   :  { %v9198_v33 = vpop.permute.xlu0 %9197  ;;  %9584 = vrcp.f32 %v5082_v57 }
0x1cc8   :  { %v9200_v20 = vunpack.i.h.bf16 %v9198_v33  ;;  %v9199_v5 = vunpack.i.l.bf16 %v9198_v33 }
0x1cca   :  { %v8684_v45 = vpack.c.bf16 %v9200_v20, %v9199_v5  ;;  %v5079_v31 = vpop.xlane.xlu1 %5078 }
0x1ccb   :  { %9586 = vrcp.f32 %v5079_v31  ;;  %v5230_v26 = vpop.permute.xlu0 %5229 }
0x1ccc   :  { %8686 = vmatprep.subr.msk.bf16.mxu0 %vm9831_vm2, %v8684_v45 }
0x1ccd   :  { %v9581_v3 = vpop.eup %9580  ;;  %8689 = vmatpush3.bf16.xpose.msk.msra.mxu0 %vm9831_vm2, %v8684_v45 }
0x1cce   :  { %v9583_v25 = vpop.eup %9582  ;;  %v5091_v14 = vmul.f32 %v9581_v3, %v9569_v22  ;;  %v5228_v39 = vpop.permute.xlu1 %5227 }
0x1ccf   :  { %v5234_v52 = vpop.permute.xlu0 %5233  ;;  %v5092_v36 = vmul.f32 %v9583_v25, %v9571_v27 }
0x1cd0   :  { %8074 = vmatprep.mubr.msk.f32.mxu0 %vm337_vm6, %v5091_v14 }
0x1cd1   :  { %8075 = vmatmul.mubr.msk.f32.gmra.mrb[98].mxu0 %vm337_vm6, %v5092_v36  ;;  %v9585_v30 = vpop.eup %9584 }
0x1cd2   :  { %v5094_v41 = vmul.f32 %v9585_v30, %v11267_v46  ;;  %v5232_v27 = vpop.permute.xlu1 %5231 }
0x1cd3   :  { %v5238_v2 = vpop.permute.xlu0 %5237 }
0x1cd5   :  { %v9587_v40 = vpop.eup %9586 }
0x1cd6   :  { %v5093_v55 = vmul.f32 %v9587_v40, %v9575_v53  ;;  %v5236_v53 = vpop.permute.xlu1 %5235 }
0x1cd7   :  { %v9203_v37 = vpop.permute.xlu0 %9202 }
0x1cd8   :  { %v9205_v63 = vunpack.i.h.bf16 %v9203_v37  ;;  %v9204_v57 = vunpack.i.l.bf16 %v9203_v37  ;;  %8077 = vmatprep.mubr.msk.f32.mxu0 %vm337_vm6, %v5093_v55 }
0x1cd9   :  { %8078 = vmatmul.mubr.msk.f32.gmra.mrb[100].mxu0 %vm337_vm6, %v5094_v41 }
0x1cda   :  { %8092 = vmatprep.mubr.msk.f32.mxu0 %vm217_vm1, %v5228_v39  ;;  %v8690_v22 = vpack.c.bf16 %v9205_v63, %v9204_v57 }
0x1cdc   :  { %8691 = vmatprep.subr.bf16.mxu1 %v8690_v22 }
0x1cdd   :  { %8093 = vmatmul.mubr.msk.f32.vlgmr.msra.gmra.mrb[102].mxu0 %vm217_vm1, %v5230_v26  ;;  %8693 = vmatpush3.bf16.msra.mxu1 %v8690_v22 }
0x1cde   :  { %8095 = vmatprep.mubr.msk.f32.mxu0 %vm217_vm1, %v5232_v27 }
0x1ce1   :  { %8096 = vmatmul.mubr.msk.f32.gmra.mrb[104].mxu0 %vm217_vm1, %v5234_v52 }
0x1ce2   :  { %8098 = vmatprep.mubr.msk.f32.mxu0 %vm217_vm1, %v5236_v53 }
0x1ce5   :  { %8099 = vmatmul.mubr.msk.f32.gmra.mrb[106].mxu0 %vm217_vm1, %v5238_v2 }
0x1d70   :  { %v11314_v46 = vpop.f32.mrb[96].mxu0 }
0x1d71   :  { %v11316_v33 = vpop.f32.mrb[97].mxu0 }
0x1da4   :  { %v11318_v20 = vpop.f32.mrb[98].mxu0 }
0x1da5   :  { %11834 = vst [vmem:[#allocation20_spill] sm:$0xff] %v11318_v20  ;;  %v11320_v5 = vpop.f32.mrb[99].mxu0 }
0x1da6   :  { %11835 = vst [vmem:[#allocation21_spill] sm:$0xff] %v11320_v5 }
0x1dac   :  { %v11322_v45 = vpop.f32.mrb[100].mxu0 }
0x1dad   :  { %11836 = vst [vmem:[#allocation22_spill] sm:$0xff] %v11322_v45  ;;  %v11324_v31 = vpop.f32.mrb[101].mxu0 }
0x1dae   :  { %11837 = vst [vmem:[#allocation23_spill] sm:$0xff] %v11324_v31 }
0x1db0   :  { %v8094_v26 = vpop.f32.mrb[102].mxu0 }
0x1db1   :  { %v5341_v3 = vpop.f32.mrb[103].mxu0  ;;  %v5373_v25 = vsel %vm337_vm6, %v8094_v26, -inf }
0x1db2   :  { %5374 = vmax.xlane.f32.xlu0 %v5373_v25  ;;  %v5370_v14 = vsel %vm337_vm6, %v5341_v3, -inf }
0x1db3   :  { %5371 = vmax.xlane.f32.xlu1 %v5370_v14 }
0x1db4   :  { %v8097_v52 = vpop.f32.mrb[104].mxu0 }
0x1db5   :  { %v5351_v36 = vpop.f32.mrb[105].mxu0  ;;  %v5379_v2 = vsel %vm337_vm6, %v8097_v52, -inf }
0x1db6   :  { %v5376_v30 = vsel %vm337_vm6, %v5351_v36, -inf }
0x1db7   :  { %5380 = vmax.xlane.f32.xlu1 %v5379_v2  ;;  %5377 = vmax.xlane.f32.xlu0 %v5376_v30 }
0x1db8   :  { %v8100_v40 = vpop.f32.mrb[106].mxu0 }
0x1db9   :  { %v5361_v39 = vpop.f32.mrb[107].mxu0  ;;  %v5385_v55 = vsel %vm337_vm6, %v8100_v40, -inf }
0x1dba   :  { %v5382_v37 = vsel %vm337_vm6, %v5361_v39, -inf }
0x1dbb   :  { %5386 = vmax.xlane.f32.xlu1 %v5385_v55  ;;  %5383 = vmax.xlane.f32.xlu0 %v5382_v37 }
0x1dcc   :  { %9207 = vrot.lane.b32.xlu1 %v10981_v1, %s9701_s13 }
0x1dd1   :  { %9212 = vrot.lane.b32.xlu0 %v10992_v32, %s9701_s13 }
0x1e3f   :  { %v5375_v41 = vpop.xlane.xlu0 %5374 }
0x1e40   :  { %v5389_v63 = vsub.f32 %v8094_v26, %v5375_v41  ;;  %v5372_v57 = vpop.xlane.xlu1 %5371 }
0x1e41   :  { %v5388_v22 = vsub.f32 %v5341_v3, %v5372_v57 }
0x1e42   :  { %v5396_v27 = vmul.f32 1.442695, %v5389_v63 }
0x1e43   :  { %v5394_v53 = vmul.f32 1.442695, %v5388_v22 }
0x1e44   :  { %9588 = vpow2.f32 %v5396_v27  ;;  %v5381_v25 = vpop.xlane.xlu1 %5380  ;;  %v5378_v14 = vpop.xlane.xlu0 %5377 }
0x1e45   :  { %9590 = vpow2.f32 %v5394_v53 }
0x1e48   :  { %v5387_v2 = vpop.xlane.xlu1 %5386  ;;  %v5384_v30 = vpop.xlane.xlu0 %5383 }
0x1e49   :  { %v5393_v22 = vsub.f32 %v8100_v40, %v5387_v2  ;;  %v5392_v27 = vsub.f32 %v5361_v39, %v5384_v30 }
0x1e4b   :  { %v5402_v53 = vmul.f32 1.442695, %v5392_v27 }
0x1e4c   :  { %v9208_v55 = vpop.permute.xlu1 %9207  ;;  %v9213_v37 = vpop.permute.xlu0 %9212 }
0x1e4d   :  { %v9210_v45 = vunpack.i.h.bf16 %v9208_v55  ;;  %v9209_v31 = vunpack.i.l.bf16 %v9208_v55  ;;  %v9215_v38 = vunpack.i.h.bf16 %v9213_v37  ;;  %v9214_v42 = vunpack.i.l.bf16 %v9213_v37 }
0x1e4e   :  { %v11336_v19 = vpop.eup %9588 }
0x1e4f   :  { %v9591_v15 = vpop.eup %9590  ;;  %v5409_v26 = vsel %vm337_vm6, %v11336_v19, 0.0  ;;  %v8694_v3 = vpack.c.bf16 %v9210_v45, %v9209_v31  ;;  %v8698_v63 = vpack.c.bf16 %v9215_v38, %v9214_v42  ;;  %v5390_v45 = vsub.f32 %v5351_v36, %v5378_v14 }
0x1e50   :  { %5410 = vadd.xlane.f32.xlu1 %v5409_v26  ;;  %v5406_v41 = vsel %vm337_vm6, %v9591_v15, 0.0  ;;  %v5391_v31 = vsub.f32 %v8097_v52, %v5381_v25  ;;  %v5404_v38 = vmul.f32 1.442695, %v5393_v22 }
0x1e51   :  { %8695 = vmatprep.subr.bf16.mxu1 %v8694_v3  ;;  %5407 = vadd.xlane.f32.xlu0 %v5406_v41  ;;  %v5398_v57 = vmul.f32 1.442695, %v5390_v45 }
0x1e52   :  { %8697 = vmatpush3.bf16.msra.mxu1 %v8694_v3  ;;  %v5400_v42 = vmul.f32 1.442695, %v5391_v31 }
0x1e53   :  { %8700 = vmatprep.subr.msk.bf16.mxu1 %vm9861_vm5, %v8698_v63  ;;  %9592 = vpow2.f32 %v5398_v57 }
0x1e54   :  { %9594 = vpow2.f32 %v5400_v42 }
0x1e55   :  { %9596 = vpow2.f32 %v5404_v38 }
0x1e56   :  { %8703 = vmatpush3.bf16.msk.msra.mxu1 %vm9861_vm5, %v8698_v63  ;;  %9598 = vpow2.f32 %v5402_v53 }
0x1e5d   :  { %v9593_v55 = vpop.eup %9592 }
0x1e5e   :  { %v9595_v37 = vpop.eup %9594  ;;  %v5412_v26 = vsel %vm337_vm6, %v9593_v55, 0.0 }
0x1e5f   :  { %v11350_v3 = vpop.eup %9596  ;;  %v5415_v36 = vsel %vm337_vm6, %v9595_v37, 0.0 }
0x1e60   :  { %v5421_v52 = vsel %vm337_vm6, %v11350_v3, 0.0  ;;  %v11355_v40 = vpop.eup %9598 }
0x1e61   :  { %9217 = vrot.lane.b32.xlu1 %v10878_v18, %s9702_s26  ;;  %v5418_v39 = vsel %vm337_vm6, %v11355_v40, 0.0 }
0x1e67   :  { %9222 = vrot.lane.b32.xlu0 %v10981_v1, %s9702_s26 }
0x1e85   :  { %5413 = vadd.xlane.f32.xlu1 %v5412_v26 }
0x1e86   :  { %5416 = vadd.xlane.f32.xlu0 %v5415_v36 }
0x1e89   :  { %5422 = vadd.xlane.f32.xlu1 %v5421_v52 }
0x1e8d   :  { %5419 = vadd.xlane.f32.xlu1 %v5418_v39 }
0x1e9c   :  { %9227 = vrot.lane.b32.xlu0 %v10992_v32, %s9702_s26 }
0x1e9e   :  { %5568 = vrot.lane.b32.xlu1 %v10874_v48, %s9703_s27 }
0x1ea0   :  { %5570 = vrot.lane.b32.xlu0 %v10872_v9, %s9703_s27 }
0x1ea2   :  { %5572 = vrot.lane.b32.xlu1 %v10977_v28, %s9703_s27 }
0x1ea4   :  { %5574 = vrot.lane.b32.xlu0 %v10973_v10, %s9703_s27 }
0x1ea6   :  { %5576 = vrot.lane.b32.xlu1 %v10988_v35, %s9703_s27 }
0x1ea8   :  { %5578 = vrot.lane.b32.xlu0 %v10985_v51, %s9703_s27 }
0x1eaa   :  { %9237 = vrot.lane.b32.xlu1 %v10981_v1, %s9704_s28 }
0x1eac   :  { %9232 = vrot.lane.b32.xlu0 %v10878_v18, %s9704_s28 }
0x1edd   :  { %v5411_v25 = vpop.xlane.xlu1 %5410 }
0x1ede   :  { %9600 = vrcp.f32 %v5411_v25  ;;  %v5408_v14 = vpop.xlane.xlu0 %5407 }
0x1edf   :  { %9602 = vrcp.f32 %v5408_v14 }
0x1ee1   :  { %v9218_v2 = vpop.permute.xlu1 %9217 }
0x1ee2   :  { %v9220_v30 = vunpack.i.h.bf16 %v9218_v2  ;;  %v9219_v41 = vunpack.i.l.bf16 %v9218_v2  ;;  %v9223_v45 = vpop.permute.xlu0 %9222 }
0x1ee3   :  { %v9225_v22 = vunpack.i.h.bf16 %v9223_v45  ;;  %v9224_v42 = vunpack.i.l.bf16 %v9223_v45 }
0x1ee4   :  { %v8704_v63 = vpack.c.bf16 %v9220_v30, %v9219_v41 }
0x1ee5   :  { %v8710_v53 = vpack.c.bf16 %v9225_v22, %v9224_v42 }
0x1ee6   :  { %8706 = vmatprep.subr.msk.bf16.mxu1 %vm9831_vm2, %v8704_v63 }
0x1ee8   :  { %v9601_v31 = vpop.eup %9600 }
0x1ee9   :  { %v9603_v57 = vpop.eup %9602  ;;  %v5431_v27 = vmul.f32 %v9601_v31, %v11336_v19 }
0x1eea   :  { %v5430_v38 = vmul.f32 %v9603_v57, %v9591_v15 }
0x1eec   :  { %8113 = vmatprep.mubr.msk.f32.mxu1 %vm337_vm6, %v5430_v38 }
0x1eed   :  { %8114 = vmatmul.mubr.msk.f32.vlgmr.msra.gmra.mrb[90].mxu1 %vm337_vm6, %v5431_v27 }
0x1eee   :  { %8709 = vmatpush3.bf16.xpose.msk.msra.mxu1 %vm9831_vm2, %v8704_v63 }
0x1eef   :  { %8712 = vmatprep.subr.msk.bf16.mxu1 %vm9831_vm2, %v8710_v53 }
0x1ef6   :  { %8715 = vmatpush3.bf16.xpose.msk.msra.mxu1 %vm9831_vm2, %v8710_v53 }
0x1f12   :  { %v5414_v26 = vpop.xlane.xlu1 %5413 }
0x1f13   :  { %9604 = vrcp.f32 %v5414_v26  ;;  %v5417_v36 = vpop.xlane.xlu0 %5416 }
0x1f14   :  { %9606 = vrcp.f32 %v5417_v36 }
0x1f16   :  { %v5423_v15 = vpop.xlane.xlu1 %5422 }
0x1f17   :  { %v9228_v19 = vpop.permute.xlu0 %9227  ;;  %9608 = vrcp.f32 %v5423_v15 }
0x1f18   :  { %v9230_v52 = vunpack.i.h.bf16 %v9228_v19  ;;  %v9229_v39 = vunpack.i.l.bf16 %v9228_v19 }
0x1f1a   :  { %v8716_v25 = vpack.c.bf16 %v9230_v52, %v9229_v39  ;;  %v5420_v14 = vpop.xlane.xlu1 %5419 }
0x1f1b   :  { %9610 = vrcp.f32 %v5420_v14  ;;  %v5571_v2 = vpop.permute.xlu0 %5570 }
0x1f1c   :  { %8718 = vmatprep.subr.msk.bf16.mxu1 %vm9831_vm2, %v8716_v25 }
0x1f1d   :  { %v9605_v30 = vpop.eup %9604  ;;  %8721 = vmatpush3.bf16.xpose.msk.msra.mxu1 %vm9831_vm2, %v8716_v25 }
0x1f1e   :  { %v9607_v41 = vpop.eup %9606  ;;  %v5569_v63 = vpop.permute.xlu1 %5568  ;;  %v5432_v45 = vmul.f32 %v9605_v30, %v9593_v55 }
0x1f1f   :  { %v5575_v31 = vpop.permute.xlu0 %5574  ;;  %v5433_v57 = vmul.f32 %v9607_v41, %v9595_v37 }
0x1f20   :  { %8116 = vmatprep.mubr.msk.f32.mxu1 %vm337_vm6, %v5432_v45 }
0x1f21   :  { %8117 = vmatmul.mubr.msk.f32.gmra.mrb[92].mxu1 %vm337_vm6, %v5433_v57  ;;  %v9609_v38 = vpop.eup %9608 }
0x1f22   :  { %v5573_v22 = vpop.permute.xlu1 %5572  ;;  %v5435_v15 = vmul.f32 %v9609_v38, %v11350_v3 }
0x1f23   :  { %v5579_v42 = vpop.permute.xlu0 %5578 }
0x1f25   :  { %v9611_v27 = vpop.eup %9610 }
0x1f26   :  { %v5577_v53 = vpop.permute.xlu1 %5576  ;;  %v5434_v26 = vmul.f32 %v9611_v27, %v11355_v40 }
0x1f27   :  { %v9233_v36 = vpop.permute.xlu0 %9232 }
0x1f28   :  { %v9235_v19 = vunpack.i.h.bf16 %v9233_v36  ;;  %v9234_v52 = vunpack.i.l.bf16 %v9233_v36  ;;  %8119 = vmatprep.mubr.msk.f32.mxu1 %vm337_vm6, %v5434_v26 }
0x1f29   :  { %8120 = vmatmul.mubr.msk.f32.gmra.mrb[94].mxu1 %vm337_vm6, %v5435_v15 }
0x1f2a   :  { %v8722_v55 = vpack.c.bf16 %v9235_v19, %v9234_v52  ;;  %v9238_v37 = vpop.permute.xlu1 %9237  ;;  %8134 = vmatprep.mubr.msk.f32.mxu1 %vm217_vm1, %v5569_v63 }
0x1f2b   :  { %v9240_v39 = vunpack.i.h.bf16 %v9238_v37  ;;  %v9239_v25 = vunpack.i.l.bf16 %v9238_v37 }
0x1f2c   :  { %8723 = vmatprep.subr.bf16.mxu0 %v8722_v55 }
0x1f2d   :  { %v8726_v14 = vpack.c.bf16 %v9240_v39, %v9239_v25  ;;  %8135 = vmatmul.mubr.msk.f32.vlgmr.msra.gmra.mrb[96].mxu1 %vm217_vm1, %v5571_v2  ;;  %8725 = vmatpush3.bf16.msra.mxu0 %v8722_v55 }
0x1f2e   :  { %8137 = vmatprep.mubr.msk.f32.mxu1 %vm217_vm1, %v5573_v22 }
0x1f2f   :  { %8727 = vmatprep.subr.bf16.mxu0 %v8726_v14 }
0x1f31   :  { %8138 = vmatmul.mubr.msk.f32.gmra.mrb[98].mxu1 %vm217_vm1, %v5575_v31  ;;  %8729 = vmatpush3.bf16.msra.mxu0 %v8726_v14 }
0x1f32   :  { %8140 = vmatprep.mubr.msk.f32.mxu1 %vm217_vm1, %v5577_v53 }
0x1f35   :  { %8141 = vmatmul.mubr.msk.f32.gmra.mrb[100].mxu1 %vm217_vm1, %v5579_v42 }
0x1fc0   :  { %v11404_v3 = vpop.f32.mrb[90].mxu1 }
0x1fc1   :  { %v11406_v40 = vpop.f32.mrb[91].mxu1 }
0x1ff4   :  { %v11408_v30 = vpop.f32.mrb[92].mxu1 }
0x1ff5   :  { %v11410_v41 = vpop.f32.mrb[93].mxu1 }
0x1ffc   :  { %v11412_v2 = vpop.f32.mrb[94].mxu1 }
0x1ffd   :  { %v11414_v63 = vpop.f32.mrb[95].mxu1 }
0x2000   :  { %v8136_v45 = vpop.f32.mrb[96].mxu1 }
0x2001   :  { %v5682_v57 = vpop.f32.mrb[97].mxu1  ;;  %v5714_v31 = vsel %vm337_vm6, %v8136_v45, -inf }
0x2002   :  { %5715 = vmax.xlane.f32.xlu0 %v5714_v31  ;;  %v5711_v22 = vsel %vm337_vm6, %v5682_v57, -inf }
0x2003   :  { %5712 = vmax.xlane.f32.xlu1 %v5711_v22 }
0x2004   :  { %v8139_v42 = vpop.f32.mrb[98].mxu1 }
0x2005   :  { %v5692_v38 = vpop.f32.mrb[99].mxu1  ;;  %v5720_v27 = vsel %vm337_vm6, %v8139_v42, -inf }
0x2006   :  { %v5717_v53 = vsel %vm337_vm6, %v5692_v38, -inf }
0x2007   :  { %5721 = vmax.xlane.f32.xlu1 %v5720_v27  ;;  %5718 = vmax.xlane.f32.xlu0 %v5717_v53 }
0x2008   :  { %v8142_v26 = vpop.f32.mrb[100].mxu1 }
0x2009   :  { %v5702_v36 = vpop.f32.mrb[101].mxu1  ;;  %v5726_v15 = vsel %vm337_vm6, %v8142_v26, -inf }
0x200a   :  { %v5723_v19 = vsel %vm337_vm6, %v5702_v36, -inf }
0x200b   :  { %5727 = vmax.xlane.f32.xlu1 %v5726_v15  ;;  %5724 = vmax.xlane.f32.xlu0 %v5723_v19 }
0x201c   :  { %9247 = vrot.lane.b32.xlu1 %v10878_v18, %s9705_s29 }
0x2021   :  { %9242 = vrot.lane.b32.xlu0 %v10992_v32, %s9704_s28 }
0x208f   :  { %v5716_v52 = vpop.xlane.xlu0 %5715 }
0x2090   :  { %v5730_v55 = vsub.f32 %v8136_v45, %v5716_v52  ;;  %v5713_v37 = vpop.xlane.xlu1 %5712 }
0x2091   :  { %v5729_v39 = vsub.f32 %v5682_v57, %v5713_v37 }
0x2092   :  { %v5737_v25 = vmul.f32 1.442695, %v5730_v55 }
0x2093   :  { %v5735_v14 = vmul.f32 1.442695, %v5729_v39 }
0x2094   :  { %9612 = vpow2.f32 %v5737_v25  ;;  %v5722_v31 = vpop.xlane.xlu1 %5721  ;;  %v5719_v22 = vpop.xlane.xlu0 %5718 }
0x2095   :  { %9614 = vpow2.f32 %v5735_v14 }
0x2098   :  { %v5728_v27 = vpop.xlane.xlu1 %5727  ;;  %v5725_v53 = vpop.xlane.xlu0 %5724 }
0x2099   :  { %v5734_v39 = vsub.f32 %v8142_v26, %v5728_v27  ;;  %v5733_v25 = vsub.f32 %v5702_v36, %v5725_v53 }
0x209b   :  { %v5743_v14 = vmul.f32 1.442695, %v5733_v25 }
0x209c   :  { %v9248_v15 = vpop.permute.xlu1 %9247  ;;  %v9243_v19 = vpop.permute.xlu0 %9242 }
0x209d   :  { %v9245_v54 = vunpack.i.h.bf16 %v9243_v19  ;;  %v9250_v44 = vunpack.i.h.bf16 %v9248_v15  ;;  %v9249_v20 = vunpack.i.l.bf16 %v9248_v15  ;;  %v9244_v5 = vunpack.i.l.bf16 %v9243_v19 }
0x209e   :  { %v9613_v49 = vpop.eup %9612 }
0x209f   :  { %v9615_v43 = vpop.eup %9614  ;;  %v5750_v45 = vsel %vm337_vm6, %v9613_v49, 0.0  ;;  %v8730_v52 = vpack.c.bf16 %v9245_v54, %v9244_v5  ;;  %v8736_v55 = vpack.c.bf16 %v9250_v44, %v9249_v20  ;;  %v5731_v54 = vsub.f32 %v5692_v38, %v5719_v22 }
0x20a0   :  { %5751 = vadd.xlane.f32.xlu1 %v5750_v45  ;;  %v5747_v57 = vsel %vm337_vm6, %v9615_v43, 0.0  ;;  %v5732_v5 = vsub.f32 %v8139_v42, %v5722_v31  ;;  %v5745_v20 = vmul.f32 1.442695, %v5734_v39 }
0x20a1   :  { %5748 = vadd.xlane.f32.xlu0 %v5747_v57  ;;  %8732 = vmatprep.subr.msk.bf16.mxu0 %vm9861_vm5, %v8730_v52  ;;  %v5739_v37 = vmul.f32 1.442695, %v5731_v54 }
0x20a2   :  { %8735 = vmatpush3.bf16.msk.msra.mxu0 %vm9861_vm5, %v8730_v52  ;;  %v5741_v44 = vmul.f32 1.442695, %v5732_v5 }
0x20a3   :  { %8738 = vmatprep.subr.msk.bf16.mxu0 %vm9831_vm2, %v8736_v55  ;;  %9616 = vpow2.f32 %v5739_v37 }
0x20a4   :  { %9618 = vpow2.f32 %v5741_v44 }
0x20a5   :  { %9620 = vpow2.f32 %v5745_v20 }
0x20a6   :  { %9622 = vpow2.f32 %v5743_v14 }
0x20ad   :  { %v9617_v15 = vpop.eup %9616 }
0x20ae   :  { %v9619_v19 = vpop.eup %9618  ;;  %v5753_v45 = vsel %vm337_vm6, %v9617_v15, 0.0 }
0x20af   :  { %v5756_v52 = vsel %vm337_vm6, %v9619_v19, 0.0 }
0x20b1   :  { %5909 = vrot.lane.b32.xlu1 %v10874_v48, %s9706_s30  ;;  %v9621_v48 = vpop.eup %9620 }
0x20b2   :  { %v5762_v42 = vsel %vm337_vm6, %v9621_v48, 0.0  ;;  %v9623_v38 = vpop.eup %9622 }
0x20b3   :  { %v5759_v26 = vsel %vm337_vm6, %v9623_v38, 0.0 }
0x20b7   :  { %9252 = vrot.lane.b32.xlu0 %v10981_v1, %s9705_s29 }
0x20d5   :  { %5754 = vadd.xlane.f32.xlu1 %v5753_v45 }
0x20d6   :  { %5757 = vadd.xlane.f32.xlu0 %v5756_v52 }
0x20d9   :  { %5763 = vadd.xlane.f32.xlu1 %v5762_v42 }
0x20dd   :  { %5760 = vadd.xlane.f32.xlu1 %v5759_v26 }
0x20ec   :  { %9257 = vrot.lane.b32.xlu0 %v10992_v32, %s9705_s29 }
0x20ee   :  { %5913 = vrot.lane.b32.xlu1 %v10977_v28, %s9706_s30 }
0x20f0   :  { %5911 = vrot.lane.b32.xlu0 %v10872_v9, %s9706_s30 }
0x20f2   :  { %5917 = vrot.lane.b32.xlu1 %v10988_v35, %s9706_s30 }
0x20f4   :  { %5915 = vrot.lane.b32.xlu0 %v10973_v10, %s9706_s30 }
0x20f8   :  { %5919 = vrot.lane.b32.xlu0 %v10985_v51, %s9706_s30 }
0x212d   :  { %v5752_v36 = vpop.xlane.xlu1 %5751 }
0x212e   :  { %9624 = vrcp.f32 %v5752_v36  ;;  %v5749_v31 = vpop.xlane.xlu0 %5748 }
0x212f   :  { %9626 = vrcp.f32 %v5749_v31 }
0x2131   :  { %v5910_v10 = vpop.permute.xlu1 %5909 }
0x2132   :  { %v9253_v22 = vpop.permute.xlu0 %9252 }
0x2133   :  { %v9255_v28 = vunpack.i.h.bf16 %v9253_v22  ;;  %v9254_v57 = vunpack.i.l.bf16 %v9253_v22 }
0x2135   :  { %v8742_v35 = vpack.c.bf16 %v9255_v28, %v9254_v57 }
0x2138   :  { %v9625_v27 = vpop.eup %9624 }
0x2139   :  { %v9627_v53 = vpop.eup %9626  ;;  %v5772_v9 = vmul.f32 %v9625_v27, %v9613_v49 }
0x213a   :  { %v5771_v54 = vmul.f32 %v9627_v53, %v9615_v43 }
0x213c   :  { %8155 = vmatprep.mubr.msk.f32.mxu0 %vm337_vm6, %v5771_v54 }
0x213d   :  { %8156 = vmatmul.mubr.msk.f32.vlgmr.msra.gmra.mrb[108].mxu0 %vm337_vm6, %v5772_v9 }
0x213e   :  { %8741 = vmatpush3.bf16.xpose.msk.msra.mxu0 %vm9831_vm2, %v8736_v55 }
0x213f   :  { %8744 = vmatprep.subr.msk.bf16.mxu0 %vm9831_vm2, %v8742_v35 }
0x2146   :  { %8747 = vmatpush3.bf16.xpose.msk.msra.mxu0 %vm9831_vm2, %v8742_v35 }
0x2162   :  { %v5755_v51 = vpop.xlane.xlu1 %5754 }
0x2163   :  { %9628 = vrcp.f32 %v5755_v51  ;;  %v5758_v5 = vpop.xlane.xlu0 %5757 }
0x2164   :  { %9630 = vrcp.f32 %v5758_v5 }
0x2166   :  { %v5764_v43 = vpop.xlane.xlu1 %5763 }
0x2167   :  { %v9258_v49 = vpop.permute.xlu0 %9257  ;;  %9632 = vrcp.f32 %v5764_v43 }
0x2168   :  { %v9260_v37 = vunpack.i.h.bf16 %v9258_v49  ;;  %v9259_v39 = vunpack.i.l.bf16 %v9258_v49 }
0x216a   :  { %v8748_v44 = vpack.c.bf16 %v9260_v37, %v9259_v39  ;;  %v5761_v20 = vpop.xlane.xlu1 %5760 }
0x216b   :  { %9634 = vrcp.f32 %v5761_v20  ;;  %v5912_v31 = vpop.permute.xlu0 %5911 }
0x216c   :  { %8750 = vmatprep.subr.msk.bf16.mxu0 %vm9831_vm2, %v8748_v44 }
0x216d   :  { %v9629_v55 = vpop.eup %9628  ;;  %8753 = vmatpush3.bf16.xpose.msk.msra.mxu0 %vm9831_vm2, %v8748_v44 }
0x216e   :  { %v9631_v25 = vpop.eup %9630  ;;  %v5773_v14 = vmul.f32 %v9629_v55, %v9617_v15  ;;  %v5914_v24 = vpop.permute.xlu1 %5913 }
0x216f   :  { %v5774_v45 = vmul.f32 %v9631_v25, %v9619_v19  ;;  %v5916_v15 = vpop.permute.xlu0 %5915 }
0x2170   :  { %8158 = vmatprep.mubr.msk.f32.mxu0 %vm337_vm6, %v5773_v14 }
0x2171   :  { %8159 = vmatmul.mubr.msk.f32.gmra.mrb[110].mxu0 %vm337_vm6, %v5774_v45  ;;  %v9633_v52 = vpop.eup %9632 }
0x2172   :  { %v5776_v36 = vmul.f32 %v9633_v52, %v9621_v48  ;;  %v5918_v19 = vpop.permute.xlu1 %5917 }
0x2175   :  { %v9635_v42 = vpop.eup %9634 }
0x2176   :  { %v5775_v26 = vmul.f32 %v9635_v42, %v9623_v38  ;;  %v5920_v38 = vpop.permute.xlu0 %5919 }
0x2178   :  { %8161 = vmatprep.mubr.msk.f32.mxu0 %vm337_vm6, %v5775_v26 }
0x2179   :  { %8162 = vmatmul.mubr.msk.f32.gmra.mrb[112].mxu0 %vm337_vm6, %v5776_v36 }
0x217a   :  { %8176 = vmatprep.mubr.msk.f32.mxu0 %vm217_vm1, %v5910_v10 }
0x217d   :  { %8177 = vmatmul.mubr.msk.f32.vlgmr.msra.gmra.mrb[114].mxu0 %vm217_vm1, %v5912_v31 }
0x217e   :  { %8179 = vmatprep.mubr.msk.f32.mxu0 %vm217_vm1, %v5914_v24 }
0x2181   :  { %8180 = vmatmul.mubr.msk.f32.gmra.mrb[116].mxu0 %vm217_vm1, %v5916_v15 }
0x2182   :  { %8182 = vmatprep.mubr.msk.f32.mxu0 %vm217_vm1, %v5918_v19 }
0x2185   :  { %8183 = vmatmul.mubr.msk.f32.gmra.mrb[118].mxu0 %vm217_vm1, %v5920_v38 }
0x2210   :  { %v11476_v48 = vpop.f32.mrb[108].mxu0 }
0x2211   :  { %v11478_v22 = vpop.f32.mrb[109].mxu0 }
0x2244   :  { %v11480_v27 = vpop.f32.mrb[110].mxu0 }
0x2245   :  { %v11482_v53 = vpop.f32.mrb[111].mxu0 }
0x224c   :  { %v11484_v28 = vpop.f32.mrb[112].mxu0 }
0x224d   :  { %v11486_v57 = vpop.f32.mrb[113].mxu0 }
0x2250   :  { %v8178_v54 = vpop.f32.mrb[114].mxu0 }
0x2251   :  { %v6023_v9 = vpop.f32.mrb[115].mxu0  ;;  %v6055_v35 = vsel %vm337_vm6, %v8178_v54, -inf }
0x2252   :  { %6056 = vmax.xlane.f32.xlu0 %v6055_v35  ;;  %v6052_v10 = vsel %vm337_vm6, %v6023_v9, -inf }
0x2253   :  { %6053 = vmax.xlane.f32.xlu1 %v6052_v10 }
0x2254   :  { %v8181_v51 = vpop.f32.mrb[116].mxu0 }
0x2255   :  { %v6033_v5 = vpop.f32.mrb[117].mxu0  ;;  %v6061_v43 = vsel %vm337_vm6, %v8181_v51, -inf }
0x2256   :  { %v6058_v49 = vsel %vm337_vm6, %v6033_v5, -inf }
0x2257   :  { %6062 = vmax.xlane.f32.xlu1 %v6061_v43  ;;  %6059 = vmax.xlane.f32.xlu0 %v6058_v49 }
0x2258   :  { %v8184_v37 = vpop.f32.mrb[118].mxu0 }
0x2259   :  { %v6043_v39 = vpop.f32.mrb[119].mxu0  ;;  %v6067_v44 = vsel %vm337_vm6, %v8184_v37, -inf }
0x225a   :  { %v6064_v20 = vsel %vm337_vm6, %v6043_v39, -inf }
0x225b   :  { %6068 = vmax.xlane.f32.xlu1 %v6067_v44  ;;  %6065 = vmax.xlane.f32.xlu0 %v6064_v20 }
0x22df   :  { %v6057_v55 = vpop.xlane.xlu0 %6056 }
0x22e0   :  { %v6071_v25 = vsub.f32 %v8178_v54, %v6057_v55  ;;  %v6054_v14 = vpop.xlane.xlu1 %6053 }
0x22e1   :  { %v6070_v45 = vsub.f32 %v6023_v9, %v6054_v14 }
0x22e2   :  { %v6078_v52 = vmul.f32 1.442695, %v6071_v25 }
0x22e3   :  { %v6076_v42 = vmul.f32 1.442695, %v6070_v45 }
0x22e4   :  { %9636 = vpow2.f32 %v6078_v52  ;;  %v6063_v26 = vpop.xlane.xlu1 %6062  ;;  %v6060_v36 = vpop.xlane.xlu0 %6059 }
0x22e5   :  { %9638 = vpow2.f32 %v6076_v42  ;;  %v6073_v31 = vsub.f32 %v8181_v51, %v6063_v26  ;;  %v6072_v24 = vsub.f32 %v6033_v5, %v6060_v36 }
0x22e7   :  { %v6082_v15 = vmul.f32 1.442695, %v6073_v31  ;;  %v6080_v19 = vmul.f32 1.442695, %v6072_v24 }
0x22e8   :  { %v6069_v38 = vpop.xlane.xlu1 %6068  ;;  %v6066_v35 = vpop.xlane.xlu0 %6065 }
0x22e9   :  { %9640 = vpow2.f32 %v6082_v15  ;;  %v6075_v10 = vsub.f32 %v8184_v37, %v6069_v38  ;;  %v6074_v43 = vsub.f32 %v6043_v39, %v6066_v35 }
0x22ea   :  { %9642 = vpow2.f32 %v6080_v19 }
0x22eb   :  { %v6086_v49 = vmul.f32 1.442695, %v6075_v10  ;;  %v6084_v54 = vmul.f32 1.442695, %v6074_v43 }
0x22ed   :  { %9644 = vpow2.f32 %v6086_v49 }
0x22ee   :  { %v11494_v9 = vpop.eup %9636  ;;  %9646 = vpow2.f32 %v6084_v54 }
0x22ef   :  { %v11496_v44 = vpop.eup %9638  ;;  %v6091_v51 = vsel %vm337_vm6, %v11494_v9, 0.0 }
0x22f0   :  { %6092 = vadd.xlane.f32.xlu1 %v6091_v51  ;;  %v6088_v5 = vsel %vm337_vm6, %v11496_v44, 0.0 }
0x22f1   :  { %6089 = vadd.xlane.f32.xlu0 %v6088_v5 }
0x22f3   :  { %v11502_v20 = vpop.eup %9640 }
0x22f4   :  { %v11504_v37 = vpop.eup %9642  ;;  %v6097_v39 = vsel %vm337_vm6, %v11502_v20, 0.0 }
0x22f5   :  { %6098 = vadd.xlane.f32.xlu1 %v6097_v39  ;;  %v6094_v55 = vsel %vm337_vm6, %v11504_v37, 0.0 }
0x22f6   :  { %6095 = vadd.xlane.f32.xlu0 %v6094_v55 }
0x22f7   :  { %v11510_v25 = vpop.eup %9644 }
0x22f8   :  { %v11512_v14 = vpop.eup %9646  ;;  %v6103_v45 = vsel %vm337_vm6, %v11510_v25, 0.0 }
0x22f9   :  { %6104 = vadd.xlane.f32.xlu1 %v6103_v45  ;;  %v6100_v52 = vsel %vm337_vm6, %v11512_v14, 0.0 }
0x22fa   :  { %6101 = vadd.xlane.f32.xlu0 %v6100_v52 }
0x230a   :  { %9267 = vrot.lane.b32.xlu1 %v10981_v1, %s9707_s5  ;;  %v6829_v1 = vld [vmem:[%s11786_s2 + $0x28] sm:$0xff] }
0x230e   :  { %9272 = vrot.lane.b32.xlu1 %v10992_v32, %s9707_s5 }
0x2310   :  { %9262 = vrot.lane.b32.xlu0 %v10878_v18, %s9707_s5  ;;  %v6828_v18 = vld [vmem:[%s11786_s2 + $0x20] sm:$0xff] }
0x2311   :  { %v11544_v32 = vpack.c.bf16 %v6829_v1, %v6828_v18 }
0x2312   :  { %4818 = vrot.lane.b32.xlu1 %v11096_v56, %s9708_s6  ;;  %v6830_v56 = vld [vmem:[%s11786_s2 + $0x30] sm:$0xff] }
0x2313   :  { %8769 = vmatprep.subr.bf16.mxu0 %v11544_v32 }
0x2314   :  { %4816 = vrot.lane.b32.xlu0 %v11098_v23, %s9708_s6  ;;  %v6831_v23 = vld [vmem:[%s11786_s2 + $0x38] sm:$0xff]  ;;  %8771 = vmatpush3.bf16.msra.mxu0 %v11544_v32 }
0x2316   :  { %4842 = vrot.lane.b32.xlu1 %v11170_v13, %s9709_s7  ;;  %v11558_v13 = vpack.c.bf16 %v6831_v23, %v6830_v56 }
0x2318   :  { %4840 = vrot.lane.b32.xlu0 %v11172_v50, %s9709_s7  ;;  %8773 = vmatprep.subr.bf16.mxu0 %v11558_v13 }
0x2319   :  { %8775 = vmatpush3.bf16.msra.mxu0 %v11558_v13 }
0x231a   :  { %4866 = vrot.lane.b32.xlu1 %v11242_v0, %s9710_s8 }
0x231c   :  { %4864 = vrot.lane.b32.xlu0 %v11244_v12, %s9710_s8 }
0x231e   :  { %6258 = vrot.lane.b32.xlu1 %v11404_v3, %s9708_s6 }
0x2320   :  { %6256 = vrot.lane.b32.xlu0 %v11406_v40, %s9708_s6 }
0x2322   :  { %4808 = vrot.lane.b32.xlu1 %v11090_v17, %s9708_s6 }
0x2324   :  { %6280 = vrot.lane.b32.xlu0 %v11478_v22, %s9709_s7 }
0x2326   :  { %4832 = vrot.lane.b32.xlu1 %v11164_v34, %s9709_s7 }
0x2328   :  { %6282 = vrot.lane.b32.xlu0 %v11476_v48, %s9709_s7 }
0x232a   :  { %4834 = vrot.lane.b32.xlu1 %v11162_v11, %s9709_s7 }
0x232c   :  { %4810 = vrot.lane.b32.xlu0 %v11088_v58, %s9708_s6 }
0x232e   :  { %6260 = vrot.lane.b32.xlu1 %v11410_v41, %s9708_s6 }
0x2330   :  { %4856 = vrot.lane.b32.xlu0 %v11236_v47, %s9710_s8 }
0x2332   :  { %6262 = vrot.lane.b32.xlu1 %v11408_v30, %s9708_s6 }
0x2334   :  { %4858 = vrot.lane.b32.xlu0 %v11234_v29, %s9710_s8 }
0x2336   :  { %4812 = vrot.lane.b32.xlu1 %v11094_v8, %s9708_s6 }
0x2338   :  { %6284 = vrot.lane.b32.xlu0 %v11482_v53, %s9709_s7 }
0x233a   :  { %4836 = vrot.lane.b32.xlu1 %v11168_v59, %s9709_s7 }
0x233c   :  { %6286 = vrot.lane.b32.xlu0 %v11480_v27, %s9709_s7 }
0x233e   :  { %4838 = vrot.lane.b32.xlu1 %v11166_v60, %s9709_s7 }
0x2340   :  { %4814 = vrot.lane.b32.xlu0 %v11092_v4, %s9708_s6 }
0x2342   :  { %6264 = vrot.lane.b32.xlu1 %v11414_v63, %s9708_s6 }
0x2344   :  { %4860 = vrot.lane.b32.xlu0 %v11240_v61, %s9710_s8 }
0x2346   :  { %6266 = vrot.lane.b32.xlu1 %v11412_v2, %s9708_s6 }
0x2348   :  { %4862 = vrot.lane.b32.xlu0 %v11238_v16, %s9710_s8 }
0x234c   :  { %6288 = vrot.lane.b32.xlu0 %v11486_v57, %s9709_s7 }
0x237d   :  { %v6093_v58 = vpop.xlane.xlu1 %6092 }
0x237e   :  { %v6090_v17 = vpop.xlane.xlu0 %6089 }
0x237f   :  { %9648 = vrcp.f32 %v6090_v17 }
0x2380   :  { %9650 = vrcp.f32 %v6093_v58  ;;  %v11839_v58 = vld [vmem:[#allocation21_spill] sm:$0xff] }
0x2382   :  { %v6099_v8 = vpop.xlane.xlu1 %6098 }
0x2383   :  { %v6096_v4 = vpop.xlane.xlu0 %6095 }
0x2384   :  { %9652 = vrcp.f32 %v6096_v4 }
0x2385   :  { %9654 = vrcp.f32 %v6099_v8 }
0x2386   :  { %v6105_v11 = vpop.xlane.xlu1 %6104 }
0x2387   :  { %v6102_v34 = vpop.xlane.xlu0 %6101 }
0x2388   :  { %9656 = vrcp.f32 %v6102_v34 }
0x2389   :  { %v9649_v60 = vpop.eup %9648  ;;  %9658 = vrcp.f32 %v6105_v11  ;;  %v11840_v11 = vld [vmem:[#allocation20_spill] sm:$0xff] }
0x238a   :  { %v9268_v59 = vpop.permute.xlu1 %9267  ;;  %v6112_v50 = vmul.f32 %v9649_v60, %v11496_v44  ;;  %v9651_v53 = vpop.eup %9650 }
0x238b   :  { %v9263_v29 = vpop.permute.xlu0 %9262  ;;  %v9270_v47 = vunpack.i.h.bf16 %v9268_v59  ;;  %v9269_v61 = vunpack.i.l.bf16 %v9268_v59  ;;  %v6113_v26 = vmul.f32 %v9651_v53, %v11494_v9 }
0x238c   :  { %v9265_v0 = vunpack.i.h.bf16 %v9263_v29  ;;  %v9264_v12 = vunpack.i.l.bf16 %v9263_v29  ;;  %8197 = vmatprep.mubr.msk.f32.mxu1 %vm337_vm6, %v6112_v50 }
0x238d   :  { %v8758_v30 = vpack.c.bf16 %v9270_v47, %v9269_v61 }
0x238e   :  { %v8754_v16 = vpack.c.bf16 %v9265_v0, %v9264_v12  ;;  %v9273_v3 = vpop.permute.xlu1 %9272  ;;  %v9653_v42 = vpop.eup %9652  ;;  %v11841_v12 = vld [vmem:[#allocation19_spill] sm:$0xff] }
0x238f   :  { %v4817_v40 = vpop.permute.xlu0 %4816  ;;  %v9275_v41 = vunpack.i.h.bf16 %v9273_v3  ;;  %v9274_v2 = vunpack.i.l.bf16 %v9273_v3  ;;  %v9655_v31 = vpop.eup %9654  ;;  %v6114_v15 = vmul.f32 %v9653_v42, %v11504_v37 }
0x2390   :  { %8755 = vmatprep.subr.bf16.mxu1 %v8754_v16  ;;  %v6115_v35 = vmul.f32 %v9655_v31, %v11502_v20  ;;  %v4878_v9 = vsel %vm217_vm1, %v11086_v21, %v4817_v40 }
0x2391   :  { %8757 = vmatpush3.bf16.msra.mxu1 %v8754_v16  ;;  %v8762_v22 = vpack.c.bf16 %v9275_v41, %v9274_v2  ;;  %v11842_v2 = vld [vmem:[#allocation18_spill] sm:$0xff] }
0x2392   :  { %8759 = vmatprep.subr.bf16.mxu1 %v8758_v30  ;;  %v4819_v63 = vpop.permute.xlu1 %4818  ;;  %v9657_v19 = vpop.eup %9656 }
0x2393   :  { %v4841_v48 = vpop.permute.xlu0 %4840  ;;  %v9659_v10 = vpop.eup %9658  ;;  %v6116_v54 = vmul.f32 %v9657_v19, %v11512_v14  ;;  %v4879_v39 = vsel %vm217_vm1, %v11084_v7, %v4819_v63  ;;  %v11838_v7 = vld [vmem:[#allocation9_spill] sm:$0xff] }
0x2394   :  { %v6117_v51 = vmul.f32 %v9659_v10, %v11510_v25  ;;  %v11845_v10 = vld [vmem:[#allocation13_spill] sm:$0xff] }
0x2395   :  { %8761 = vmatpush3.bf16.msra.mxu1 %v8758_v30 }
0x2396   :  { %8764 = vmatprep.subr.msk.bf16.mxu1 %vm9861_vm5, %v8762_v22  ;;  %v4843_v27 = vpop.permute.xlu1 %4842 }
0x2397   :  { %v4865_v57 = vpop.permute.xlu0 %4864  ;;  %v4885_v21 = vsel %vm1638_vm7, %v4879_v39, %v4843_v27  ;;  %v11848_v39 = vld [vmem:[#allocation14_spill] sm:$0xff] }
0x2399   :  { %8767 = vmatpush3.bf16.msk.msra.mxu1 %vm9861_vm5, %v8762_v22 }
0x239a   :  { %v4867_v36 = vpop.permute.xlu1 %4866  ;;  %8776 = vmatprep.subr.bf16.mxu1 %v11544_v32 }
0x239b   :  { %v6257_v24 = vpop.permute.xlu0 %6256  ;;  %v4891_v25 = vsel %vm1645_vm8, %v4885_v21, %v4867_v36 }
0x239c   :  { %v6322_v38 = vsel %vm217_vm1, %v11316_v33, %v6257_v24  ;;  %8198 = vmatmul.mubr.msk.f32.vlgmr.msra.gmra.mrb[102].mxu1 %vm337_vm6, %v6113_v26 }
0x239d   :  { %8200 = vmatprep.mubr.msk.f32.mxu1 %vm337_vm6, %v6114_v15  ;;  %8778 = vmatpush3.bf16.msra.mxu1 %v11544_v32  ;;  %v11843_v15 = vld [vmem:[#allocation17_spill] sm:$0xff] }
0x239e   :  { %v6259_v62 = vpop.permute.xlu1 %6258  ;;  %8777 = vmatprep.subr.bf16.mxu1 %v11558_v13 }
0x239f   :  { %v6323_v43 = vsel %vm217_vm1, %v11314_v46, %v6259_v62  ;;  %v6281_v49 = vpop.permute.xlu0 %6280  ;;  %v4884_v46 = vsel %vm1638_vm7, %v4878_v9, %v4841_v48  ;;  %v11844_v62 = vld [vmem:[#allocation16_spill] sm:$0xff] }
0x23a0   :  { %v11622_v33 = vsel %vm1638_vm7, %v6322_v38, %v6281_v49  ;;  %8201 = vmatmul.mubr.msk.f32.gmra.mrb[104].mxu1 %vm337_vm6, %v6115_v35  ;;  %v4890_v20 = vsel %vm1645_vm8, %v4884_v46, %v4865_v57  ;;  %v11847_v46 = vld [vmem:[#allocation15_spill] sm:$0xff] }
0x23a1   :  { %8203 = vmatprep.mubr.msk.f32.mxu1 %vm337_vm6, %v6116_v54  ;;  %8779 = vmatpush3.bf16.msra.mxu1 %v11558_v13  ;;  %v11846_v54 = vld [vmem:[#allocation12_spill] sm:$0xff] }
0x23a2   :  { %v4809_v44 = vpop.permute.xlu1 %4808 }
0x23a3   :  { %v6283_v5 = vpop.permute.xlu0 %6282  ;;  %v4874_v45 = vsel %vm217_vm1, %v11078_v6, %v4809_v44 }
0x23a4   :  { %v11633_v37 = vsel %vm1638_vm7, %v6323_v43, %v6283_v5  ;;  %8204 = vmatmul.mubr.msk.f32.gmra.mrb[106].mxu1 %vm337_vm6, %v6117_v51 }
0x23a5   :  { %8220 = vmatprep.mubr.msk.f32.mxu1 %vm37_vm0, %v4890_v20 }
0x23a6   :  { %v4833_v55 = vpop.permute.xlu1 %4832 }
0x23a7   :  { %v4811_v14 = vpop.permute.xlu0 %4810  ;;  %v4880_v18 = vsel %vm1638_vm7, %v4874_v45, %v4833_v55 }
0x23a8   :  { %8221 = vmatmul.mubr.msk.f32.vlgmr.msra.gmra.mrb[108].mxu1 %vm37_vm0, %v4891_v25  ;;  %v4875_v56 = vsel %vm217_vm1, %v11838_v7, %v4811_v14 }
0x23aa   :  { %v4835_v52 = vpop.permute.xlu1 %4834 }
0x23ab   :  { %v4857_v1 = vpop.permute.xlu0 %4856  ;;  %v4881_v13 = vsel %vm1638_vm7, %v4875_v56, %v4835_v52 }
0x23ac   :  { %v4886_v32 = vsel %vm1645_vm8, %v4880_v18, %v4857_v1 }
0x23ad   :  { %8214 = vmatprep.mubr.msk.f32.mxu0 %vm37_vm0, %v4886_v32 }
0x23ae   :  { %v6261_v23 = vpop.permute.xlu1 %6260 }
0x23af   :  { %v6324_v17 = vsel %vm217_vm1, %v11839_v58, %v6261_v23  ;;  %v4859_v8 = vpop.permute.xlu0 %4858 }
0x23b0   :  { %v4887_v6 = vsel %vm1645_vm8, %v4881_v13, %v4859_v8 }
0x23b1   :  { %8215 = vmatmul.mubr.msk.f32.vlgmr.msra.gmra.mrb[120].mxu0 %vm37_vm0, %v4887_v6  ;;  %v11849_v6 = vld [vmem:[#allocation23_spill] sm:$0xff] }
0x23b2   :  { %v6263_v4 = vpop.permute.xlu1 %6262 }
0x23b3   :  { %v6325_v34 = vsel %vm217_vm1, %v11840_v11, %v6263_v4  ;;  %v6285_v60 = vpop.permute.xlu0 %6284 }
0x23b4   :  { %v11657_v59 = vsel %vm1638_vm7, %v6324_v17, %v6285_v60  ;;  %v11850_v60 = vld [vmem:[#allocation22_spill] sm:$0xff] }
0x23b6   :  { %v4813_v50 = vpop.permute.xlu1 %4812 }
0x23b7   :  { %v6287_v29 = vpop.permute.xlu0 %6286  ;;  %v4876_v16 = vsel %vm217_vm1, %v11841_v12, %v4813_v50 }
0x23b8   :  { %v11660_v47 = vsel %vm1638_vm7, %v6325_v34, %v6287_v29 }
0x23ba   :  { %v4837_v61 = vpop.permute.xlu1 %4836 }
0x23bb   :  { %v4815_v0 = vpop.permute.xlu0 %4814  ;;  %v4882_v3 = vsel %vm1638_vm7, %v4876_v16, %v4837_v61 }
0x23bc   :  { %v4877_v63 = vsel %vm217_vm1, %v11842_v2, %v4815_v0  ;;  %v11851_v0 = vld [vmem:[#allocation5_spill] sm:$0xff]  ;;  %v11853_v2 = vld [vmem:[#allocation8_spill] sm:$0xff] }
0x23be   :  { %v4839_v30 = vpop.permute.xlu1 %4838 }
0x23bf   :  { %v4861_v40 = vpop.permute.xlu0 %4860  ;;  %v4883_v48 = vsel %vm1638_vm7, %v4877_v63, %v4839_v30 }
0x23c0   :  { %v4888_v41 = vsel %vm1645_vm8, %v4882_v3, %v4861_v40  ;;  %v11852_v3 = vld [vmem:[#allocation6_spill] sm:$0xff] }
0x23c1   :  { %8217 = vmatprep.mubr.msk.f32.mxu0 %vm37_vm0, %v4888_v41 }
0x23c2   :  { %v6265_v52 = vpop.permute.xlu1 %6264 }
0x23c3   :  { %v4863_v22 = vpop.permute.xlu0 %4862 }
0x23c4   :  { %v4889_v27 = vsel %vm1645_vm8, %v4883_v48, %v4863_v22  ;;  %v11854_v22 = vld [vmem:[#allocation11_spill] sm:$0xff] }
0x23c5   :  { %8218 = vmatmul.mubr.msk.f32.gmra.mrb[122].mxu0 %vm37_vm0, %v4889_v27 }
0x23c6   :  { %v6267_v1 = vpop.permute.xlu1 %6266 }
0x23c7   :  { %v6289_v18 = vpop.permute.xlu0 %6288 }
0x246f   :  { %v8199_v53 = vpop.f32.mrb[102].mxu1 }
0x2470   :  { %6306 = vrot.lane.b32.xlu0 %v8199_v53, %s9710_s8  ;;  %v6221_v57 = vpop.f32.mrb[103].mxu1 }
0x2471   :  { %6304 = vrot.lane.b32.xlu1 %v6221_v57, %s9710_s8 }
0x2473   :  { %v8202_v42 = vpop.f32.mrb[104].mxu1 }
0x2474   :  { %6310 = vrot.lane.b32.xlu0 %v8202_v42, %s9710_s8  ;;  %v6231_v26 = vpop.f32.mrb[105].mxu1 }
0x2475   :  { %6308 = vrot.lane.b32.xlu1 %v6231_v26, %s9710_s8  ;;  %v11855_v26 = vld [vmem:[#allocation10_spill] sm:$0xff] }
0x2477   :  { %v8205_v36 = vpop.f32.mrb[106].mxu1 }
0x2478   :  { %v6241_v31 = vpop.f32.mrb[107].mxu1 }
0x2479   :  { %6290 = vrot.lane.b32.xlu1 %v11484_v28, %s9709_s7  ;;  %6312 = vrot.lane.b32.xlu0 %v6241_v31, %s9710_s8 }
0x247b   :  { %v8222_v24 = vpop.f32.mrb[108].mxu1 }
0x247c   :  { %v6506_v19 = vadd.f32 %v8222_v24, %v11843_v15  ;;  %v6462_v38 = vpop.f32.mrb[109].mxu1  ;;  %v11856_v24 = vld [vmem:[#allocation7_spill] sm:$0xff] }
0x247d   :  { %v6505_v35 = vadd.f32 %v6462_v38, %v11844_v62  ;;  %6314 = vrot.lane.b32.xlu1 %v8205_v36, %s9710_s8 }
0x247e   :  { %6518 = vst.msk [vmem:[%s11787_s3 + $0x28] sm:$0xff] %vm37_vm0, %v6506_v19  ;;  %v6538_v45 = vsel %vm6537_vm9, %v6506_v19, 0.0 }
0x247f   :  { %6517 = vst.msk [vmem:[%s11787_s3 + $0x20] sm:$0xff] %vm37_vm0, %v6505_v35  ;;  %v6534_v14 = vsel %vm37_vm0, %v6505_v35, 0.0 }
0x2484   :  { %v8216_v28 = vpop.f32.mrb[120].mxu0 }
0x2485   :  { %v6502_v43 = vadd.f32 %v8216_v28, %v11845_v10  ;;  %v6442_v49 = vpop.f32.mrb[121].mxu0  ;;  %v6561_v28 = vlaneseq }
0x2486   :  { %v6501_v9 = vadd.f32 %v6442_v49, %v11846_v54 }
0x2487   :  { %6514 = vst.msk [vmem:[%s11787_s3 + $0x8] sm:$0xff] %vm37_vm0, %v6502_v43  ;;  %v6525_v44 = vsel %vm37_vm0, %v6502_v43, 0.0  ;;  %v6562_v49 = vand.u32 127, %v6561_v28 }
0x2488   :  { %6513 = vst.msk [vmem:[%s11787_s3] sm:$0xff] %vm37_vm0, %v6501_v9 }
0x2489   :  { %v6567_v54 = vadd.s32 4294967288, %v6562_v49 }
0x2498   :  { %v8219_v51 = vpop.f32.mrb[122].mxu0  ;;  %6526 = vadd.xlane.f32.xlu0 %v6525_v44  ;;  %v6574_v44 = vadd.s32 4294967280, %v6562_v49 }
0x2499   :  { %v6504_v5 = vadd.f32 %v8219_v51, %v11847_v46  ;;  %v6452_v20 = vpop.f32.mrb[123].mxu0  ;;  %v6564_v51 = vshrl.u32 %v6561_v28, 7  ;;  %v6581_v46 = vadd.s32 4294967272, %v6562_v49 }
0x249a   :  { %v6503_v21 = vadd.f32 %v6452_v20, %v11848_v39  ;;  %v6588_v20 = vadd.s32 4294967264, %v6562_v49 }
0x249b   :  { %6516 = vst.msk [vmem:[%s11787_s3 + $0x18] sm:$0xff] %vm37_vm0, %v6504_v5  ;;  %v6531_v25 = vsel %vm37_vm0, %v6504_v5, 0.0  ;;  %v6570_v39 = vsub.s32 %v6567_v54, %v6564_v51 }
0x249c   :  { %6515 = vst.msk [vmem:[%s11787_s3 + $0x10] sm:$0xff] %vm37_vm0, %v6503_v21  ;;  %v6528_v55 = vsel %vm37_vm0, %v6503_v21, 0.0 }
0x24a1   :  { %6529 = vadd.xlane.f32.xlu1 %v6528_v55  ;;  %v6577_v55 = vsub.s32 %v6574_v44, %v6564_v51 }
0x24a5   :  { %6532 = vadd.xlane.f32.xlu1 %v6531_v25  ;;  %v6565_v25 = vsub.s32 %v6562_v49, %v6564_v51 }
0x24a9   :  { %6535 = vadd.xlane.f32.xlu1 %v6534_v14  ;;  %v6584_v14 = vsub.s32 %v6581_v46, %v6564_v51 }
0x24ad   :  { %6539 = vadd.xlane.f32.xlu1 %v6538_v45 }
0x24e2   :  { %v6307_v32 = vpop.permute.xlu0 %6306 }
0x24e3   :  { %v6305_v7 = vpop.permute.xlu1 %6304  ;;  %v6335_v23 = vsel %vm1645_vm8, %v11633_v37, %v6307_v32 }
0x24e4   :  { %v6334_v56 = vsel %vm1645_vm8, %v11622_v33, %v6305_v7  ;;  %v6326_v33 = vsel %vm217_vm1, %v11849_v6, %v6265_v52  ;;  %v6591_v52 = vsub.s32 %v6588_v20, %v6564_v51 }
0x24e5   :  { %8223 = vmatprep.mubr.msk.f32.mxu1 %vm37_vm0, %v6334_v56  ;;  %v6332_v37 = vsel %vm1638_vm7, %v6326_v33, %v6289_v18 }
0x24e6   :  { %8224 = vmatmul.mubr.msk.f32.gmra.mrb[110].mxu1 %vm37_vm0, %v6335_v23  ;;  %v6311_v13 = vpop.permute.xlu0 %6310 }
0x24e7   :  { %v6309_v58 = vpop.permute.xlu1 %6308  ;;  %v6337_v8 = vsel %vm1645_vm8, %v11660_v47, %v6311_v13 }
0x24e8   :  { %v6336_v17 = vsel %vm1645_vm8, %v11657_v59, %v6309_v58  ;;  %v6327_v59 = vsel %vm217_vm1, %v11850_v60, %v6267_v1 }
0x24e9   :  { %8226 = vmatprep.mubr.msk.f32.mxu1 %vm37_vm0, %v6336_v17 }
0x24ea   :  { %8227 = vmatmul.mubr.msk.f32.gmra.mrb[112].mxu1 %vm37_vm0, %v6337_v8 }
0x24eb   :  { %v6291_v4 = vpop.permute.xlu1 %6290  ;;  %v6313_v11 = vpop.permute.xlu0 %6312 }
0x24ec   :  { %v6338_v34 = vsel %vm1645_vm8, %v6332_v37, %v6313_v11  ;;  %v6333_v50 = vsel %vm1638_vm7, %v6327_v59, %v6291_v4 }
0x24ed   :  { %8229 = vmatprep.mubr.msk.f32.mxu1 %vm37_vm0, %v6338_v34 }
0x24ef   :  { %v6315_v29 = vpop.permute.xlu1 %6314 }
0x24f0   :  { %v6339_v47 = vsel %vm1645_vm8, %v6333_v50, %v6315_v29 }
0x24f1   :  { %8230 = vmatmul.mubr.msk.f32.gmra.mrb[114].mxu1 %vm37_vm0, %v6339_v47 }
0x2525   :  { %v6527_v35 = vpop.xlane.xlu0 %6526 }
0x2526   :  { %v6566_v23 = vrot.slane %v6527_v35, %v6565_v25 }
0x252e   :  { %v6530_v62 = vpop.xlane.xlu1 %6529 }
0x252f   :  { %v6571_v18 = vrot.slane %v6530_v62, %v6570_v39 }
0x2531   :  { %v6573_v33 = vsel %vm6572_vm10, %v6571_v18, %v6566_v23 }
0x2532   :  { %v6533_v10 = vpop.xlane.xlu1 %6532 }
0x2533   :  { %v6578_v56 = vrot.slane %v6533_v10, %v6577_v55 }
0x2535   :  { %v6580_v4 = vsel %vm6579_vm11, %v6578_v56, %v6573_v33 }
0x2536   :  { %v6536_v5 = vpop.xlane.xlu1 %6535 }
0x2537   :  { %v6585_v13 = vrot.slane %v6536_v5, %v6584_v14 }
0x2539   :  { %v6587_v60 = vsel %vm6586_vm12, %v6585_v13, %v6580_v4 }
0x253a   :  { %v6540_v1 = vpop.xlane.xlu1 %6539 }
0x253b   :  { %v6592_v8 = vrot.slane %v6540_v1, %v6591_v52 }
0x253d   :  { %v6594_v50 = vsel %vm6593_vm13, %v6592_v8, %v6587_v60 }
0x25b9   :  { %v8225_v61 = vpop.f32.mrb[110].mxu1 }
0x25ba   :  { %v6508_v12 = vadd.f32 %v8225_v61, %v11851_v0  ;;  %v6472_v16 = vpop.f32.mrb[111].mxu1 }
0x25bb   :  { %v6507_v40 = vadd.f32 %v6472_v16, %v11852_v3 }
0x25bc   :  { %6520 = vst.msk [vmem:[%s11787_s3 + $0x38] sm:$0xff] %vm37_vm0, %v6508_v12  ;;  %v6541_v30 = vsel %vm37_vm0, %v6508_v12, 0.0 }
0x25bd   :  { %6519 = vst.msk [vmem:[%s11787_s3 + $0x30] sm:$0xff] %vm37_vm0, %v6507_v40  ;;  %6542 = vadd.xlane.f32.xlu0 %v6541_v30  ;;  %v8228_v41 = vpop.f32.mrb[112].mxu1 }
0x25be   :  { %v6510_v63 = vadd.f32 %v8228_v41, %v11853_v2  ;;  %v6482_v48 = vpop.f32.mrb[113].mxu1 }
0x25bf   :  { %v6509_v27 = vadd.f32 %v6482_v48, %v11854_v22 }
0x25c0   :  { %6522 = vst.msk [vmem:[%s11787_s3 + $0x48] sm:$0xff] %vm37_vm0, %v6510_v63  ;;  %v6547_v53 = vsel %vm37_vm0, %v6510_v63, 0.0 }
0x25c1   :  { %6521 = vst.msk [vmem:[%s11787_s3 + $0x40] sm:$0xff] %vm37_vm0, %v6509_v27  ;;  %6548 = vadd.xlane.f32.xlu0 %v6547_v53  ;;  %v6544_v42 = vsel %vm37_vm0, %v6509_v27, 0.0 }
0x25c4   :  { %v8231_v57 = vpop.f32.mrb[114].mxu1 }
0x25c5   :  { %v6512_v36 = vadd.f32 %v8231_v57, %v11855_v26  ;;  %6545 = vadd.xlane.f32.xlu0 %v6544_v42  ;;  %v6492_v31 = vpop.f32.mrb[115].mxu1 }
0x25c6   :  { %v6511_v15 = vadd.f32 %v6492_v31, %v11856_v24 }
0x25c7   :  { %6524 = vst.msk [vmem:[%s11787_s3 + $0x58] sm:$0xff] %vm37_vm0, %v6512_v36  ;;  %v6553_v38 = vsel %vm6537_vm9, %v6512_v36, 0.0 }
0x25c8   :  { %6523 = vst.msk [vmem:[%s11787_s3 + $0x50] sm:$0xff] %vm37_vm0, %v6511_v15  ;;  %v6550_v19 = vsel %vm37_vm0, %v6511_v15, 0.0  ;;  %s9711_s3 = smov [#allocation2]  }
0x25c9   :  { %6551 = vadd.xlane.f32.xlu0 %v6550_v19  ;;  %s6638_s11 = sshll.u32 %s9711_s3, 4  ;;  %s6639_s11 = int_to_ptr.vmem [resolvable:$true] %s6638_s11 }
0x25ca   :  { %s9672_s12 = scalar_lea.vmem %s6639_s11, 32  ;;  %p9677_p1 = scmp.lt.s32.totalorder %s6639_s11, %s6639_s11 }
0x25cb   :  { %p9673_p0 = scmp.ne.s32.totalorder %s6639_s11, %s9672_s12  ;;  %p9678_p2 = scmp.lt.s32.totalorder %s9672_s12, %s9672_s12 }
0x25cd   :  { %6554 = vadd.xlane.f32.xlu0 %v6553_v38  ;;  %p9679_p3 = por %p9678_p2, %p9677_p1 }
0x25cf   :  { %p9680_p4 = pnand %p9679_p3, %p9673_p0 }
0x264a   :  { %v6543_v43 = vpop.xlane.xlu0 %6542 }
0x264b   :  { %v6604_v32 = vrot.slane %v6543_v43, %v6565_v25 }
0x264e   :  { %v6549_v9 = vpop.xlane.xlu0 %6548 }
0x264f   :  { %v6613_v6 = vrot.slane %v6549_v9, %v6577_v55 }
0x2652   :  { %v6546_v21 = vpop.xlane.xlu0 %6545 }
0x2653   :  { %v6608_v45 = vrot.slane %v6546_v21, %v6570_v39 }
0x2655   :  { %v6609_v58 = vsel %vm6572_vm10, %v6608_v45, %v6604_v32 }
0x2656   :  { %v6552_v7 = vpop.xlane.xlu0 %6551  ;;  %v6614_v11 = vsel %vm6579_vm11, %v6613_v6, %v6609_v58 }
0x2657   :  { %v6618_v17 = vrot.slane %v6552_v7, %v6584_v14 }
0x2659   :  { %v6619_v59 = vsel %vm6586_vm12, %v6618_v17, %v6614_v11 }
0x265a   :  { %v6555_v37 = vpop.xlane.xlu0 %6554 }
0x265b   :  { %v6623_v34 = vrot.slane %v6555_v37, %v6591_v52 }
0x265d   :  { %v6624_v29 = vsel %vm6593_vm13, %v6623_v34, %v6619_v59 }
0x265e   :  { %v6627_v47 = vsel %vm6626_vm14, %v6594_v50, %v6624_v29 }
0x265f   :  { %6629 = vst.msk [vmem:[#allocation2] sm:$0x3] %vm6628_vm15, %v6627_v47 }
0x2660   :  { %9683 = shalt.err (!%p9680_p4)
}
0x2661   :  { %s9684_s27 = scalar_lea.hbm %s11788_s4, 32 }
0x2662   :  { %p9685_p5 = scmp.ne.s32.totalorder %s11788_s4, %s9684_s27  ;;  %p9688_p6 = scmp.lt.u32.totalorder %s9684_s27, %s11788_s4 }
0x2664   :  { %p9690_p7 = pnand %p9688_p6, %p9685_p5 }
0x2666   :  { %9693 = shalt.err (!%p9690_p7)
}
0x2667   :  { %6641 = dma.vmem_to_hbm [thread:$0]  %s6639_s11, 32, %s11788_s4, [#allocation3]  }
0x2668   :  { %9694 = dma.done.wait [#allocation3], 32  }
0x2669   :  { %9695 = vsyncadd [#allocation3], 4294967264 }
0x266a   :  { %6647 = vsyncpa [#allocation3], 1 }

</bundles_post_ra>
